<compile_context>
chip_gen: v6e
topology: v6e:2x2x1
jax: 0.10.0
libtpu: 0.0.40
codegen_flags: <defaults>
</compile_context>

<pallas_src>
import jax
import jax.numpy as jnp
from jax import lax
from jax.experimental import pallas as pl
from jax.experimental.pallas import tpu as pltpu


def _group_kernel(xyz_ref, nbr_ref, ctr_ref):
    # xyz_ref: (3, Bb, N)   nbr_ref: (3, M, Bb, G)   ctr_ref: (3, Bb, G)
    _, Bb, N = xyz_ref.shape
    G = ctr_ref.shape[2]
    M = nbr_ref.shape[1]

    xt = xyz_ref[...].astype(jnp.float32)            # (3, Bb, N)  channel-major, lane-dense
    x0, x1, x2 = xt[0], xt[1], xt[2]                 # (Bb, N)
    xsq = x0 * x0 + x1 * x1 + x2 * x2                # (Bb, N) precomputed |p|^2

    iota_n = lax.broadcasted_iota(jnp.int32, (Bb, N), 1)
    iota_g = lax.broadcasted_iota(jnp.int32, (Bb, G), 1)

    # ---------------- Farthest point sampling (start at point 0, 1e10 init) ----------
    # NOTE: assumes squared coordinates < 1e10 (same assumption as the reference).
    def fps_body(i, carry):
        far, mind, cacc = carry                       # (Bb,1) i32, (Bb,N) f32, (3,Bb,G) f32
        oh = iota_n == far                            # exact one-hot of current farthest point
        # one stacked lane-reduce gathers all 3 channels: (3, Bb, 1), exact
        cvec = jnp.sum(jnp.where(oh[None], xt, 0.0), axis=2, keepdims=True)
        # record center i into the lane-dense per-channel accumulator (one select, no scatter)
        cacc = jnp.where((iota_g == i)[None], cvec, cacc)
        d0 = x0 - cvec[0]
        d1 = x1 - cvec[1]
        d2 = x2 - cvec[2]
        mind = jnp.minimum(mind, d0 * d0 + d1 * d1 + d2 * d2)   # exact (p - c)^2, matches fps
        mx = jnp.max(mind, axis=1, keepdims=True)
        far = jnp.min(jnp.where(mind == mx, iota_n, jnp.int32(N)),
                      axis=1, keepdims=True).astype(jnp.int32)  # first index on ties
        return far, mind, cacc

    _, _, cacc = lax.fori_loop(
        0, G, fps_body,
        (jnp.zeros((Bb, 1), jnp.int32),
         jnp.full((Bb, N), 1e10, jnp.float32),
         jnp.zeros((3, Bb, G), jnp.float32)))

    ctr_ref[...] = cacc.astype(ctr_ref.dtype)         # single lane-dense (3, Bb, G) store

    # ---------------- kNN (k smallest, square_distance form) + relative gather -------
    c0g = cacc[0][:, :, None]                          # (Bb, G, 1) per-channel centers
    c1g = cacc[1][:, :, None]
    c2g = cacc[2][:, :, None]
    csq = c0g * c0g + c1g * c1g + c2g * c2g            # (Bb, G, 1)
    # |c|^2 + |p|^2 - 2 c.p via implicit broadcasting; d is the only resident (Bb,G,N) tensor
    d = (csq + xsq[:, None, :]
         - 2.0 * (c0g * x0[:, None, :] + c1g * x1[:, None, :] + c2g * x2[:, None, :]))

    # NOTE: assumes M <= N and squared distances < 1e30 (masking sentinel), as reference.
    def knn_step(m, d):
        mn = jnp.min(d, axis=2, keepdims=True)                                          # (Bb,G,1)
        idx = jnp.min(jnp.where(d == mn, iota_n[:, None, :], jnp.int32(N)),
                      axis=2, keepdims=True)                                            # first idx on ties
        oh = iota_n[:, None, :] == idx                                                  # (Bb,G,N) one-hot
        # one stacked lane-reduce gathers all 3 channels at once -> (3, Bb, G), exact
        p = jnp.sum(jnp.where(oh[None], xt[:, :, None, :], 0.0), axis=3)
        nbr_ref[:, m] = (p - cacc).astype(nbr_ref.dtype)                                # lane-dense slab store
        return jnp.where(oh, jnp.float32(1e30), d)                                      # mask picked point

    if M <= 32:
        for m in range(M):            # static full unroll: static store slots, scheduler visibility
            d = knn_step(m, d)
    else:
        lax.fori_loop(0, M, knn_step, d)   # bounded live ranges / code size for large M


def _pick_batch_block(B):
    # Bb is the second-to-last dim of every block, so it must be a multiple of 8
    # (f32 sublanes) or the full batch dim to stay layout-legal and unpadded.
    # Single-TC chips (v5e/v6e): extra grid steps are pure serial overhead, so take
    # the largest legal block; v7x still gets >= 2 grid steps whenever B >= 16.
    if B % 8 == 0 and B > 8:
        return 8
    return B


def _vmem_limit_bytes(Bb, N, G, M):
    f32 = 4
    d_bytes = Bb * G * N * f32
    est = (2 * 3 * Bb * N * f32          # double-buffered input block
           + 6 * d_bytes                 # d + per-step masks / stacked-gather temporaries
           + 2 * 3 * M * Bb * G * f32    # double-buffered neighborhood block (lane-dense)
           + 2 * 3 * Bb * G * f32)       # double-buffered center block
    return int(min(max(est, 32 * 1024 * 1024), 64 * 1024 * 1024))


def group_forward(xyz, num_group, group_size):
    """xyz: (B, N, 3) float -> (neighborhood (B, G, M, 3), center (B, G, 3))."""
    B, N, C = xyz.shape
    assert C == 3  # TODO(synk): C>3 (rgb) branch of Group.forward is not implemented.
    G, M = num_group, group_size
    assert M <= N and G <= N
    Bb = _pick_batch_block(B)

    xyz_t = jnp.transpose(xyz, (2, 0, 1))            # (3, B, N): N on the lane axis in-kernel

    nbr_t, ctr_t = pl.pallas_call(
        _group_kernel,
        grid=(B // Bb,),
        in_specs=[pl.BlockSpec((3, Bb, N), lambda b: (0, b, 0))],
        out_specs=[
            pl.BlockSpec((3, M, Bb, G), lambda b: (0, 0, b, 0)),
            pl.BlockSpec((3, Bb, G), lambda b: (0, b, 0)),
        ],
        out_shape=(
            jax.ShapeDtypeStruct((3, M, B, G), xyz.dtype),
            jax.ShapeDtypeStruct((3, B, G), xyz.dtype),
        ),
        compiler_params=pltpu.CompilerParams(
            dimension_semantics=("parallel",),
            vmem_limit_bytes=_vmem_limit_bytes(Bb, N, G, M),
        ),
    )(xyz_t)

    neighborhood = jnp.transpose(nbr_t, (2, 3, 1, 0))  # (B, G, M, 3)
    center = jnp.transpose(ctr_t, (1, 2, 0))           # (B, G, 3)
    return neighborhood, center


if __name__ == "__main__":
    key = jax.random.PRNGKey(0)
    B, N = 2, 128
    num_group, group_size = 8, 16

    xyz = jax.random.normal(key, (B, N, 3), dtype=jnp.float32)

    neighborhood, center = group_forward(xyz, num_group, group_size)
    jax.block_until_ready((neighborhood, center))

    assert neighborhood.shape == (B, num_group, group_size, 3)
    assert center.shape == (B, num_group, 3)
    assert bool(jnp.isfinite(neighborhood).all())
    assert bool(jnp.isfinite(center).all())

    # every center must be an exact copy of one of the input points (FPS gather is exact)
    gap = jnp.abs(center[:, :, None, :] - xyz[:, None, :, :]).max(-1).min(-1)
    assert float(gap.max()) == 0.0

    print("KERNEL_OK")
</pallas_src>

<mosaic_0001>
module attributes {stable_mosaic.version = 11 : i64} {
  func.func @_group_kernel(%arg0: i32, %arg1: memref<3x2x128xf32, #tpu.memory_space<vmem>>, %arg2: memref<3x16x2x8xf32, #tpu.memory_space<vmem>>, %arg3: memref<3x2x8xf32, #tpu.memory_space<vmem>>) attributes {dimension_semantics = [#tpu.dimension_semantics<parallel>], iteration_bounds = array<i64: 1>, scalar_prefetch = 0 : i64, scratch_operands = 0 : i64, tpu.core_type = #tpu.core_type<tc>, window_params = [{transform_indices = @transform_0, window_bounds = array<i64: 3, 2, 128>}, {transform_indices = @transform_1, window_bounds = array<i64: 3, 16, 2, 8>}, {transform_indices = @transform_2, window_bounds = array<i64: 3, 2, 8>}]} {
    %c0 = arith.constant 0 : index
    %c0_0 = arith.constant 0 : index
    %c0_1 = arith.constant 0 : index
    %0 = vector.load %arg1[%c0, %c0_0, %c0_1] : memref<3x2x128xf32, #tpu.memory_space<vmem>>, vector<3x2x128xf32>
    %1 = vector.extract_strided_slice %0 {offsets = [0, 0, 0], sizes = [1, 2, 128], strides = [1, 1, 1]} : vector<3x2x128xf32> to vector<1x2x128xf32>
    %2 = vector.shape_cast %1 : vector<1x2x128xf32> to vector<2x128xf32>
    %3 = vector.extract_strided_slice %0 {offsets = [1, 0, 0], sizes = [1, 2, 128], strides = [1, 1, 1]} : vector<3x2x128xf32> to vector<1x2x128xf32>
    %4 = vector.shape_cast %3 : vector<1x2x128xf32> to vector<2x128xf32>
    %5 = vector.extract_strided_slice %0 {offsets = [2, 0, 0], sizes = [1, 2, 128], strides = [1, 1, 1]} : vector<3x2x128xf32> to vector<1x2x128xf32>
    %6 = vector.shape_cast %5 : vector<1x2x128xf32> to vector<2x128xf32>
    %7 = arith.mulf %2, %2 : vector<2x128xf32>
    %8 = arith.mulf %4, %4 : vector<2x128xf32>
    %9 = arith.addf %7, %8 : vector<2x128xf32>
    %10 = arith.mulf %6, %6 : vector<2x128xf32>
    %11 = arith.addf %9, %10 : vector<2x128xf32>
    %12 = tpu.iota {dimensions = array<i32: 1>} : vector<2x128xi32>
    %13 = tpu.iota {dimensions = array<i32: 1>} : vector<2x8xi32>
    %c0_i32 = arith.constant 0 : i32
    %14 = vector.broadcast %c0_i32 : i32 to vector<2x1xi32>
    %cst = arith.constant 1.000000e+10 : f32
    %15 = vector.broadcast %cst : f32 to vector<2x128xf32>
    %cst_2 = arith.constant 0.000000e+00 : f32
    %16 = vector.broadcast %cst_2 : f32 to vector<3x2x8xf32>
    %c0_i32_3 = arith.constant 0 : i32
    %c8_i32 = arith.constant 8 : i32
    %17 = arith.addi %c0_i32_3, %c8_i32 : i32
    %c1_i32 = arith.constant 1 : i32
    %18:3 = scf.for %arg4 = %c0_i32_3 to %17 step %c1_i32 iter_args(%arg5 = %14, %arg6 = %15, %arg7 = %16) -> (vector<2x1xi32>, vector<2x128xf32>, vector<3x2x8xf32>)  : i32 {
      %533 = vector.broadcast %arg5 : vector<2x1xi32> to vector<2x128xi32>
      %534 = arith.cmpi eq, %12, %533 : vector<2x128xi32>
      %535 = vector.shape_cast %534 : vector<2x128xi1> to vector<1x2x128xi1>
      %cst_152 = arith.constant 0.000000e+00 : f32
      %536 = vector.shape_cast %535 : vector<1x2x128xi1> to vector<1x2x128xi1>
      %537 = vector.broadcast %536 : vector<1x2x128xi1> to vector<3x2x128xi1>
      %538 = vector.broadcast %cst_152 : f32 to vector<3x2x128xf32>
      %539 = arith.select %537, %0, %538 : vector<3x2x128xi1>, vector<3x2x128xf32>
      %cst_153 = arith.constant dense<0.000000e+00> : vector<3x2xf32>
      %540 = vector.multi_reduction <add>, %539, %cst_153 [2] : vector<3x2x128xf32> to vector<3x2xf32>
      %541 = vector.shape_cast %540 : vector<3x2xf32> to vector<3x2x1xf32>
      %542 = vector.broadcast %arg4 : i32 to vector<2x8xi32>
      %543 = arith.cmpi eq, %13, %542 : vector<2x8xi32>
      %544 = vector.shape_cast %543 : vector<2x8xi1> to vector<1x2x8xi1>
      %545 = vector.shape_cast %544 : vector<1x2x8xi1> to vector<1x2x8xi1>
      %546 = vector.broadcast %545 : vector<1x2x8xi1> to vector<3x2x8xi1>
      %547 = vector.shape_cast %541 : vector<3x2x1xf32> to vector<3x2x1xf32>
      %548 = vector.broadcast %547 : vector<3x2x1xf32> to vector<3x2x8xf32>
      %549 = arith.select %546, %548, %arg7 : vector<3x2x8xi1>, vector<3x2x8xf32>
      %550 = vector.extract_strided_slice %541 {offsets = [0, 0, 0], sizes = [1, 2, 1], strides = [1, 1, 1]} : vector<3x2x1xf32> to vector<1x2x1xf32>
      %551 = vector.shape_cast %550 : vector<1x2x1xf32> to vector<2x1xf32>
      %552 = vector.broadcast %551 : vector<2x1xf32> to vector<2x128xf32>
      %553 = arith.subf %2, %552 : vector<2x128xf32>
      %554 = vector.extract_strided_slice %541 {offsets = [1, 0, 0], sizes = [1, 2, 1], strides = [1, 1, 1]} : vector<3x2x1xf32> to vector<1x2x1xf32>
      %555 = vector.shape_cast %554 : vector<1x2x1xf32> to vector<2x1xf32>
      %556 = vector.broadcast %555 : vector<2x1xf32> to vector<2x128xf32>
      %557 = arith.subf %4, %556 : vector<2x128xf32>
      %558 = vector.extract_strided_slice %541 {offsets = [2, 0, 0], sizes = [1, 2, 1], strides = [1, 1, 1]} : vector<3x2x1xf32> to vector<1x2x1xf32>
      %559 = vector.shape_cast %558 : vector<1x2x1xf32> to vector<2x1xf32>
      %560 = vector.broadcast %559 : vector<2x1xf32> to vector<2x128xf32>
      %561 = arith.subf %6, %560 : vector<2x128xf32>
      %562 = arith.mulf %553, %553 : vector<2x128xf32>
      %563 = arith.mulf %557, %557 : vector<2x128xf32>
      %564 = arith.addf %562, %563 : vector<2x128xf32>
      %565 = arith.mulf %561, %561 : vector<2x128xf32>
      %566 = arith.addf %564, %565 : vector<2x128xf32>
      %567 = arith.minimumf %arg6, %566 : vector<2x128xf32>
      %cst_154 = arith.constant dense<0xFF800000> : vector<2xf32>
      %568 = vector.multi_reduction <maximumf>, %567, %cst_154 [1] : vector<2x128xf32> to vector<2xf32>
      %569 = vector.shape_cast %568 : vector<2xf32> to vector<2x1xf32>
      %570 = vector.broadcast %569 : vector<2x1xf32> to vector<2x128xf32>
      %571 = arith.cmpf oeq, %567, %570 : vector<2x128xf32>
      %c128_i32_155 = arith.constant 128 : i32
      %572 = vector.broadcast %c128_i32_155 : i32 to vector<2x128xi32>
      %573 = arith.select %571, %12, %572 : vector<2x128xi1>, vector<2x128xi32>
      %cst_156 = arith.constant dense<2147483647> : vector<2xi32>
      %574 = vector.multi_reduction <minsi>, %573, %cst_156 [1] : vector<2x128xi32> to vector<2xi32>
      %575 = vector.shape_cast %574 : vector<2xi32> to vector<2x1xi32>
      scf.yield %575, %567, %549 : vector<2x1xi32>, vector<2x128xf32>, vector<3x2x8xf32>
    }
    %c8_i32_4 = arith.constant 8 : i32
    %c0_5 = arith.constant 0 : index
    %c0_6 = arith.constant 0 : index
    %c0_7 = arith.constant 0 : index
    %19 = vector.load %arg3[%c0_5, %c0_6, %c0_7] : memref<3x2x8xf32, #tpu.memory_space<vmem>>, vector<3x2x8xf32>
    tpu.vector_store %arg3[%c0_5, %c0_6, %c0_7], %18#2 {strides = array<i32>} : memref<3x2x8xf32, #tpu.memory_space<vmem>>, vector<3x2x8xf32>,
    %20 = vector.extract_strided_slice %18#2 {offsets = [0, 0, 0], sizes = [1, 2, 8], strides = [1, 1, 1]} : vector<3x2x8xf32> to vector<1x2x8xf32>
    %21 = vector.shape_cast %20 : vector<1x2x8xf32> to vector<2x8xf32>
    %22 = vector.shape_cast %21 : vector<2x8xf32> to vector<2x8x1xf32>
    %23 = vector.extract_strided_slice %18#2 {offsets = [1, 0, 0], sizes = [1, 2, 8], strides = [1, 1, 1]} : vector<3x2x8xf32> to vector<1x2x8xf32>
    %24 = vector.shape_cast %23 : vector<1x2x8xf32> to vector<2x8xf32>
    %25 = vector.shape_cast %24 : vector<2x8xf32> to vector<2x8x1xf32>
    %26 = vector.extract_strided_slice %18#2 {offsets = [2, 0, 0], sizes = [1, 2, 8], strides = [1, 1, 1]} : vector<3x2x8xf32> to vector<1x2x8xf32>
    %27 = vector.shape_cast %26 : vector<1x2x8xf32> to vector<2x8xf32>
    %28 = vector.shape_cast %27 : vector<2x8xf32> to vector<2x8x1xf32>
    %29 = arith.mulf %22, %22 : vector<2x8x1xf32>
    %30 = arith.mulf %25, %25 : vector<2x8x1xf32>
    %31 = arith.addf %29, %30 : vector<2x8x1xf32>
    %32 = arith.mulf %28, %28 : vector<2x8x1xf32>
    %33 = arith.addf %31, %32 : vector<2x8x1xf32>
    %34 = vector.shape_cast %11 : vector<2x128xf32> to vector<2x1x128xf32>
    %35 = vector.broadcast %33 : vector<2x8x1xf32> to vector<2x8x128xf32>
    %36 = vector.broadcast %34 : vector<2x1x128xf32> to vector<2x8x128xf32>
    %37 = arith.addf %35, %36 : vector<2x8x128xf32>
    %38 = vector.shape_cast %2 : vector<2x128xf32> to vector<2x1x128xf32>
    %39 = vector.broadcast %22 : vector<2x8x1xf32> to vector<2x8x128xf32>
    %40 = vector.broadcast %38 : vector<2x1x128xf32> to vector<2x8x128xf32>
    %41 = arith.mulf %39, %40 : vector<2x8x128xf32>
    %42 = vector.shape_cast %4 : vector<2x128xf32> to vector<2x1x128xf32>
    %43 = vector.broadcast %25 : vector<2x8x1xf32> to vector<2x8x128xf32>
    %44 = vector.broadcast %42 : vector<2x1x128xf32> to vector<2x8x128xf32>
    %45 = arith.mulf %43, %44 : vector<2x8x128xf32>
    %46 = arith.addf %41, %45 : vector<2x8x128xf32>
    %47 = vector.shape_cast %6 : vector<2x128xf32> to vector<2x1x128xf32>
    %48 = vector.broadcast %28 : vector<2x8x1xf32> to vector<2x8x128xf32>
    %49 = vector.broadcast %47 : vector<2x1x128xf32> to vector<2x8x128xf32>
    %50 = arith.mulf %48, %49 : vector<2x8x128xf32>
    %51 = arith.addf %46, %50 : vector<2x8x128xf32>
    %cst_8 = arith.constant 2.000000e+00 : f32
    %52 = vector.broadcast %cst_8 : f32 to vector<2x8x128xf32>
    %53 = arith.mulf %52, %51 : vector<2x8x128xf32>
    %54 = arith.subf %37, %53 : vector<2x8x128xf32>
    %cst_9 = arith.constant dense<0x7F800000> : vector<2x8xf32>
    %55 = vector.multi_reduction <minimumf>, %54, %cst_9 [2] : vector<2x8x128xf32> to vector<2x8xf32>
    %56 = vector.shape_cast %55 : vector<2x8xf32> to vector<2x8x1xf32>
    %57 = vector.broadcast %56 : vector<2x8x1xf32> to vector<2x8x128xf32>
    %58 = arith.cmpf oeq, %54, %57 : vector<2x8x128xf32>
    %59 = vector.shape_cast %12 : vector<2x128xi32> to vector<2x1x128xi32>
    %c128_i32 = arith.constant 128 : i32
    %60 = vector.shape_cast %59 : vector<2x1x128xi32> to vector<2x1x128xi32>
    %61 = vector.broadcast %60 : vector<2x1x128xi32> to vector<2x8x128xi32>
    %62 = vector.broadcast %c128_i32 : i32 to vector<2x8x128xi32>
    %63 = arith.select %58, %61, %62 : vector<2x8x128xi1>, vector<2x8x128xi32>
    %cst_10 = arith.constant dense<2147483647> : vector<2x8xi32>
    %64 = vector.multi_reduction <minsi>, %63, %cst_10 [2] : vector<2x8x128xi32> to vector<2x8xi32>
    %65 = vector.shape_cast %64 : vector<2x8xi32> to vector<2x8x1xi32>
    %66 = vector.shape_cast %12 : vector<2x128xi32> to vector<2x1x128xi32>
    %67 = vector.broadcast %66 : vector<2x1x128xi32> to vector<2x8x128xi32>
    %68 = vector.broadcast %65 : vector<2x8x1xi32> to vector<2x8x128xi32>
    %69 = arith.cmpi eq, %67, %68 : vector<2x8x128xi32>
    %70 = vector.shape_cast %69 : vector<2x8x128xi1> to vector<1x2x8x128xi1>
    %71 = vector.shape_cast %0 : vector<3x2x128xf32> to vector<3x2x1x128xf32>
    %cst_11 = arith.constant 0.000000e+00 : f32
    %72 = vector.shape_cast %70 : vector<1x2x8x128xi1> to vector<1x2x8x128xi1>
    %73 = vector.broadcast %72 : vector<1x2x8x128xi1> to vector<3x2x8x128xi1>
    %74 = vector.shape_cast %71 : vector<3x2x1x128xf32> to vector<3x2x1x128xf32>
    %75 = vector.broadcast %74 : vector<3x2x1x128xf32> to vector<3x2x8x128xf32>
    %76 = vector.broadcast %cst_11 : f32 to vector<3x2x8x128xf32>
    %77 = arith.select %73, %75, %76 : vector<3x2x8x128xi1>, vector<3x2x8x128xf32>
    %cst_12 = arith.constant dense<0.000000e+00> : vector<3x2x8xf32>
    %78 = vector.multi_reduction <add>, %77, %cst_12 [3] : vector<3x2x8x128xf32> to vector<3x2x8xf32>
    %79 = arith.subf %78, %18#2 : vector<3x2x8xf32>
    %c0_13 = arith.constant 0 : index
    %c0_14 = arith.constant 0 : index
    %c0_15 = arith.constant 0 : index
    %c0_16 = arith.constant 0 : index
    %80 = vector.load %arg2[%c0_13, %c0_14, %c0_15, %c0_16] : memref<3x16x2x8xf32, #tpu.memory_space<vmem>>, vector<3x1x2x8xf32>
    %81 = vector.shape_cast %80 : vector<3x1x2x8xf32> to vector<3x2x8xf32>
    %82 = vector.shape_cast %79 : vector<3x2x8xf32> to vector<3x1x2x8xf32>
    tpu.vector_store %arg2[%c0_13, %c0_14, %c0_15, %c0_16], %82 {strides = array<i32>} : memref<3x16x2x8xf32, #tpu.memory_space<vmem>>, vector<3x1x2x8xf32>,
    %cst_17 = arith.constant 1.000000e+30 : f32
    %83 = vector.broadcast %cst_17 : f32 to vector<2x8x128xf32>
    %84 = arith.select %69, %83, %54 : vector<2x8x128xi1>, vector<2x8x128xf32>
    %cst_18 = arith.constant dense<0x7F800000> : vector<2x8xf32>
    %85 = vector.multi_reduction <minimumf>, %84, %cst_18 [2] : vector<2x8x128xf32> to vector<2x8xf32>
    %86 = vector.shape_cast %85 : vector<2x8xf32> to vector<2x8x1xf32>
    %87 = vector.broadcast %86 : vector<2x8x1xf32> to vector<2x8x128xf32>
    %88 = arith.cmpf oeq, %84, %87 : vector<2x8x128xf32>
    %89 = vector.shape_cast %12 : vector<2x128xi32> to vector<2x1x128xi32>
    %c128_i32_19 = arith.constant 128 : i32
    %90 = vector.shape_cast %89 : vector<2x1x128xi32> to vector<2x1x128xi32>
    %91 = vector.broadcast %90 : vector<2x1x128xi32> to vector<2x8x128xi32>
    %92 = vector.broadcast %c128_i32_19 : i32 to vector<2x8x128xi32>
    %93 = arith.select %88, %91, %92 : vector<2x8x128xi1>, vector<2x8x128xi32>
    %cst_20 = arith.constant dense<2147483647> : vector<2x8xi32>
    %94 = vector.multi_reduction <minsi>, %93, %cst_20 [2] : vector<2x8x128xi32> to vector<2x8xi32>
    %95 = vector.shape_cast %94 : vector<2x8xi32> to vector<2x8x1xi32>
    %96 = vector.shape_cast %12 : vector<2x128xi32> to vector<2x1x128xi32>
    %97 = vector.broadcast %96 : vector<2x1x128xi32> to vector<2x8x128xi32>
    %98 = vector.broadcast %95 : vector<2x8x1xi32> to vector<2x8x128xi32>
    %99 = arith.cmpi eq, %97, %98 : vector<2x8x128xi32>
    %100 = vector.shape_cast %99 : vector<2x8x128xi1> to vector<1x2x8x128xi1>
    %101 = vector.shape_cast %0 : vector<3x2x128xf32> to vector<3x2x1x128xf32>
    %cst_21 = arith.constant 0.000000e+00 : f32
    %102 = vector.shape_cast %100 : vector<1x2x8x128xi1> to vector<1x2x8x128xi1>
    %103 = vector.broadcast %102 : vector<1x2x8x128xi1> to vector<3x2x8x128xi1>
    %104 = vector.shape_cast %101 : vector<3x2x1x128xf32> to vector<3x2x1x128xf32>
    %105 = vector.broadcast %104 : vector<3x2x1x128xf32> to vector<3x2x8x128xf32>
    %106 = vector.broadcast %cst_21 : f32 to vector<3x2x8x128xf32>
    %107 = arith.select %103, %105, %106 : vector<3x2x8x128xi1>, vector<3x2x8x128xf32>
    %cst_22 = arith.constant dense<0.000000e+00> : vector<3x2x8xf32>
    %108 = vector.multi_reduction <add>, %107, %cst_22 [3] : vector<3x2x8x128xf32> to vector<3x2x8xf32>
    %109 = arith.subf %108, %18#2 : vector<3x2x8xf32>
    %c0_23 = arith.constant 0 : index
    %c1 = arith.constant 1 : index
    %c0_24 = arith.constant 0 : index
    %c0_25 = arith.constant 0 : index
    %110 = vector.load %arg2[%c0_23, %c1, %c0_24, %c0_25] : memref<3x16x2x8xf32, #tpu.memory_space<vmem>>, vector<3x1x2x8xf32>
    %111 = vector.shape_cast %110 : vector<3x1x2x8xf32> to vector<3x2x8xf32>
    %112 = vector.shape_cast %109 : vector<3x2x8xf32> to vector<3x1x2x8xf32>
    tpu.vector_store %arg2[%c0_23, %c1, %c0_24, %c0_25], %112 {strides = array<i32>} : memref<3x16x2x8xf32, #tpu.memory_space<vmem>>, vector<3x1x2x8xf32>,
    %cst_26 = arith.constant 1.000000e+30 : f32
    %113 = vector.broadcast %cst_26 : f32 to vector<2x8x128xf32>
    %114 = arith.select %99, %113, %84 : vector<2x8x128xi1>, vector<2x8x128xf32>
    %cst_27 = arith.constant dense<0x7F800000> : vector<2x8xf32>
    %115 = vector.multi_reduction <minimumf>, %114, %cst_27 [2] : vector<2x8x128xf32> to vector<2x8xf32>
    %116 = vector.shape_cast %115 : vector<2x8xf32> to vector<2x8x1xf32>
    %117 = vector.broadcast %116 : vector<2x8x1xf32> to vector<2x8x128xf32>
    %118 = arith.cmpf oeq, %114, %117 : vector<2x8x128xf32>
    %119 = vector.shape_cast %12 : vector<2x128xi32> to vector<2x1x128xi32>
    %c128_i32_28 = arith.constant 128 : i32
    %120 = vector.shape_cast %119 : vector<2x1x128xi32> to vector<2x1x128xi32>
    %121 = vector.broadcast %120 : vector<2x1x128xi32> to vector<2x8x128xi32>
    %122 = vector.broadcast %c128_i32_28 : i32 to vector<2x8x128xi32>
    %123 = arith.select %118, %121, %122 : vector<2x8x128xi1>, vector<2x8x128xi32>
    %cst_29 = arith.constant dense<2147483647> : vector<2x8xi32>
    %124 = vector.multi_reduction <minsi>, %123, %cst_29 [2] : vector<2x8x128xi32> to vector<2x8xi32>
    %125 = vector.shape_cast %124 : vector<2x8xi32> to vector<2x8x1xi32>
    %126 = vector.shape_cast %12 : vector<2x128xi32> to vector<2x1x128xi32>
    %127 = vector.broadcast %126 : vector<2x1x128xi32> to vector<2x8x128xi32>
    %128 = vector.broadcast %125 : vector<2x8x1xi32> to vector<2x8x128xi32>
    %129 = arith.cmpi eq, %127, %128 : vector<2x8x128xi32>
    %130 = vector.shape_cast %129 : vector<2x8x128xi1> to vector<1x2x8x128xi1>
    %131 = vector.shape_cast %0 : vector<3x2x128xf32> to vector<3x2x1x128xf32>
    %cst_30 = arith.constant 0.000000e+00 : f32
    %132 = vector.shape_cast %130 : vector<1x2x8x128xi1> to vector<1x2x8x128xi1>
    %133 = vector.broadcast %132 : vector<1x2x8x128xi1> to vector<3x2x8x128xi1>
    %134 = vector.shape_cast %131 : vector<3x2x1x128xf32> to vector<3x2x1x128xf32>
    %135 = vector.broadcast %134 : vector<3x2x1x128xf32> to vector<3x2x8x128xf32>
    %136 = vector.broadcast %cst_30 : f32 to vector<3x2x8x128xf32>
    %137 = arith.select %133, %135, %136 : vector<3x2x8x128xi1>, vector<3x2x8x128xf32>
    %cst_31 = arith.constant dense<0.000000e+00> : vector<3x2x8xf32>
    %138 = vector.multi_reduction <add>, %137, %cst_31 [3] : vector<3x2x8x128xf32> to vector<3x2x8xf32>
    %139 = arith.subf %138, %18#2 : vector<3x2x8xf32>
    %c0_32 = arith.constant 0 : index
    %c2 = arith.constant 2 : index
    %c0_33 = arith.constant 0 : index
    %c0_34 = arith.constant 0 : index
    %140 = vector.load %arg2[%c0_32, %c2, %c0_33, %c0_34] : memref<3x16x2x8xf32, #tpu.memory_space<vmem>>, vector<3x1x2x8xf32>
    %141 = vector.shape_cast %140 : vector<3x1x2x8xf32> to vector<3x2x8xf32>
    %142 = vector.shape_cast %139 : vector<3x2x8xf32> to vector<3x1x2x8xf32>
    tpu.vector_store %arg2[%c0_32, %c2, %c0_33, %c0_34], %142 {strides = array<i32>} : memref<3x16x2x8xf32, #tpu.memory_space<vmem>>, vector<3x1x2x8xf32>,
    %cst_35 = arith.constant 1.000000e+30 : f32
    %143 = vector.broadcast %cst_35 : f32 to vector<2x8x128xf32>
    %144 = arith.select %129, %143, %114 : vector<2x8x128xi1>, vector<2x8x128xf32>
    %cst_36 = arith.constant dense<0x7F800000> : vector<2x8xf32>
    %145 = vector.multi_reduction <minimumf>, %144, %cst_36 [2] : vector<2x8x128xf32> to vector<2x8xf32>
    %146 = vector.shape_cast %145 : vector<2x8xf32> to vector<2x8x1xf32>
    %147 = vector.broadcast %146 : vector<2x8x1xf32> to vector<2x8x128xf32>
    %148 = arith.cmpf oeq, %144, %147 : vector<2x8x128xf32>
    %149 = vector.shape_cast %12 : vector<2x128xi32> to vector<2x1x128xi32>
    %c128_i32_37 = arith.constant 128 : i32
    %150 = vector.shape_cast %149 : vector<2x1x128xi32> to vector<2x1x128xi32>
    %151 = vector.broadcast %150 : vector<2x1x128xi32> to vector<2x8x128xi32>
    %152 = vector.broadcast %c128_i32_37 : i32 to vector<2x8x128xi32>
    %153 = arith.select %148, %151, %152 : vector<2x8x128xi1>, vector<2x8x128xi32>
    %cst_38 = arith.constant dense<2147483647> : vector<2x8xi32>
    %154 = vector.multi_reduction <minsi>, %153, %cst_38 [2] : vector<2x8x128xi32> to vector<2x8xi32>
    %155 = vector.shape_cast %154 : vector<2x8xi32> to vector<2x8x1xi32>
    %156 = vector.shape_cast %12 : vector<2x128xi32> to vector<2x1x128xi32>
    %157 = vector.broadcast %156 : vector<2x1x128xi32> to vector<2x8x128xi32>
    %158 = vector.broadcast %155 : vector<2x8x1xi32> to vector<2x8x128xi32>
    %159 = arith.cmpi eq, %157, %158 : vector<2x8x128xi32>
    %160 = vector.shape_cast %159 : vector<2x8x128xi1> to vector<1x2x8x128xi1>
    %161 = vector.shape_cast %0 : vector<3x2x128xf32> to vector<3x2x1x128xf32>
    %cst_39 = arith.constant 0.000000e+00 : f32
    %162 = vector.shape_cast %160 : vector<1x2x8x128xi1> to vector<1x2x8x128xi1>
    %163 = vector.broadcast %162 : vector<1x2x8x128xi1> to vector<3x2x8x128xi1>
    %164 = vector.shape_cast %161 : vector<3x2x1x128xf32> to vector<3x2x1x128xf32>
    %165 = vector.broadcast %164 : vector<3x2x1x128xf32> to vector<3x2x8x128xf32>
    %166 = vector.broadcast %cst_39 : f32 to vector<3x2x8x128xf32>
    %167 = arith.select %163, %165, %166 : vector<3x2x8x128xi1>, vector<3x2x8x128xf32>
    %cst_40 = arith.constant dense<0.000000e+00> : vector<3x2x8xf32>
    %168 = vector.multi_reduction <add>, %167, %cst_40 [3] : vector<3x2x8x128xf32> to vector<3x2x8xf32>
    %169 = arith.subf %168, %18#2 : vector<3x2x8xf32>
    %c0_41 = arith.constant 0 : index
    %c3 = arith.constant 3 : index
    %c0_42 = arith.constant 0 : index
    %c0_43 = arith.constant 0 : index
    %170 = vector.load %arg2[%c0_41, %c3, %c0_42, %c0_43] : memref<3x16x2x8xf32, #tpu.memory_space<vmem>>, vector<3x1x2x8xf32>
    %171 = vector.shape_cast %170 : vector<3x1x2x8xf32> to vector<3x2x8xf32>
    %172 = vector.shape_cast %169 : vector<3x2x8xf32> to vector<3x1x2x8xf32>
    tpu.vector_store %arg2[%c0_41, %c3, %c0_42, %c0_43], %172 {strides = array<i32>} : memref<3x16x2x8xf32, #tpu.memory_space<vmem>>, vector<3x1x2x8xf32>,
    %cst_44 = arith.constant 1.000000e+30 : f32
    %173 = vector.broadcast %cst_44 : f32 to vector<2x8x128xf32>
    %174 = arith.select %159, %173, %144 : vector<2x8x128xi1>, vector<2x8x128xf32>
    %cst_45 = arith.constant dense<0x7F800000> : vector<2x8xf32>
    %175 = vector.multi_reduction <minimumf>, %174, %cst_45 [2] : vector<2x8x128xf32> to vector<2x8xf32>
    %176 = vector.shape_cast %175 : vector<2x8xf32> to vector<2x8x1xf32>
    %177 = vector.broadcast %176 : vector<2x8x1xf32> to vector<2x8x128xf32>
    %178 = arith.cmpf oeq, %174, %177 : vector<2x8x128xf32>
    %179 = vector.shape_cast %12 : vector<2x128xi32> to vector<2x1x128xi32>
    %c128_i32_46 = arith.constant 128 : i32
    %180 = vector.shape_cast %179 : vector<2x1x128xi32> to vector<2x1x128xi32>
    %181 = vector.broadcast %180 : vector<2x1x128xi32> to vector<2x8x128xi32>
    %182 = vector.broadcast %c128_i32_46 : i32 to vector<2x8x128xi32>
    %183 = arith.select %178, %181, %182 : vector<2x8x128xi1>, vector<2x8x128xi32>
    %cst_47 = arith.constant dense<2147483647> : vector<2x8xi32>
    %184 = vector.multi_reduction <minsi>, %183, %cst_47 [2] : vector<2x8x128xi32> to vector<2x8xi32>
    %185 = vector.shape_cast %184 : vector<2x8xi32> to vector<2x8x1xi32>
    %186 = vector.shape_cast %12 : vector<2x128xi32> to vector<2x1x128xi32>
    %187 = vector.broadcast %186 : vector<2x1x128xi32> to vector<2x8x128xi32>
    %188 = vector.broadcast %185 : vector<2x8x1xi32> to vector<2x8x128xi32>
    %189 = arith.cmpi eq, %187, %188 : vector<2x8x128xi32>
    %190 = vector.shape_cast %189 : vector<2x8x128xi1> to vector<1x2x8x128xi1>
    %191 = vector.shape_cast %0 : vector<3x2x128xf32> to vector<3x2x1x128xf32>
    %cst_48 = arith.constant 0.000000e+00 : f32
    %192 = vector.shape_cast %190 : vector<1x2x8x128xi1> to vector<1x2x8x128xi1>
    %193 = vector.broadcast %192 : vector<1x2x8x128xi1> to vector<3x2x8x128xi1>
    %194 = vector.shape_cast %191 : vector<3x2x1x128xf32> to vector<3x2x1x128xf32>
    %195 = vector.broadcast %194 : vector<3x2x1x128xf32> to vector<3x2x8x128xf32>
    %196 = vector.broadcast %cst_48 : f32 to vector<3x2x8x128xf32>
    %197 = arith.select %193, %195, %196 : vector<3x2x8x128xi1>, vector<3x2x8x128xf32>
    %cst_49 = arith.constant dense<0.000000e+00> : vector<3x2x8xf32>
    %198 = vector.multi_reduction <add>, %197, %cst_49 [3] : vector<3x2x8x128xf32> to vector<3x2x8xf32>
    %199 = arith.subf %198, %18#2 : vector<3x2x8xf32>
    %c0_50 = arith.constant 0 : index
    %c4 = arith.constant 4 : index
    %c0_51 = arith.constant 0 : index
    %c0_52 = arith.constant 0 : index
    %200 = vector.load %arg2[%c0_50, %c4, %c0_51, %c0_52] : memref<3x16x2x8xf32, #tpu.memory_space<vmem>>, vector<3x1x2x8xf32>
    %201 = vector.shape_cast %200 : vector<3x1x2x8xf32> to vector<3x2x8xf32>
    %202 = vector.shape_cast %199 : vector<3x2x8xf32> to vector<3x1x2x8xf32>
    tpu.vector_store %arg2[%c0_50, %c4, %c0_51, %c0_52], %202 {strides = array<i32>} : memref<3x16x2x8xf32, #tpu.memory_space<vmem>>, vector<3x1x2x8xf32>,
    %cst_53 = arith.constant 1.000000e+30 : f32
    %203 = vector.broadcast %cst_53 : f32 to vector<2x8x128xf32>
    %204 = arith.select %189, %203, %174 : vector<2x8x128xi1>, vector<2x8x128xf32>
    %cst_54 = arith.constant dense<0x7F800000> : vector<2x8xf32>
    %205 = vector.multi_reduction <minimumf>, %204, %cst_54 [2] : vector<2x8x128xf32> to vector<2x8xf32>
    %206 = vector.shape_cast %205 : vector<2x8xf32> to vector<2x8x1xf32>
    %207 = vector.broadcast %206 : vector<2x8x1xf32> to vector<2x8x128xf32>
    %208 = arith.cmpf oeq, %204, %207 : vector<2x8x128xf32>
    %209 = vector.shape_cast %12 : vector<2x128xi32> to vector<2x1x128xi32>
    %c128_i32_55 = arith.constant 128 : i32
    %210 = vector.shape_cast %209 : vector<2x1x128xi32> to vector<2x1x128xi32>
    %211 = vector.broadcast %210 : vector<2x1x128xi32> to vector<2x8x128xi32>
    %212 = vector.broadcast %c128_i32_55 : i32 to vector<2x8x128xi32>
    %213 = arith.select %208, %211, %212 : vector<2x8x128xi1>, vector<2x8x128xi32>
    %cst_56 = arith.constant dense<2147483647> : vector<2x8xi32>
    %214 = vector.multi_reduction <minsi>, %213, %cst_56 [2] : vector<2x8x128xi32> to vector<2x8xi32>
    %215 = vector.shape_cast %214 : vector<2x8xi32> to vector<2x8x1xi32>
    %216 = vector.shape_cast %12 : vector<2x128xi32> to vector<2x1x128xi32>
    %217 = vector.broadcast %216 : vector<2x1x128xi32> to vector<2x8x128xi32>
    %218 = vector.broadcast %215 : vector<2x8x1xi32> to vector<2x8x128xi32>
    %219 = arith.cmpi eq, %217, %218 : vector<2x8x128xi32>
    %220 = vector.shape_cast %219 : vector<2x8x128xi1> to vector<1x2x8x128xi1>
    %221 = vector.shape_cast %0 : vector<3x2x128xf32> to vector<3x2x1x128xf32>
    %cst_57 = arith.constant 0.000000e+00 : f32
    %222 = vector.shape_cast %220 : vector<1x2x8x128xi1> to vector<1x2x8x128xi1>
    %223 = vector.broadcast %222 : vector<1x2x8x128xi1> to vector<3x2x8x128xi1>
    %224 = vector.shape_cast %221 : vector<3x2x1x128xf32> to vector<3x2x1x128xf32>
    %225 = vector.broadcast %224 : vector<3x2x1x128xf32> to vector<3x2x8x128xf32>
    %226 = vector.broadcast %cst_57 : f32 to vector<3x2x8x128xf32>
    %227 = arith.select %223, %225, %226 : vector<3x2x8x128xi1>, vector<3x2x8x128xf32>
    %cst_58 = arith.constant dense<0.000000e+00> : vector<3x2x8xf32>
    %228 = vector.multi_reduction <add>, %227, %cst_58 [3] : vector<3x2x8x128xf32> to vector<3x2x8xf32>
    %229 = arith.subf %228, %18#2 : vector<3x2x8xf32>
    %c0_59 = arith.constant 0 : index
    %c5 = arith.constant 5 : index
    %c0_60 = arith.constant 0 : index
    %c0_61 = arith.constant 0 : index
    %230 = vector.load %arg2[%c0_59, %c5, %c0_60, %c0_61] : memref<3x16x2x8xf32, #tpu.memory_space<vmem>>, vector<3x1x2x8xf32>
    %231 = vector.shape_cast %230 : vector<3x1x2x8xf32> to vector<3x2x8xf32>
    %232 = vector.shape_cast %229 : vector<3x2x8xf32> to vector<3x1x2x8xf32>
    tpu.vector_store %arg2[%c0_59, %c5, %c0_60, %c0_61], %232 {strides = array<i32>} : memref<3x16x2x8xf32, #tpu.memory_space<vmem>>, vector<3x1x2x8xf32>,
    %cst_62 = arith.constant 1.000000e+30 : f32
    %233 = vector.broadcast %cst_62 : f32 to vector<2x8x128xf32>
    %234 = arith.select %219, %233, %204 : vector<2x8x128xi1>, vector<2x8x128xf32>
    %cst_63 = arith.constant dense<0x7F800000> : vector<2x8xf32>
    %235 = vector.multi_reduction <minimumf>, %234, %cst_63 [2] : vector<2x8x128xf32> to vector<2x8xf32>
    %236 = vector.shape_cast %235 : vector<2x8xf32> to vector<2x8x1xf32>
    %237 = vector.broadcast %236 : vector<2x8x1xf32> to vector<2x8x128xf32>
    %238 = arith.cmpf oeq, %234, %237 : vector<2x8x128xf32>
    %239 = vector.shape_cast %12 : vector<2x128xi32> to vector<2x1x128xi32>
    %c128_i32_64 = arith.constant 128 : i32
    %240 = vector.shape_cast %239 : vector<2x1x128xi32> to vector<2x1x128xi32>
    %241 = vector.broadcast %240 : vector<2x1x128xi32> to vector<2x8x128xi32>
    %242 = vector.broadcast %c128_i32_64 : i32 to vector<2x8x128xi32>
    %243 = arith.select %238, %241, %242 : vector<2x8x128xi1>, vector<2x8x128xi32>
    %cst_65 = arith.constant dense<2147483647> : vector<2x8xi32>
    %244 = vector.multi_reduction <minsi>, %243, %cst_65 [2] : vector<2x8x128xi32> to vector<2x8xi32>
    %245 = vector.shape_cast %244 : vector<2x8xi32> to vector<2x8x1xi32>
    %246 = vector.shape_cast %12 : vector<2x128xi32> to vector<2x1x128xi32>
    %247 = vector.broadcast %246 : vector<2x1x128xi32> to vector<2x8x128xi32>
    %248 = vector.broadcast %245 : vector<2x8x1xi32> to vector<2x8x128xi32>
    %249 = arith.cmpi eq, %247, %248 : vector<2x8x128xi32>
    %250 = vector.shape_cast %249 : vector<2x8x128xi1> to vector<1x2x8x128xi1>
    %251 = vector.shape_cast %0 : vector<3x2x128xf32> to vector<3x2x1x128xf32>
    %cst_66 = arith.constant 0.000000e+00 : f32
    %252 = vector.shape_cast %250 : vector<1x2x8x128xi1> to vector<1x2x8x128xi1>
    %253 = vector.broadcast %252 : vector<1x2x8x128xi1> to vector<3x2x8x128xi1>
    %254 = vector.shape_cast %251 : vector<3x2x1x128xf32> to vector<3x2x1x128xf32>
    %255 = vector.broadcast %254 : vector<3x2x1x128xf32> to vector<3x2x8x128xf32>
    %256 = vector.broadcast %cst_66 : f32 to vector<3x2x8x128xf32>
    %257 = arith.select %253, %255, %256 : vector<3x2x8x128xi1>, vector<3x2x8x128xf32>
    %cst_67 = arith.constant dense<0.000000e+00> : vector<3x2x8xf32>
    %258 = vector.multi_reduction <add>, %257, %cst_67 [3] : vector<3x2x8x128xf32> to vector<3x2x8xf32>
    %259 = arith.subf %258, %18#2 : vector<3x2x8xf32>
    %c0_68 = arith.constant 0 : index
    %c6 = arith.constant 6 : index
    %c0_69 = arith.constant 0 : index
    %c0_70 = arith.constant 0 : index
    %260 = vector.load %arg2[%c0_68, %c6, %c0_69, %c0_70] : memref<3x16x2x8xf32, #tpu.memory_space<vmem>>, vector<3x1x2x8xf32>
    %261 = vector.shape_cast %260 : vector<3x1x2x8xf32> to vector<3x2x8xf32>
    %262 = vector.shape_cast %259 : vector<3x2x8xf32> to vector<3x1x2x8xf32>
    tpu.vector_store %arg2[%c0_68, %c6, %c0_69, %c0_70], %262 {strides = array<i32>} : memref<3x16x2x8xf32, #tpu.memory_space<vmem>>, vector<3x1x2x8xf32>,
    %cst_71 = arith.constant 1.000000e+30 : f32
    %263 = vector.broadcast %cst_71 : f32 to vector<2x8x128xf32>
    %264 = arith.select %249, %263, %234 : vector<2x8x128xi1>, vector<2x8x128xf32>
    %cst_72 = arith.constant dense<0x7F800000> : vector<2x8xf32>
    %265 = vector.multi_reduction <minimumf>, %264, %cst_72 [2] : vector<2x8x128xf32> to vector<2x8xf32>
    %266 = vector.shape_cast %265 : vector<2x8xf32> to vector<2x8x1xf32>
    %267 = vector.broadcast %266 : vector<2x8x1xf32> to vector<2x8x128xf32>
    %268 = arith.cmpf oeq, %264, %267 : vector<2x8x128xf32>
    %269 = vector.shape_cast %12 : vector<2x128xi32> to vector<2x1x128xi32>
    %c128_i32_73 = arith.constant 128 : i32
    %270 = vector.shape_cast %269 : vector<2x1x128xi32> to vector<2x1x128xi32>
    %271 = vector.broadcast %270 : vector<2x1x128xi32> to vector<2x8x128xi32>
    %272 = vector.broadcast %c128_i32_73 : i32 to vector<2x8x128xi32>
    %273 = arith.select %268, %271, %272 : vector<2x8x128xi1>, vector<2x8x128xi32>
    %cst_74 = arith.constant dense<2147483647> : vector<2x8xi32>
    %274 = vector.multi_reduction <minsi>, %273, %cst_74 [2] : vector<2x8x128xi32> to vector<2x8xi32>
    %275 = vector.shape_cast %274 : vector<2x8xi32> to vector<2x8x1xi32>
    %276 = vector.shape_cast %12 : vector<2x128xi32> to vector<2x1x128xi32>
    %277 = vector.broadcast %276 : vector<2x1x128xi32> to vector<2x8x128xi32>
    %278 = vector.broadcast %275 : vector<2x8x1xi32> to vector<2x8x128xi32>
    %279 = arith.cmpi eq, %277, %278 : vector<2x8x128xi32>
    %280 = vector.shape_cast %279 : vector<2x8x128xi1> to vector<1x2x8x128xi1>
    %281 = vector.shape_cast %0 : vector<3x2x128xf32> to vector<3x2x1x128xf32>
    %cst_75 = arith.constant 0.000000e+00 : f32
    %282 = vector.shape_cast %280 : vector<1x2x8x128xi1> to vector<1x2x8x128xi1>
    %283 = vector.broadcast %282 : vector<1x2x8x128xi1> to vector<3x2x8x128xi1>
    %284 = vector.shape_cast %281 : vector<3x2x1x128xf32> to vector<3x2x1x128xf32>
    %285 = vector.broadcast %284 : vector<3x2x1x128xf32> to vector<3x2x8x128xf32>
    %286 = vector.broadcast %cst_75 : f32 to vector<3x2x8x128xf32>
    %287 = arith.select %283, %285, %286 : vector<3x2x8x128xi1>, vector<3x2x8x128xf32>
    %cst_76 = arith.constant dense<0.000000e+00> : vector<3x2x8xf32>
    %288 = vector.multi_reduction <add>, %287, %cst_76 [3] : vector<3x2x8x128xf32> to vector<3x2x8xf32>
    %289 = arith.subf %288, %18#2 : vector<3x2x8xf32>
    %c0_77 = arith.constant 0 : index
    %c7 = arith.constant 7 : index
    %c0_78 = arith.constant 0 : index
    %c0_79 = arith.constant 0 : index
    %290 = vector.load %arg2[%c0_77, %c7, %c0_78, %c0_79] : memref<3x16x2x8xf32, #tpu.memory_space<vmem>>, vector<3x1x2x8xf32>
    %291 = vector.shape_cast %290 : vector<3x1x2x8xf32> to vector<3x2x8xf32>
    %292 = vector.shape_cast %289 : vector<3x2x8xf32> to vector<3x1x2x8xf32>
    tpu.vector_store %arg2[%c0_77, %c7, %c0_78, %c0_79], %292 {strides = array<i32>} : memref<3x16x2x8xf32, #tpu.memory_space<vmem>>, vector<3x1x2x8xf32>,
    %cst_80 = arith.constant 1.000000e+30 : f32
    %293 = vector.broadcast %cst_80 : f32 to vector<2x8x128xf32>
    %294 = arith.select %279, %293, %264 : vector<2x8x128xi1>, vector<2x8x128xf32>
    %cst_81 = arith.constant dense<0x7F800000> : vector<2x8xf32>
    %295 = vector.multi_reduction <minimumf>, %294, %cst_81 [2] : vector<2x8x128xf32> to vector<2x8xf32>
    %296 = vector.shape_cast %295 : vector<2x8xf32> to vector<2x8x1xf32>
    %297 = vector.broadcast %296 : vector<2x8x1xf32> to vector<2x8x128xf32>
    %298 = arith.cmpf oeq, %294, %297 : vector<2x8x128xf32>
    %299 = vector.shape_cast %12 : vector<2x128xi32> to vector<2x1x128xi32>
    %c128_i32_82 = arith.constant 128 : i32
    %300 = vector.shape_cast %299 : vector<2x1x128xi32> to vector<2x1x128xi32>
    %301 = vector.broadcast %300 : vector<2x1x128xi32> to vector<2x8x128xi32>
    %302 = vector.broadcast %c128_i32_82 : i32 to vector<2x8x128xi32>
    %303 = arith.select %298, %301, %302 : vector<2x8x128xi1>, vector<2x8x128xi32>
    %cst_83 = arith.constant dense<2147483647> : vector<2x8xi32>
    %304 = vector.multi_reduction <minsi>, %303, %cst_83 [2] : vector<2x8x128xi32> to vector<2x8xi32>
    %305 = vector.shape_cast %304 : vector<2x8xi32> to vector<2x8x1xi32>
    %306 = vector.shape_cast %12 : vector<2x128xi32> to vector<2x1x128xi32>
    %307 = vector.broadcast %306 : vector<2x1x128xi32> to vector<2x8x128xi32>
    %308 = vector.broadcast %305 : vector<2x8x1xi32> to vector<2x8x128xi32>
    %309 = arith.cmpi eq, %307, %308 : vector<2x8x128xi32>
    %310 = vector.shape_cast %309 : vector<2x8x128xi1> to vector<1x2x8x128xi1>
    %311 = vector.shape_cast %0 : vector<3x2x128xf32> to vector<3x2x1x128xf32>
    %cst_84 = arith.constant 0.000000e+00 : f32
    %312 = vector.shape_cast %310 : vector<1x2x8x128xi1> to vector<1x2x8x128xi1>
    %313 = vector.broadcast %312 : vector<1x2x8x128xi1> to vector<3x2x8x128xi1>
    %314 = vector.shape_cast %311 : vector<3x2x1x128xf32> to vector<3x2x1x128xf32>
    %315 = vector.broadcast %314 : vector<3x2x1x128xf32> to vector<3x2x8x128xf32>
    %316 = vector.broadcast %cst_84 : f32 to vector<3x2x8x128xf32>
    %317 = arith.select %313, %315, %316 : vector<3x2x8x128xi1>, vector<3x2x8x128xf32>
    %cst_85 = arith.constant dense<0.000000e+00> : vector<3x2x8xf32>
    %318 = vector.multi_reduction <add>, %317, %cst_85 [3] : vector<3x2x8x128xf32> to vector<3x2x8xf32>
    %319 = arith.subf %318, %18#2 : vector<3x2x8xf32>
    %c0_86 = arith.constant 0 : index
    %c8 = arith.constant 8 : index
    %c0_87 = arith.constant 0 : index
    %c0_88 = arith.constant 0 : index
    %320 = vector.load %arg2[%c0_86, %c8, %c0_87, %c0_88] : memref<3x16x2x8xf32, #tpu.memory_space<vmem>>, vector<3x1x2x8xf32>
    %321 = vector.shape_cast %320 : vector<3x1x2x8xf32> to vector<3x2x8xf32>
    %322 = vector.shape_cast %319 : vector<3x2x8xf32> to vector<3x1x2x8xf32>
    tpu.vector_store %arg2[%c0_86, %c8, %c0_87, %c0_88], %322 {strides = array<i32>} : memref<3x16x2x8xf32, #tpu.memory_space<vmem>>, vector<3x1x2x8xf32>,
    %cst_89 = arith.constant 1.000000e+30 : f32
    %323 = vector.broadcast %cst_89 : f32 to vector<2x8x128xf32>
    %324 = arith.select %309, %323, %294 : vector<2x8x128xi1>, vector<2x8x128xf32>
    %cst_90 = arith.constant dense<0x7F800000> : vector<2x8xf32>
    %325 = vector.multi_reduction <minimumf>, %324, %cst_90 [2] : vector<2x8x128xf32> to vector<2x8xf32>
    %326 = vector.shape_cast %325 : vector<2x8xf32> to vector<2x8x1xf32>
    %327 = vector.broadcast %326 : vector<2x8x1xf32> to vector<2x8x128xf32>
    %328 = arith.cmpf oeq, %324, %327 : vector<2x8x128xf32>
    %329 = vector.shape_cast %12 : vector<2x128xi32> to vector<2x1x128xi32>
    %c128_i32_91 = arith.constant 128 : i32
    %330 = vector.shape_cast %329 : vector<2x1x128xi32> to vector<2x1x128xi32>
    %331 = vector.broadcast %330 : vector<2x1x128xi32> to vector<2x8x128xi32>
    %332 = vector.broadcast %c128_i32_91 : i32 to vector<2x8x128xi32>
    %333 = arith.select %328, %331, %332 : vector<2x8x128xi1>, vector<2x8x128xi32>
    %cst_92 = arith.constant dense<2147483647> : vector<2x8xi32>
    %334 = vector.multi_reduction <minsi>, %333, %cst_92 [2] : vector<2x8x128xi32> to vector<2x8xi32>
    %335 = vector.shape_cast %334 : vector<2x8xi32> to vector<2x8x1xi32>
    %336 = vector.shape_cast %12 : vector<2x128xi32> to vector<2x1x128xi32>
    %337 = vector.broadcast %336 : vector<2x1x128xi32> to vector<2x8x128xi32>
    %338 = vector.broadcast %335 : vector<2x8x1xi32> to vector<2x8x128xi32>
    %339 = arith.cmpi eq, %337, %338 : vector<2x8x128xi32>
    %340 = vector.shape_cast %339 : vector<2x8x128xi1> to vector<1x2x8x128xi1>
    %341 = vector.shape_cast %0 : vector<3x2x128xf32> to vector<3x2x1x128xf32>
    %cst_93 = arith.constant 0.000000e+00 : f32
    %342 = vector.shape_cast %340 : vector<1x2x8x128xi1> to vector<1x2x8x128xi1>
    %343 = vector.broadcast %342 : vector<1x2x8x128xi1> to vector<3x2x8x128xi1>
    %344 = vector.shape_cast %341 : vector<3x2x1x128xf32> to vector<3x2x1x128xf32>
    %345 = vector.broadcast %344 : vector<3x2x1x128xf32> to vector<3x2x8x128xf32>
    %346 = vector.broadcast %cst_93 : f32 to vector<3x2x8x128xf32>
    %347 = arith.select %343, %345, %346 : vector<3x2x8x128xi1>, vector<3x2x8x128xf32>
    %cst_94 = arith.constant dense<0.000000e+00> : vector<3x2x8xf32>
    %348 = vector.multi_reduction <add>, %347, %cst_94 [3] : vector<3x2x8x128xf32> to vector<3x2x8xf32>
    %349 = arith.subf %348, %18#2 : vector<3x2x8xf32>
    %c0_95 = arith.constant 0 : index
    %c9 = arith.constant 9 : index
    %c0_96 = arith.constant 0 : index
    %c0_97 = arith.constant 0 : index
    %350 = vector.load %arg2[%c0_95, %c9, %c0_96, %c0_97] : memref<3x16x2x8xf32, #tpu.memory_space<vmem>>, vector<3x1x2x8xf32>
    %351 = vector.shape_cast %350 : vector<3x1x2x8xf32> to vector<3x2x8xf32>
    %352 = vector.shape_cast %349 : vector<3x2x8xf32> to vector<3x1x2x8xf32>
    tpu.vector_store %arg2[%c0_95, %c9, %c0_96, %c0_97], %352 {strides = array<i32>} : memref<3x16x2x8xf32, #tpu.memory_space<vmem>>, vector<3x1x2x8xf32>,
    %cst_98 = arith.constant 1.000000e+30 : f32
    %353 = vector.broadcast %cst_98 : f32 to vector<2x8x128xf32>
    %354 = arith.select %339, %353, %324 : vector<2x8x128xi1>, vector<2x8x128xf32>
    %cst_99 = arith.constant dense<0x7F800000> : vector<2x8xf32>
    %355 = vector.multi_reduction <minimumf>, %354, %cst_99 [2] : vector<2x8x128xf32> to vector<2x8xf32>
    %356 = vector.shape_cast %355 : vector<2x8xf32> to vector<2x8x1xf32>
    %357 = vector.broadcast %356 : vector<2x8x1xf32> to vector<2x8x128xf32>
    %358 = arith.cmpf oeq, %354, %357 : vector<2x8x128xf32>
    %359 = vector.shape_cast %12 : vector<2x128xi32> to vector<2x1x128xi32>
    %c128_i32_100 = arith.constant 128 : i32
    %360 = vector.shape_cast %359 : vector<2x1x128xi32> to vector<2x1x128xi32>
    %361 = vector.broadcast %360 : vector<2x1x128xi32> to vector<2x8x128xi32>
    %362 = vector.broadcast %c128_i32_100 : i32 to vector<2x8x128xi32>
    %363 = arith.select %358, %361, %362 : vector<2x8x128xi1>, vector<2x8x128xi32>
    %cst_101 = arith.constant dense<2147483647> : vector<2x8xi32>
    %364 = vector.multi_reduction <minsi>, %363, %cst_101 [2] : vector<2x8x128xi32> to vector<2x8xi32>
    %365 = vector.shape_cast %364 : vector<2x8xi32> to vector<2x8x1xi32>
    %366 = vector.shape_cast %12 : vector<2x128xi32> to vector<2x1x128xi32>
    %367 = vector.broadcast %366 : vector<2x1x128xi32> to vector<2x8x128xi32>
    %368 = vector.broadcast %365 : vector<2x8x1xi32> to vector<2x8x128xi32>
    %369 = arith.cmpi eq, %367, %368 : vector<2x8x128xi32>
    %370 = vector.shape_cast %369 : vector<2x8x128xi1> to vector<1x2x8x128xi1>
    %371 = vector.shape_cast %0 : vector<3x2x128xf32> to vector<3x2x1x128xf32>
    %cst_102 = arith.constant 0.000000e+00 : f32
    %372 = vector.shape_cast %370 : vector<1x2x8x128xi1> to vector<1x2x8x128xi1>
    %373 = vector.broadcast %372 : vector<1x2x8x128xi1> to vector<3x2x8x128xi1>
    %374 = vector.shape_cast %371 : vector<3x2x1x128xf32> to vector<3x2x1x128xf32>
    %375 = vector.broadcast %374 : vector<3x2x1x128xf32> to vector<3x2x8x128xf32>
    %376 = vector.broadcast %cst_102 : f32 to vector<3x2x8x128xf32>
    %377 = arith.select %373, %375, %376 : vector<3x2x8x128xi1>, vector<3x2x8x128xf32>
    %cst_103 = arith.constant dense<0.000000e+00> : vector<3x2x8xf32>
    %378 = vector.multi_reduction <add>, %377, %cst_103 [3] : vector<3x2x8x128xf32> to vector<3x2x8xf32>
    %379 = arith.subf %378, %18#2 : vector<3x2x8xf32>
    %c0_104 = arith.constant 0 : index
    %c10 = arith.constant 10 : index
    %c0_105 = arith.constant 0 : index
    %c0_106 = arith.constant 0 : index
    %380 = vector.load %arg2[%c0_104, %c10, %c0_105, %c0_106] : memref<3x16x2x8xf32, #tpu.memory_space<vmem>>, vector<3x1x2x8xf32>
    %381 = vector.shape_cast %380 : vector<3x1x2x8xf32> to vector<3x2x8xf32>
    %382 = vector.shape_cast %379 : vector<3x2x8xf32> to vector<3x1x2x8xf32>
    tpu.vector_store %arg2[%c0_104, %c10, %c0_105, %c0_106], %382 {strides = array<i32>} : memref<3x16x2x8xf32, #tpu.memory_space<vmem>>, vector<3x1x2x8xf32>,
    %cst_107 = arith.constant 1.000000e+30 : f32
    %383 = vector.broadcast %cst_107 : f32 to vector<2x8x128xf32>
    %384 = arith.select %369, %383, %354 : vector<2x8x128xi1>, vector<2x8x128xf32>
    %cst_108 = arith.constant dense<0x7F800000> : vector<2x8xf32>
    %385 = vector.multi_reduction <minimumf>, %384, %cst_108 [2] : vector<2x8x128xf32> to vector<2x8xf32>
    %386 = vector.shape_cast %385 : vector<2x8xf32> to vector<2x8x1xf32>
    %387 = vector.broadcast %386 : vector<2x8x1xf32> to vector<2x8x128xf32>
    %388 = arith.cmpf oeq, %384, %387 : vector<2x8x128xf32>
    %389 = vector.shape_cast %12 : vector<2x128xi32> to vector<2x1x128xi32>
    %c128_i32_109 = arith.constant 128 : i32
    %390 = vector.shape_cast %389 : vector<2x1x128xi32> to vector<2x1x128xi32>
    %391 = vector.broadcast %390 : vector<2x1x128xi32> to vector<2x8x128xi32>
    %392 = vector.broadcast %c128_i32_109 : i32 to vector<2x8x128xi32>
    %393 = arith.select %388, %391, %392 : vector<2x8x128xi1>, vector<2x8x128xi32>
    %cst_110 = arith.constant dense<2147483647> : vector<2x8xi32>
    %394 = vector.multi_reduction <minsi>, %393, %cst_110 [2] : vector<2x8x128xi32> to vector<2x8xi32>
    %395 = vector.shape_cast %394 : vector<2x8xi32> to vector<2x8x1xi32>
    %396 = vector.shape_cast %12 : vector<2x128xi32> to vector<2x1x128xi32>
    %397 = vector.broadcast %396 : vector<2x1x128xi32> to vector<2x8x128xi32>
    %398 = vector.broadcast %395 : vector<2x8x1xi32> to vector<2x8x128xi32>
    %399 = arith.cmpi eq, %397, %398 : vector<2x8x128xi32>
    %400 = vector.shape_cast %399 : vector<2x8x128xi1> to vector<1x2x8x128xi1>
    %401 = vector.shape_cast %0 : vector<3x2x128xf32> to vector<3x2x1x128xf32>
    %cst_111 = arith.constant 0.000000e+00 : f32
    %402 = vector.shape_cast %400 : vector<1x2x8x128xi1> to vector<1x2x8x128xi1>
    %403 = vector.broadcast %402 : vector<1x2x8x128xi1> to vector<3x2x8x128xi1>
    %404 = vector.shape_cast %401 : vector<3x2x1x128xf32> to vector<3x2x1x128xf32>
    %405 = vector.broadcast %404 : vector<3x2x1x128xf32> to vector<3x2x8x128xf32>
    %406 = vector.broadcast %cst_111 : f32 to vector<3x2x8x128xf32>
    %407 = arith.select %403, %405, %406 : vector<3x2x8x128xi1>, vector<3x2x8x128xf32>
    %cst_112 = arith.constant dense<0.000000e+00> : vector<3x2x8xf32>
    %408 = vector.multi_reduction <add>, %407, %cst_112 [3] : vector<3x2x8x128xf32> to vector<3x2x8xf32>
    %409 = arith.subf %408, %18#2 : vector<3x2x8xf32>
    %c0_113 = arith.constant 0 : index
    %c11 = arith.constant 11 : index
    %c0_114 = arith.constant 0 : index
    %c0_115 = arith.constant 0 : index
    %410 = vector.load %arg2[%c0_113, %c11, %c0_114, %c0_115] : memref<3x16x2x8xf32, #tpu.memory_space<vmem>>, vector<3x1x2x8xf32>
    %411 = vector.shape_cast %410 : vector<3x1x2x8xf32> to vector<3x2x8xf32>
    %412 = vector.shape_cast %409 : vector<3x2x8xf32> to vector<3x1x2x8xf32>
    tpu.vector_store %arg2[%c0_113, %c11, %c0_114, %c0_115], %412 {strides = array<i32>} : memref<3x16x2x8xf32, #tpu.memory_space<vmem>>, vector<3x1x2x8xf32>,
    %cst_116 = arith.constant 1.000000e+30 : f32
    %413 = vector.broadcast %cst_116 : f32 to vector<2x8x128xf32>
    %414 = arith.select %399, %413, %384 : vector<2x8x128xi1>, vector<2x8x128xf32>
    %cst_117 = arith.constant dense<0x7F800000> : vector<2x8xf32>
    %415 = vector.multi_reduction <minimumf>, %414, %cst_117 [2] : vector<2x8x128xf32> to vector<2x8xf32>
    %416 = vector.shape_cast %415 : vector<2x8xf32> to vector<2x8x1xf32>
    %417 = vector.broadcast %416 : vector<2x8x1xf32> to vector<2x8x128xf32>
    %418 = arith.cmpf oeq, %414, %417 : vector<2x8x128xf32>
    %419 = vector.shape_cast %12 : vector<2x128xi32> to vector<2x1x128xi32>
    %c128_i32_118 = arith.constant 128 : i32
    %420 = vector.shape_cast %419 : vector<2x1x128xi32> to vector<2x1x128xi32>
    %421 = vector.broadcast %420 : vector<2x1x128xi32> to vector<2x8x128xi32>
    %422 = vector.broadcast %c128_i32_118 : i32 to vector<2x8x128xi32>
    %423 = arith.select %418, %421, %422 : vector<2x8x128xi1>, vector<2x8x128xi32>
    %cst_119 = arith.constant dense<2147483647> : vector<2x8xi32>
    %424 = vector.multi_reduction <minsi>, %423, %cst_119 [2] : vector<2x8x128xi32> to vector<2x8xi32>
    %425 = vector.shape_cast %424 : vector<2x8xi32> to vector<2x8x1xi32>
    %426 = vector.shape_cast %12 : vector<2x128xi32> to vector<2x1x128xi32>
    %427 = vector.broadcast %426 : vector<2x1x128xi32> to vector<2x8x128xi32>
    %428 = vector.broadcast %425 : vector<2x8x1xi32> to vector<2x8x128xi32>
    %429 = arith.cmpi eq, %427, %428 : vector<2x8x128xi32>
    %430 = vector.shape_cast %429 : vector<2x8x128xi1> to vector<1x2x8x128xi1>
    %431 = vector.shape_cast %0 : vector<3x2x128xf32> to vector<3x2x1x128xf32>
    %cst_120 = arith.constant 0.000000e+00 : f32
    %432 = vector.shape_cast %430 : vector<1x2x8x128xi1> to vector<1x2x8x128xi1>
    %433 = vector.broadcast %432 : vector<1x2x8x128xi1> to vector<3x2x8x128xi1>
    %434 = vector.shape_cast %431 : vector<3x2x1x128xf32> to vector<3x2x1x128xf32>
    %435 = vector.broadcast %434 : vector<3x2x1x128xf32> to vector<3x2x8x128xf32>
    %436 = vector.broadcast %cst_120 : f32 to vector<3x2x8x128xf32>
    %437 = arith.select %433, %435, %436 : vector<3x2x8x128xi1>, vector<3x2x8x128xf32>
    %cst_121 = arith.constant dense<0.000000e+00> : vector<3x2x8xf32>
    %438 = vector.multi_reduction <add>, %437, %cst_121 [3] : vector<3x2x8x128xf32> to vector<3x2x8xf32>
    %439 = arith.subf %438, %18#2 : vector<3x2x8xf32>
    %c0_122 = arith.constant 0 : index
    %c12 = arith.constant 12 : index
    %c0_123 = arith.constant 0 : index
    %c0_124 = arith.constant 0 : index
    %440 = vector.load %arg2[%c0_122, %c12, %c0_123, %c0_124] : memref<3x16x2x8xf32, #tpu.memory_space<vmem>>, vector<3x1x2x8xf32>
    %441 = vector.shape_cast %440 : vector<3x1x2x8xf32> to vector<3x2x8xf32>
    %442 = vector.shape_cast %439 : vector<3x2x8xf32> to vector<3x1x2x8xf32>
    tpu.vector_store %arg2[%c0_122, %c12, %c0_123, %c0_124], %442 {strides = array<i32>} : memref<3x16x2x8xf32, #tpu.memory_space<vmem>>, vector<3x1x2x8xf32>,
    %cst_125 = arith.constant 1.000000e+30 : f32
    %443 = vector.broadcast %cst_125 : f32 to vector<2x8x128xf32>
    %444 = arith.select %429, %443, %414 : vector<2x8x128xi1>, vector<2x8x128xf32>
    %cst_126 = arith.constant dense<0x7F800000> : vector<2x8xf32>
    %445 = vector.multi_reduction <minimumf>, %444, %cst_126 [2] : vector<2x8x128xf32> to vector<2x8xf32>
    %446 = vector.shape_cast %445 : vector<2x8xf32> to vector<2x8x1xf32>
    %447 = vector.broadcast %446 : vector<2x8x1xf32> to vector<2x8x128xf32>
    %448 = arith.cmpf oeq, %444, %447 : vector<2x8x128xf32>
    %449 = vector.shape_cast %12 : vector<2x128xi32> to vector<2x1x128xi32>
    %c128_i32_127 = arith.constant 128 : i32
    %450 = vector.shape_cast %449 : vector<2x1x128xi32> to vector<2x1x128xi32>
    %451 = vector.broadcast %450 : vector<2x1x128xi32> to vector<2x8x128xi32>
    %452 = vector.broadcast %c128_i32_127 : i32 to vector<2x8x128xi32>
    %453 = arith.select %448, %451, %452 : vector<2x8x128xi1>, vector<2x8x128xi32>
    %cst_128 = arith.constant dense<2147483647> : vector<2x8xi32>
    %454 = vector.multi_reduction <minsi>, %453, %cst_128 [2] : vector<2x8x128xi32> to vector<2x8xi32>
    %455 = vector.shape_cast %454 : vector<2x8xi32> to vector<2x8x1xi32>
    %456 = vector.shape_cast %12 : vector<2x128xi32> to vector<2x1x128xi32>
    %457 = vector.broadcast %456 : vector<2x1x128xi32> to vector<2x8x128xi32>
    %458 = vector.broadcast %455 : vector<2x8x1xi32> to vector<2x8x128xi32>
    %459 = arith.cmpi eq, %457, %458 : vector<2x8x128xi32>
    %460 = vector.shape_cast %459 : vector<2x8x128xi1> to vector<1x2x8x128xi1>
    %461 = vector.shape_cast %0 : vector<3x2x128xf32> to vector<3x2x1x128xf32>
    %cst_129 = arith.constant 0.000000e+00 : f32
    %462 = vector.shape_cast %460 : vector<1x2x8x128xi1> to vector<1x2x8x128xi1>
    %463 = vector.broadcast %462 : vector<1x2x8x128xi1> to vector<3x2x8x128xi1>
    %464 = vector.shape_cast %461 : vector<3x2x1x128xf32> to vector<3x2x1x128xf32>
    %465 = vector.broadcast %464 : vector<3x2x1x128xf32> to vector<3x2x8x128xf32>
    %466 = vector.broadcast %cst_129 : f32 to vector<3x2x8x128xf32>
    %467 = arith.select %463, %465, %466 : vector<3x2x8x128xi1>, vector<3x2x8x128xf32>
    %cst_130 = arith.constant dense<0.000000e+00> : vector<3x2x8xf32>
    %468 = vector.multi_reduction <add>, %467, %cst_130 [3] : vector<3x2x8x128xf32> to vector<3x2x8xf32>
    %469 = arith.subf %468, %18#2 : vector<3x2x8xf32>
    %c0_131 = arith.constant 0 : index
    %c13 = arith.constant 13 : index
    %c0_132 = arith.constant 0 : index
    %c0_133 = arith.constant 0 : index
    %470 = vector.load %arg2[%c0_131, %c13, %c0_132, %c0_133] : memref<3x16x2x8xf32, #tpu.memory_space<vmem>>, vector<3x1x2x8xf32>
    %471 = vector.shape_cast %470 : vector<3x1x2x8xf32> to vector<3x2x8xf32>
    %472 = vector.shape_cast %469 : vector<3x2x8xf32> to vector<3x1x2x8xf32>
    tpu.vector_store %arg2[%c0_131, %c13, %c0_132, %c0_133], %472 {strides = array<i32>} : memref<3x16x2x8xf32, #tpu.memory_space<vmem>>, vector<3x1x2x8xf32>,
    %cst_134 = arith.constant 1.000000e+30 : f32
    %473 = vector.broadcast %cst_134 : f32 to vector<2x8x128xf32>
    %474 = arith.select %459, %473, %444 : vector<2x8x128xi1>, vector<2x8x128xf32>
    %cst_135 = arith.constant dense<0x7F800000> : vector<2x8xf32>
    %475 = vector.multi_reduction <minimumf>, %474, %cst_135 [2] : vector<2x8x128xf32> to vector<2x8xf32>
    %476 = vector.shape_cast %475 : vector<2x8xf32> to vector<2x8x1xf32>
    %477 = vector.broadcast %476 : vector<2x8x1xf32> to vector<2x8x128xf32>
    %478 = arith.cmpf oeq, %474, %477 : vector<2x8x128xf32>
    %479 = vector.shape_cast %12 : vector<2x128xi32> to vector<2x1x128xi32>
    %c128_i32_136 = arith.constant 128 : i32
    %480 = vector.shape_cast %479 : vector<2x1x128xi32> to vector<2x1x128xi32>
    %481 = vector.broadcast %480 : vector<2x1x128xi32> to vector<2x8x128xi32>
    %482 = vector.broadcast %c128_i32_136 : i32 to vector<2x8x128xi32>
    %483 = arith.select %478, %481, %482 : vector<2x8x128xi1>, vector<2x8x128xi32>
    %cst_137 = arith.constant dense<2147483647> : vector<2x8xi32>
    %484 = vector.multi_reduction <minsi>, %483, %cst_137 [2] : vector<2x8x128xi32> to vector<2x8xi32>
    %485 = vector.shape_cast %484 : vector<2x8xi32> to vector<2x8x1xi32>
    %486 = vector.shape_cast %12 : vector<2x128xi32> to vector<2x1x128xi32>
    %487 = vector.broadcast %486 : vector<2x1x128xi32> to vector<2x8x128xi32>
    %488 = vector.broadcast %485 : vector<2x8x1xi32> to vector<2x8x128xi32>
    %489 = arith.cmpi eq, %487, %488 : vector<2x8x128xi32>
    %490 = vector.shape_cast %489 : vector<2x8x128xi1> to vector<1x2x8x128xi1>
    %491 = vector.shape_cast %0 : vector<3x2x128xf32> to vector<3x2x1x128xf32>
    %cst_138 = arith.constant 0.000000e+00 : f32
    %492 = vector.shape_cast %490 : vector<1x2x8x128xi1> to vector<1x2x8x128xi1>
    %493 = vector.broadcast %492 : vector<1x2x8x128xi1> to vector<3x2x8x128xi1>
    %494 = vector.shape_cast %491 : vector<3x2x1x128xf32> to vector<3x2x1x128xf32>
    %495 = vector.broadcast %494 : vector<3x2x1x128xf32> to vector<3x2x8x128xf32>
    %496 = vector.broadcast %cst_138 : f32 to vector<3x2x8x128xf32>
    %497 = arith.select %493, %495, %496 : vector<3x2x8x128xi1>, vector<3x2x8x128xf32>
    %cst_139 = arith.constant dense<0.000000e+00> : vector<3x2x8xf32>
    %498 = vector.multi_reduction <add>, %497, %cst_139 [3] : vector<3x2x8x128xf32> to vector<3x2x8xf32>
    %499 = arith.subf %498, %18#2 : vector<3x2x8xf32>
    %c0_140 = arith.constant 0 : index
    %c14 = arith.constant 14 : index
    %c0_141 = arith.constant 0 : index
    %c0_142 = arith.constant 0 : index
    %500 = vector.load %arg2[%c0_140, %c14, %c0_141, %c0_142] : memref<3x16x2x8xf32, #tpu.memory_space<vmem>>, vector<3x1x2x8xf32>
    %501 = vector.shape_cast %500 : vector<3x1x2x8xf32> to vector<3x2x8xf32>
    %502 = vector.shape_cast %499 : vector<3x2x8xf32> to vector<3x1x2x8xf32>
    tpu.vector_store %arg2[%c0_140, %c14, %c0_141, %c0_142], %502 {strides = array<i32>} : memref<3x16x2x8xf32, #tpu.memory_space<vmem>>, vector<3x1x2x8xf32>,
    %cst_143 = arith.constant 1.000000e+30 : f32
    %503 = vector.broadcast %cst_143 : f32 to vector<2x8x128xf32>
    %504 = arith.select %489, %503, %474 : vector<2x8x128xi1>, vector<2x8x128xf32>
    %cst_144 = arith.constant dense<0x7F800000> : vector<2x8xf32>
    %505 = vector.multi_reduction <minimumf>, %504, %cst_144 [2] : vector<2x8x128xf32> to vector<2x8xf32>
    %506 = vector.shape_cast %505 : vector<2x8xf32> to vector<2x8x1xf32>
    %507 = vector.broadcast %506 : vector<2x8x1xf32> to vector<2x8x128xf32>
    %508 = arith.cmpf oeq, %504, %507 : vector<2x8x128xf32>
    %509 = vector.shape_cast %12 : vector<2x128xi32> to vector<2x1x128xi32>
    %c128_i32_145 = arith.constant 128 : i32
    %510 = vector.shape_cast %509 : vector<2x1x128xi32> to vector<2x1x128xi32>
    %511 = vector.broadcast %510 : vector<2x1x128xi32> to vector<2x8x128xi32>
    %512 = vector.broadcast %c128_i32_145 : i32 to vector<2x8x128xi32>
    %513 = arith.select %508, %511, %512 : vector<2x8x128xi1>, vector<2x8x128xi32>
    %cst_146 = arith.constant dense<2147483647> : vector<2x8xi32>
    %514 = vector.multi_reduction <minsi>, %513, %cst_146 [2] : vector<2x8x128xi32> to vector<2x8xi32>
    %515 = vector.shape_cast %514 : vector<2x8xi32> to vector<2x8x1xi32>
    %516 = vector.shape_cast %12 : vector<2x128xi32> to vector<2x1x128xi32>
    %517 = vector.broadcast %516 : vector<2x1x128xi32> to vector<2x8x128xi32>
    %518 = vector.broadcast %515 : vector<2x8x1xi32> to vector<2x8x128xi32>
    %519 = arith.cmpi eq, %517, %518 : vector<2x8x128xi32>
    %520 = vector.shape_cast %519 : vector<2x8x128xi1> to vector<1x2x8x128xi1>
    %521 = vector.shape_cast %0 : vector<3x2x128xf32> to vector<3x2x1x128xf32>
    %cst_147 = arith.constant 0.000000e+00 : f32
    %522 = vector.shape_cast %520 : vector<1x2x8x128xi1> to vector<1x2x8x128xi1>
    %523 = vector.broadcast %522 : vector<1x2x8x128xi1> to vector<3x2x8x128xi1>
    %524 = vector.shape_cast %521 : vector<3x2x1x128xf32> to vector<3x2x1x128xf32>
    %525 = vector.broadcast %524 : vector<3x2x1x128xf32> to vector<3x2x8x128xf32>
    %526 = vector.broadcast %cst_147 : f32 to vector<3x2x8x128xf32>
    %527 = arith.select %523, %525, %526 : vector<3x2x8x128xi1>, vector<3x2x8x128xf32>
    %cst_148 = arith.constant dense<0.000000e+00> : vector<3x2x8xf32>
    %528 = vector.multi_reduction <add>, %527, %cst_148 [3] : vector<3x2x8x128xf32> to vector<3x2x8xf32>
    %529 = arith.subf %528, %18#2 : vector<3x2x8xf32>
    %c0_149 = arith.constant 0 : index
    %c15 = arith.constant 15 : index
    %c0_150 = arith.constant 0 : index
    %c0_151 = arith.constant 0 : index
    %530 = vector.load %arg2[%c0_149, %c15, %c0_150, %c0_151] : memref<3x16x2x8xf32, #tpu.memory_space<vmem>>, vector<3x1x2x8xf32>
    %531 = vector.shape_cast %530 : vector<3x1x2x8xf32> to vector<3x2x8xf32>
    %532 = vector.shape_cast %529 : vector<3x2x8xf32> to vector<3x1x2x8xf32>
    tpu.vector_store %arg2[%c0_149, %c15, %c0_150, %c0_151], %532 {strides = array<i32>} : memref<3x16x2x8xf32, #tpu.memory_space<vmem>>, vector<3x1x2x8xf32>,
    return
  }
  func.func @transform_0(%arg0: i32) -> (i32, i32, i32) {
    %c0_i32 = arith.constant 0 : i32
    %c0_i32_0 = arith.constant 0 : i32
    %c0_i32_1 = arith.constant 0 : i32
    return %c0_i32, %arg0, %c0_i32_0 : i32, i32, i32
  }
  func.func @transform_1(%arg0: i32) -> (i32, i32, i32, i32) {
    %c0_i32 = arith.constant 0 : i32
    %c0_i32_0 = arith.constant 0 : i32
    %c0_i32_1 = arith.constant 0 : i32
    %c0_i32_2 = arith.constant 0 : i32
    return %c0_i32, %c0_i32_0, %arg0, %c0_i32_1 : i32, i32, i32, i32
  }
  func.func @transform_2(%arg0: i32) -> (i32, i32, i32) {
    %c0_i32 = arith.constant 0 : i32
    %c0_i32_0 = arith.constant 0 : i32
    %c0_i32_1 = arith.constant 0 : i32
    return %c0_i32, %arg0, %c0_i32_0 : i32, i32, i32
  }
}

</mosaic_0001>

<bundles_post_ra>
// kernel: tpu_custom_call.1
= control target key start
LH: loop header
LB: loop body
LE: loop exit
PB: predicated region body
PF: predicated region fallthrough
CT: control target
= control target key end

     0   :  { %8 = vsyncpa [#allocation3], 0  ;;  %s4188_s0 = inlined_call_operand.hbm [shape: f32[3,2,128], index: 0, kind: input, shape index: {}]   ;;  %s4189_s1 = inlined_call_operand.vmem [shape: f32[3,16,2,8], index: 1, kind: output, shape index: {0}]   ;;  %s4190_s2 = inlined_call_operand.hbm [shape: f32[3,2,8], index: 2, kind: output, shape index: {1}]  }
   0x1   :  { %9 = vsyncpa [#allocation4], 0  ;;  %s2631_s9 = smov [#allocation2]  }
   0x2   :  { %s15_s10 = sshll.u32 %s2631_s9, 4  ;;  %s16_s10 = int_to_ptr.vmem [resolvable:$true] %s15_s10 }
   0x3   :  { %s2547_s11 = scalar_lea.vmem %s16_s10, 96  ;;  %p2552_p1 = scmp.lt.s32.totalorder %s16_s10, %s16_s10 }
   0x4   :  { %p2548_p0 = scmp.ne.s32.totalorder %s16_s10, %s2547_s11  ;;  %p2553_p2 = scmp.lt.s32.totalorder %s2547_s11, %s2547_s11 }
   0x6   :  { %p2554_p3 = por %p2553_p2, %p2552_p1 }
   0x8   :  { %p2555_p4 = pnand %p2554_p3, %p2548_p0 }
   0xa   :  { %2558 = shalt.err (!%p2555_p4)
}
   0xb   :  { %s2632_s12 = smov 32   ;;  %s2633_s13 = smov 2  }
   0xc   :  { %21 = dma.hbm_to_vmem [thread:$0]  %s4188_s0, 96, %s16_s10, [#allocation3], %s2632_s12, %s2632_s12, %s2633_s13  }
   0xd   :  { %2603 = dma.done.wait [#allocation3], 96  }
   0xe   :  { %2604 = vsyncadd [#allocation3], 4294967200  ;;  %v33_v0 = vlaneseq  ;;  %v2661_v2 = vld [vmem:[#allocation2] sm:$0x3]  ;;  %v2663_v3 = vld [vmem:[#allocation2 + $0x2] sm:$0x3] }
   0xf   :  { %v2665_v4 = vld [vmem:[#allocation2 + $0x4] sm:$0x3]  ;;  %v28_v5 = vmul.f32 %v2661_v2, %v2661_v2  ;;  %v29_v6 = vmul.f32 %v2663_v3, %v2663_v3  ;;  %v2675_v10 = vmov 0.0   ;;  %v2677_v11 = vmov 0.0   ;;  %s2685_s0 = smov 0  }
  0x10   :  { %v2659_v1 = vand.u32 127, %v33_v0  ;;  %v31_v7 = vmul.f32 %v2665_v4, %v2665_v4  ;;  %v2679_v12 = vmov 0.0   ;;  %v2681_v13 = vmov 1e+10  }
  0x11   :  { %v30_v8 = vadd.f32 %v29_v6, %v28_v5  ;;  %v2683_v14 = vmov 0  }
  0x13   :  { %v2673_v9 = vadd.f32 %v31_v7, %v30_v8 }
  0x14 LB: > { %vm52_vm0 = vcmask 1041408   ;;  %vm46_vm1 = vcmp.eq.s32.totalorder %v2659_v1, %v2625_v14  ;;  %v62_v21 = vstv %s2629_s0  ;;  %s40_s0 = sadd.s32 1, %s2629_s0   ;;  %s2629_s0 = sphi %s2685_s0, %s40_s0   ;;  %v2625_v14 = vphi %v2683_v14, %v97_v14   ;;  %v2621_v13 = vphi %v2681_v13, %v77_v13   ;;  %v2617_v12 = vphi %v2679_v12, %v4213_v12   ;;  %v2613_v11 = vphi %v2677_v11, %v4212_v11   ;;  %v2609_v10 = vphi %v2675_v10, %v4211_v10  }
  0x15   : > { %v49_v15 = vsel %vm46_vm1, %v2661_v2, 0.0  ;;  %v50_v16 = vsel %vm46_vm1, %v2663_v3, 0.0  ;;  %v51_v17 = vsel %vm46_vm1, %v2665_v4, 0.0  ;;  %vm63_vm2 = vcmp.eq.s32.totalorder %v2659_v1, %v62_v21  ;;  %p37_p5 = scmp.ge.s32.totalorder %s40_s0, 8  }
  0x16   : > { %v53_v18 = vsel %vm52_vm0, %v49_v15, 0.0  ;;  %v59_v19 = vsel %vm52_vm0, %v51_v17, 0.0  ;;  %v56_v20 = vsel %vm52_vm0, %v50_v16, 0.0  ;;  %v2733_v50 = vshrl.u32 (%p37_p5), %v33_v0, 7  ;;  %s2636_s10 = smov (%p37_p5), [#allocation5]  }
  0x17   : > { %54 = vadd.xlane.f32.xlu0 %v53_v18  ;;  %60 = vadd.xlane.f32.xlu1 %v59_v19  ;;  %v2634_v51 = vmov (%p37_p5), 1966171168   ;;  %s2404_s11 = sshll.u32 (%p37_p5), %s2636_s10, 4  ;;  %s2405_s11 = int_to_ptr.vmem [resolvable:$true] %s2404_s11 }
  0x18   :  { %v156_v52 = vunpack.c.l.s4 (%p37_p5), %v2634_v51  ;;  %v2736_v53 = vsub.s32 (%p37_p5), 0, %v2733_v50  ;;  %v111_v54 = vsub.s32 (%p37_p5), 1, %v2733_v50  ;;  %s2559_s14 = scalar_lea.vmem (%p37_p5), %s2405_s11, 96  ;;  %p2564_p7 = scmp.lt.s32.totalorder (%p37_p5), %s2405_s11, %s2405_s11 }
  0x19   :  { %p2560_p6 = scmp.ne.s32.totalorder (%p37_p5), %s2405_s11, %s2559_s14  ;;  %p2565_p8 = scmp.lt.s32.totalorder (%p37_p5), %s2559_s14, %s2559_s14 }
  0x1a   :  { %v157_v55 = vunpack.c.0.s8 (%p37_p5), %v156_v52 }
  0x1b   : > { %57 = vadd.xlane.f32.xlu0 %v56_v20  ;;  %p2566_p9 = por (%p37_p5), %p2565_p8, %p2564_p7 }
  0x1c   :  { %v160_v58 = vsub.s32 (%p37_p5), %v157_v55, %v2733_v50 }
  0x1d   :  { %p2567_p10 = pnand (%p37_p5), %p2566_p9, %p2560_p6 }
  0x1e   :  { %v314_v61 = vrot.slane (%p37_p5), %v2659_v1, %v160_v58  ;;  %v231_v62 = vrot.slane (%p37_p5), %v2663_v3, %v160_v58  ;;  %v196_v63 = vrot.slane (%p37_p5), %v2661_v2, %v160_v58  ;;  %v268_v0 = vrot.slane (%p37_p5), %v2665_v4, %v160_v58 }
  0x1f   :  { %v161_v7 = vrot.slane (%p37_p5), %v2673_v9, %v160_v58 }
  0x20   :  { %v315_v8 = vcombine.high (%p37_p5), %v314_v61, %v314_v61  ;;  %v276_v19 = vrot.slane (%p37_p5), %v268_v0, %v160_v58 }
  0x21   :  { %v162_v21 = vcombine.high (%p37_p5), %v161_v7, %v161_v7 }
  0xa0   : > { %v55_v22 = vpop.xlane.xlu0 %54  ;;  %v61_v23 = vpop.xlane.xlu1 %60 }
  0xa1   : > { %v2704_v12 = vsel %vm63_vm2, %v55_v22, %v2617_v12   ;;  %v2706_v10 = vsel %vm63_vm2, %v61_v23, %v2609_v10   ;;  %v69_v26 = vsub.f32 %v2661_v2, %v55_v22  ;;  %v71_v27 = vsub.f32 %v2665_v4, %v61_v23 }
  0xa2   : > { %v4208_v24 = vmov %v2704_v12  ;;  %v4209_v25 = vmov %v2706_v10  ;;  %v232_v2 = vcombine.high (%p37_p5), %v231_v62, %v231_v62  ;;  %v269_v4 = vcombine.high (%p37_p5), %v268_v0, %v268_v0 }
  0xa3   : > { %v72_v31 = vmul.f32 %v69_v26, %v69_v26  ;;  %v75_v33 = vmul.f32 %v71_v27, %v71_v27  ;;  %v4211_v10 = vmov %v4209_v25  ;;  %v4213_v12 = vmov %v4208_v24 }
  0xa4   : > { %v58_v28 = vpop.xlane.xlu0 %57  ;;  %v2745_v57 = vrot.slane (%p37_p5), %v4208_v24, %v2736_v53  ;;  %v2754_v60 = vrot.slane (%p37_p5), %v4208_v24, %v111_v54  ;;  %v2761_v5 = vrot.slane (%p37_p5), %v4209_v25, %v111_v54  ;;  %v2765_v6 = vrot.slane (%p37_p5), %v4209_v25, %v2736_v53 }
  0xa5   : > { %v2710_v11 = vsel %vm63_vm2, %v58_v28, %v2613_v11   ;;  %v70_v30 = vsub.f32 %v2663_v3, %v58_v28  ;;  %v322_v10 = vrot.slane (%p37_p5), %v314_v61, %v160_v58  ;;  %v204_v12 = vrot.slane (%p37_p5), %v196_v63, %v160_v58 }
  0xa6   : > { %v4210_v29 = vmov %v2710_v11  ;;  %v197_v3 = vcombine.high (%p37_p5), %v196_v63, %v196_v63  ;;  %v246_v16 = vrot.slane (%p37_p5), %v232_v2, %v160_v58  ;;  %v283_v18 = vrot.slane (%p37_p5), %v269_v4, %v160_v58 }
  0xa7   : > { %v73_v32 = vmul.f32 %v70_v30, %v70_v30  ;;  %v4212_v11 = vmov %v4210_v29  ;;  %v2741_v56 = vrot.slane (%p37_p5), %v4210_v29, %v2736_v53  ;;  %v2751_v59 = vrot.slane (%p37_p5), %v4210_v29, %v111_v54 }
  0xa8   :  { %v239_v11 = vrot.slane (%p37_p5), %v231_v62, %v160_v58  ;;  %v2777_v9 = vrot.slane (%p37_p5), %v204_v12, %v2736_v53  ;;  %v211_v17 = vrot.slane (%p37_p5), %v197_v3, %v160_v58  ;;  %v169_v22 = vrot.slane (%p37_p5), %v161_v7, %v160_v58 }
  0xa9   : > { %v74_v34 = vadd.f32 %v73_v32, %v72_v31  ;;  %v2785_v23 = vrot.slane (%p37_p5), %v246_v16, %v2736_v53  ;;  %v2791_v27 = vrot.slane (%p37_p5), %v283_v18, %v2736_v53  ;;  %v2794_v28 = vrot.slane (%p37_p5), %v276_v19, %v2736_v53 }
  0xaa   :  { %v2774_v15 = vrot.slane (%p37_p5), %v239_v11, %v2736_v53  ;;  %v2788_v26 = vrot.slane (%p37_p5), %v211_v17, %v2736_v53  ;;  %v176_v30 = vrot.slane (%p37_p5), %v162_v21, %v160_v58  ;;  %v180_v31 = vrot.slane (%p37_p5), %v169_v22, %v2736_v53 }
  0xab   : > { %v76_v35 = vadd.f32 %v75_v33, %v74_v34  ;;  %4214 = vst [vmem:[#allocation8_spill] sm:$0xff] (%p37_p5), %v2791_v27 }
  0xac   :  { %v184_v32 = vrot.slane (%p37_p5), %v176_v30, %v2736_v53 }
  0xad   : > { %v77_v13 = vmin.f32 %v2621_v13, %v76_v35  }
  0xaf   : > { %v78_v36 = vsel %vm52_vm0, %v77_v13, -inf }
  0xb0   : > { %79 = vmax.xlane.f32.xlu1 %v78_v36 }
 0x139   : > { %v80_v37 = vpop.xlane.xlu1 %79 }
 0x13a   : > { %vm81_vm3 = vcmp.eq.f32.partialorder %v77_v13, %v80_v37  ;;  %v329_v13 = vrot.slane (%p37_p5), %v315_v8, %v160_v58 }
 0x13b   : > { %v82_v38 = vsel %vm81_vm3, %v2659_v1, 128 }
 0x13c   : > { %v83_v39 = vsel %vm52_vm0, %v82_v38, 2147483647  ;;  %v2780_v20 = vrot.slane (%p37_p5), %v329_v13, %v2736_v53 }
 0x13d   : > { %v85_v40 = vshra.s32 %v83_v39, 16  ;;  %v84_v42 = vand.u32 65535, %v83_v39 }
 0x13f   : > { %v87_v41 = vcvt.s32.f32 %v85_v40  ;;  %v86_v44 = vcvt.s32.f32 %v84_v42 }
 0x141   : > { %88 = vmin.xlane.f32.xlu0 %v87_v41 }
 0x157   :  { %107 = vbcast.lane.b32.xlu0 (%p37_p5), %v2745_v57, 256 }
 0x15b   :  { %114 = vbcast.lane.b32.xlu0 (%p37_p5), %v2754_v60, 256 }
 0x15f   :  { %135 = vbcast.lane.b32.xlu0 (%p37_p5), %v2765_v6, 256 }
 0x1ca   : > { %v89_v43 = vpop.xlane.xlu0 %88 }
 0x1cb   : > { %vm90_vm4 = vcmp.eq.f32.partialorder %v87_v41, %v89_v43  ;;  %v95_v46 = vcvt.f32.s32 %v89_v43 }
 0x1cc   : > { %v91_v45 = vsel %vm90_vm4, %v86_v44, inf }
 0x1cd   : > { %92 = vmin.xlane.f32.xlu1 %v91_v45  ;;  %v96_v48 = vshll.u32 %v95_v46, 16 }
 0x1ce   :  { %v108_v34 = vpop.permute.xlu0 (%p37_p5), %107 }
 0x1cf   :  { %v144_v37 = vmul.f32 (%p37_p5), %v108_v34, %v108_v34  ;;  %v222_v38 = vmul.f32 (%p37_p5), %v2777_v9, %v108_v34 }
 0x1d2   :  { %v115_v40 = vpop.permute.xlu0 (%p37_p5), %114 }
 0x1d3   :  { %v145_v43 = vmul.f32 (%p37_p5), %v115_v40, %v115_v40  ;;  %v223_v44 = vmul.f32 (%p37_p5), %v2788_v26, %v115_v40 }
 0x1d6   :  { %v136_v51 = vpop.permute.xlu0 (%p37_p5), %135 }
 0x1d7   :  { %v150_v54 = vmul.f32 (%p37_p5), %v136_v51, %v136_v51  ;;  %v294_v55 = vmul.f32 (%p37_p5), %v2794_v28, %v136_v51 }
 0x1de   :  { %121 = vbcast.lane.b32.xlu1 (%p37_p5), %v2741_v56, 256 }
 0x1e2   :  { %128 = vbcast.lane.b32.xlu1 (%p37_p5), %v2751_v59, 256 }
 0x1e6   :  { %142 = vbcast.lane.b32.xlu1 (%p37_p5), %v2761_v5, 256 }
 0x255   :  { %39 = sbr.rel (!%p37_p5) target bundleno = 20 (0x14), region = 58 }
 0x256   : > { %v93_v47 = vpop.xlane.xlu1 %92 }
 0x257   : > { %v94_v49 = vcvt.f32.s32 %v93_v47 }
 0x259   : > { %v97_v14 = vadd.s32 %v96_v48, %v94_v49  }
 0x25a   :  { %v2771_v14 = vrot.slane %v322_v10, %v2736_v53  ;;  %v122_v33 = vpop.permute.xlu1 %121 }
 0x25b   :  { %v146_v35 = vmul.f32 %v122_v33, %v122_v33  ;;  %v257_v36 = vmul.f32 %v2774_v15, %v122_v33 }
 0x25d   :  { %v148_v45 = vadd.f32 %v146_v35, %v144_v37  ;;  %v259_v46 = vadd.f32 %v257_v36, %v222_v38 }
 0x25e   :  { %v129_v39 = vpop.permute.xlu1 %128 }
 0x25f   :  { %v147_v41 = vmul.f32 %v129_v39, %v129_v39  ;;  %v258_v42 = vmul.f32 %v2785_v23, %v129_v39  ;;  %v152_v62 = vadd.f32 %v150_v54, %v148_v45  ;;  %v296_v63 = vadd.f32 %v294_v55, %v259_v46 }
 0x261   :  { %v149_v47 = vadd.f32 %v147_v41, %v145_v43  ;;  %v260_v48 = vadd.f32 %v258_v42, %v223_v44  ;;  %v187_v8 = vadd.f32 %v180_v31, %v152_v62  ;;  %v298_v10 = vmul.f32 2.0, %v296_v63 }
 0x262   :  { %v143_v49 = vpop.permute.xlu1 %142 }
 0x263   :  { %v151_v52 = vmul.f32 %v143_v49, %v143_v49  ;;  %v295_v53 = vmul.f32 %v2791_v27, %v143_v49  ;;  %v300_v12 = vsub.f32 %v187_v8, %v298_v10 }
 0x265   :  { %v153_v58 = vadd.f32 %v151_v52, %v149_v47  ;;  %v297_v61 = vadd.f32 %v295_v53, %v260_v48  ;;  %302 = vmin.xlane.f32.xlu0 %v300_v12 }
 0x267   :  { %v188_v0 = vadd.f32 %v184_v32, %v153_v58  ;;  %v299_v7 = vmul.f32 2.0, %v297_v61 }
 0x269   :  { %v301_v11 = vsub.f32 %v188_v0, %v299_v7 }
 0x26b   :  { %304 = vmin.xlane.f32.xlu1 %v301_v11 }
 0x2ee   :  { %v303_v3 = vpop.xlane.xlu0 %302 }
 0x2ef   :  { %vm306_vm6 = vcmp.eq.f32.partialorder %v300_v12, %v303_v3 }
 0x2f0   :  { %v338_v13 = vsel %vm306_vm6, %v2771_v14, 128 }
 0x2f1   :  { %v341_v16 = vshra.s32 %v338_v13, 16  ;;  %v340_v21 = vand.u32 65535, %v338_v13 }
 0x2f3   :  { %v343_v17 = vcvt.s32.f32 %v341_v16  ;;  %v342_v30 = vcvt.s32.f32 %v340_v21 }
 0x2f4   :  { %v305_v2 = vpop.xlane.xlu1 %304 }
 0x2f5   :  { %vm307_vm5 = vcmp.eq.f32.partialorder %v301_v11, %v305_v2  ;;  %344 = vmin.xlane.f32.xlu0 %v343_v17 }
 0x2f6   :  { %v339_v4 = vsel %vm307_vm5, %v2780_v20, 128 }
 0x2f7   :  { %v355_v18 = vshra.s32 %v339_v4, 16  ;;  %v354_v31 = vand.u32 65535, %v339_v4 }
 0x2f9   :  { %v357_v19 = vcvt.s32.f32 %v355_v18  ;;  %v356_v34 = vcvt.s32.f32 %v354_v31 }
 0x2fb   :  { %358 = vmin.xlane.f32.xlu0 %v357_v19 }
 0x37e   :  { %v345_v22 = vpop.xlane.xlu0 %344 }
 0x37f   :  { %vm346_vm7 = vcmp.eq.f32.partialorder %v343_v17, %v345_v22  ;;  %v351_v36 = vcvt.f32.s32 %v345_v22 }
 0x380   :  { %v347_v32 = vsel %vm346_vm7, %v342_v30, inf }
 0x381   :  { %348 = vmin.xlane.f32.xlu1 %v347_v32  ;;  %v352_v38 = vshll.u32 %v351_v36, 16 }
 0x384   :  { %v359_v33 = vpop.xlane.xlu0 %358 }
 0x385   :  { %vm360_vm8 = vcmp.eq.f32.partialorder %v357_v19, %v359_v33  ;;  %v365_v39 = vcvt.f32.s32 %v359_v33 }
 0x386   :  { %v361_v35 = vsel %vm360_vm8, %v356_v34, inf }
 0x387   :  { %362 = vmin.xlane.f32.xlu0 %v361_v35  ;;  %v366_v43 = vshll.u32 %v365_v39, 16 }
 0x40a   :  { %v349_v37 = vpop.xlane.xlu1 %348 }
 0x40b   :  { %v350_v40 = vcvt.f32.s32 %v349_v37 }
 0x40d   :  { %v2806_v41 = vadd.s32 %v352_v38, %v350_v40 }
 0x40f   :  { %vm368_vm9 = vcmp.eq.s32.totalorder %v2771_v14, %v2806_v41 }
 0x410   :  { %v363_v42 = vpop.xlane.xlu0 %362  ;;  %v507_v45 = vsel %vm368_vm9, 1e+30, %v300_v12 }
 0x411   :  { %v364_v44 = vcvt.f32.s32 %v363_v42  ;;  %509 = vmin.xlane.f32.xlu1 %v507_v45 }
 0x413   :  { %v2813_v46 = vadd.s32 %v366_v43, %v364_v44 }
 0x415   :  { %vm369_vm10 = vcmp.eq.s32.totalorder %v2780_v20, %v2813_v46 }
 0x416   :  { %v508_v47 = vsel %vm369_vm10, 1e+30, %v301_v11 }
 0x417   :  { %511 = vmin.xlane.f32.xlu0 %v508_v47 }
 0x49a   :  { %v510_v48 = vpop.xlane.xlu1 %509 }
 0x49b   :  { %vm513_vm11 = vcmp.eq.f32.partialorder %v507_v45, %v510_v48 }
 0x49c   :  { %v515_v49 = vsel %vm513_vm11, %v2771_v14, 128 }
 0x49d   :  { %v518_v51 = vshra.s32 %v515_v49, 16  ;;  %v517_v61 = vand.u32 65535, %v515_v49 }
 0x49f   :  { %v520_v53 = vcvt.s32.f32 %v518_v51  ;;  %v519_v63 = vcvt.s32.f32 %v517_v61 }
 0x4a0   :  { %v512_v52 = vpop.xlane.xlu0 %511 }
 0x4a1   :  { %vm514_vm12 = vcmp.eq.f32.partialorder %v508_v47, %v512_v52  ;;  %521 = vmin.xlane.f32.xlu1 %v520_v53 }
 0x4a2   :  { %v516_v54 = vsel %vm514_vm12, %v2780_v20, 128 }
 0x4a3   :  { %v532_v55 = vshra.s32 %v516_v54, 16  ;;  %v531_v0 = vand.u32 65535, %v516_v54 }
 0x4a5   :  { %v534_v58 = vcvt.s32.f32 %v532_v55  ;;  %v533_v10 = vcvt.s32.f32 %v531_v0 }
 0x4a7   :  { %535 = vmin.xlane.f32.xlu0 %v534_v58 }
 0x52a   :  { %v522_v62 = vpop.xlane.xlu1 %521 }
 0x52b   :  { %vm523_vm13 = vcmp.eq.f32.partialorder %v520_v53, %v522_v62  ;;  %v528_v12 = vcvt.f32.s32 %v522_v62 }
 0x52c   :  { %v524_v7 = vsel %vm523_vm13, %v519_v63, inf }
 0x52d   :  { %525 = vmin.xlane.f32.xlu1 %v524_v7  ;;  %v529_v3 = vshll.u32 %v528_v12, 16 }
 0x530   :  { %v536_v8 = vpop.xlane.xlu0 %535 }
 0x531   :  { %vm537_vm14 = vcmp.eq.f32.partialorder %v534_v58, %v536_v8  ;;  %v542_v4 = vcvt.f32.s32 %v536_v8 }
 0x532   :  { %v538_v11 = vsel %vm537_vm14, %v533_v10, inf }
 0x533   :  { %539 = vmin.xlane.f32.xlu0 %v538_v11  ;;  %v543_v18 = vshll.u32 %v542_v4, 16 }
 0x5b6   :  { %v526_v2 = vpop.xlane.xlu1 %525 }
 0x5b7   :  { %v527_v13 = vcvt.f32.s32 %v526_v2 }
 0x5b9   :  { %v2822_v16 = vadd.s32 %v529_v3, %v527_v13 }
 0x5bb   :  { %vm545_vm15 = vcmp.eq.s32.totalorder %v2771_v14, %v2822_v16 }
 0x5bc   :  { %v540_v17 = vpop.xlane.xlu0 %539  ;;  %v633_v21 = vsel %vm545_vm15, 1e+30, %v507_v45  ;;  %v551_v41 = vsel %vm545_vm15, %v2777_v9, 0.0 }
 0x5bd   :  { %v541_v19 = vcvt.f32.s32 %v540_v17  ;;  %635 = vmin.xlane.f32.xlu1 %v633_v21 }
 0x5bf   :  { %v2829_v22 = vadd.s32 %v543_v18, %v541_v19 }
 0x5c1   :  { %vm546_vm0 = vcmp.eq.s32.totalorder %v2780_v20, %v2829_v22 }
 0x5c2   :  { %v634_v30 = vsel %vm546_vm0, 1e+30, %v508_v47  ;;  %v552_v46 = vsel %vm546_vm0, %v2788_v26, 0.0 }
 0x5c3   :  { %637 = vmin.xlane.f32.xlu0 %v634_v30 }
 0x646   :  { %v636_v31 = vpop.xlane.xlu1 %635 }
 0x647   :  { %vm639_vm1 = vcmp.eq.f32.partialorder %v633_v21, %v636_v31 }
 0x648   :  { %v641_v32 = vsel %vm639_vm1, %v2771_v14, 128 }
 0x649   :  { %v644_v33 = vshra.s32 %v641_v32, 16  ;;  %v643_v39 = vand.u32 65535, %v641_v32 }
 0x64b   :  { %v646_v35 = vcvt.s32.f32 %v644_v33  ;;  %v645_v42 = vcvt.s32.f32 %v643_v39 }
 0x64c   :  { %v638_v34 = vpop.xlane.xlu0 %637 }
 0x64d   :  { %vm640_vm2 = vcmp.eq.f32.partialorder %v634_v30, %v638_v34  ;;  %647 = vmin.xlane.f32.xlu1 %v646_v35 }
 0x64e   :  { %v642_v36 = vsel %vm640_vm2, %v2780_v20, 128 }
 0x64f   :  { %v658_v37 = vshra.s32 %v642_v36, 16  ;;  %v657_v43 = vand.u32 65535, %v642_v36 }
 0x651   :  { %v660_v38 = vcvt.s32.f32 %v658_v37  ;;  %v659_v47 = vcvt.s32.f32 %v657_v43 }
 0x653   :  { %661 = vmin.xlane.f32.xlu0 %v660_v38 }
 0x6d6   :  { %v648_v40 = vpop.xlane.xlu1 %647 }
 0x6d7   :  { %vm649_vm3 = vcmp.eq.f32.partialorder %v646_v35, %v648_v40  ;;  %v654_v49 = vcvt.f32.s32 %v648_v40 }
 0x6d8   :  { %v650_v44 = vsel %vm649_vm3, %v645_v42, inf }
 0x6d9   :  { %651 = vmin.xlane.f32.xlu1 %v650_v44  ;;  %v655_v52 = vshll.u32 %v654_v49, 16 }
 0x6dc   :  { %v662_v45 = vpop.xlane.xlu0 %661 }
 0x6dd   :  { %vm663_vm4 = vcmp.eq.f32.partialorder %v660_v38, %v662_v45  ;;  %v668_v53 = vcvt.f32.s32 %v662_v45 }
 0x6de   :  { %v664_v48 = vsel %vm663_vm4, %v659_v47, inf }
 0x6df   :  { %665 = vmin.xlane.f32.xlu0 %v664_v48  ;;  %v669_v61 = vshll.u32 %v668_v53, 16 }
 0x762   :  { %v652_v51 = vpop.xlane.xlu1 %651 }
 0x763   :  { %v653_v54 = vcvt.f32.s32 %v652_v51 }
 0x765   :  { %v2838_v55 = vadd.s32 %v655_v52, %v653_v54 }
 0x767   :  { %vm671_vm5 = vcmp.eq.s32.totalorder %v2771_v14, %v2838_v55 }
 0x768   :  { %v666_v58 = vpop.xlane.xlu0 %665  ;;  %v759_v63 = vsel %vm671_vm5, 1e+30, %v633_v21  ;;  %v679_v16 = vsel %vm671_vm5, %v2774_v15, 0.0 }
 0x769   :  { %v667_v62 = vcvt.f32.s32 %v666_v58  ;;  %761 = vmin.xlane.f32.xlu1 %v759_v63 }
 0x76b   :  { %v2845_v0 = vadd.s32 %v669_v61, %v667_v62 }
 0x76d   :  { %vm672_vm6 = vcmp.eq.s32.totalorder %v2780_v20, %v2845_v0 }
 0x76e   :  { %v760_v7 = vsel %vm672_vm6, 1e+30, %v634_v30  ;;  %v682_v22 = vsel %vm672_vm6, %v2791_v27, 0.0 }
 0x76f   :  { %763 = vmin.xlane.f32.xlu0 %v760_v7 }
 0x7f2   :  { %v762_v8 = vpop.xlane.xlu1 %761 }
 0x7f3   :  { %vm765_vm7 = vcmp.eq.f32.partialorder %v759_v63, %v762_v8 }
 0x7f4   :  { %v767_v10 = vsel %vm765_vm7, %v2771_v14, 128 }
 0x7f5   :  { %v770_v11 = vshra.s32 %v767_v10, 16  ;;  %v769_v17 = vand.u32 65535, %v767_v10 }
 0x7f7   :  { %v772_v2 = vcvt.s32.f32 %v770_v11  ;;  %v771_v19 = vcvt.s32.f32 %v769_v17 }
 0x7f8   :  { %v764_v12 = vpop.xlane.xlu0 %763 }
 0x7f9   :  { %vm766_vm8 = vcmp.eq.f32.partialorder %v760_v7, %v764_v12  ;;  %773 = vmin.xlane.f32.xlu1 %v772_v2 }
 0x7fa   :  { %v768_v3 = vsel %vm766_vm8, %v2780_v20, 128 }
 0x7fb   :  { %v784_v4 = vshra.s32 %v768_v3, 16  ;;  %v783_v21 = vand.u32 65535, %v768_v3 }
 0x7fd   :  { %v786_v13 = vcvt.s32.f32 %v784_v4  ;;  %v785_v32 = vcvt.s32.f32 %v783_v21 }
 0x7ff   :  { %787 = vmin.xlane.f32.xlu0 %v786_v13 }
 0x882   :  { %v774_v18 = vpop.xlane.xlu1 %773 }
 0x883   :  { %vm775_vm11 = vcmp.eq.f32.partialorder %v772_v2, %v774_v18  ;;  %v780_v34 = vcvt.f32.s32 %v774_v18 }
 0x884   :  { %v776_v30 = vsel %vm775_vm11, %v771_v19, inf }
 0x885   :  { %777 = vmin.xlane.f32.xlu1 %v776_v30  ;;  %v781_v36 = vshll.u32 %v780_v34, 16 }
 0x888   :  { %v788_v31 = vpop.xlane.xlu0 %787 }
 0x889   :  { %vm789_vm12 = vcmp.eq.f32.partialorder %v786_v13, %v788_v31  ;;  %v794_v37 = vcvt.f32.s32 %v788_v31 }
 0x88a   :  { %v790_v33 = vsel %vm789_vm12, %v785_v32, inf }
 0x88b   :  { %791 = vmin.xlane.f32.xlu0 %v790_v33  ;;  %v795_v42 = vshll.u32 %v794_v37, 16 }
 0x90e   :  { %v778_v35 = vpop.xlane.xlu1 %777 }
 0x90f   :  { %v779_v38 = vcvt.f32.s32 %v778_v35 }
 0x911   :  { %v2854_v39 = vadd.s32 %v781_v36, %v779_v38 }
 0x913   :  { %vm797_vm13 = vcmp.eq.s32.totalorder %v2771_v14, %v2854_v39 }
 0x914   :  { %v792_v40 = vpop.xlane.xlu0 %791  ;;  %v885_v44 = vsel %vm797_vm13, 1e+30, %v759_v63  ;;  %v805_v55 = vsel %vm797_vm13, %v2774_v15, 0.0 }
 0x915   :  { %v793_v43 = vcvt.f32.s32 %v792_v40  ;;  %887 = vmin.xlane.f32.xlu1 %v885_v44 }
 0x917   :  { %v2861_v45 = vadd.s32 %v795_v42, %v793_v43 }
 0x919   :  { %vm798_vm14 = vcmp.eq.s32.totalorder %v2780_v20, %v2861_v45 }
 0x91a   :  { %v886_v47 = vsel %vm798_vm14, 1e+30, %v760_v7  ;;  %v808_v0 = vsel %vm798_vm14, %v2791_v27, 0.0 }
 0x91b   :  { %889 = vmin.xlane.f32.xlu0 %v886_v47 }
 0x99e   :  { %v888_v48 = vpop.xlane.xlu1 %887 }
 0x99f   :  { %vm891_vm1 = vcmp.eq.f32.partialorder %v885_v44, %v888_v48 }
 0x9a0   :  { %v893_v49 = vsel %vm891_vm1, %v2771_v14, 128 }
 0x9a1   :  { %v896_v51 = vshra.s32 %v893_v49, 16  ;;  %v895_v62 = vand.u32 65535, %v893_v49 }
 0x9a3   :  { %v898_v53 = vcvt.s32.f32 %v896_v51  ;;  %v897_v8 = vcvt.s32.f32 %v895_v62 }
 0x9a4   :  { %v890_v52 = vpop.xlane.xlu0 %889 }
 0x9a5   :  { %vm892_vm2 = vcmp.eq.f32.partialorder %v886_v47, %v890_v52  ;;  %899 = vmin.xlane.f32.xlu1 %v898_v53 }
 0x9a6   :  { %v894_v54 = vsel %vm892_vm2, %v2780_v20, 128 }
 0x9a7   :  { %v910_v58 = vshra.s32 %v894_v54, 16  ;;  %v909_v10 = vand.u32 65535, %v894_v54 }
 0x9a9   :  { %v912_v61 = vcvt.s32.f32 %v910_v58  ;;  %v911_v12 = vcvt.s32.f32 %v909_v10 }
 0x9ab   :  { %913 = vmin.xlane.f32.xlu0 %v912_v61 }
 0xa2e   :  { %v900_v63 = vpop.xlane.xlu1 %899 }
 0xa2f   :  { %vm901_vm3 = vcmp.eq.f32.partialorder %v898_v53, %v900_v63  ;;  %v906_v3 = vcvt.f32.s32 %v900_v63 }
 0xa30   :  { %v902_v7 = vsel %vm901_vm3, %v897_v8, inf }
 0xa31   :  { %903 = vmin.xlane.f32.xlu1 %v902_v7  ;;  %v907_v13 = vshll.u32 %v906_v3, 16 }
 0xa34   :  { %v914_v11 = vpop.xlane.xlu0 %913 }
 0xa35   :  { %vm915_vm4 = vcmp.eq.f32.partialorder %v912_v61, %v914_v11  ;;  %v920_v17 = vcvt.f32.s32 %v914_v11 }
 0xa36   :  { %v916_v2 = vsel %vm915_vm4, %v911_v12, inf }
 0xa37   :  { %917 = vmin.xlane.f32.xlu0 %v916_v2  ;;  %v921_v30 = vshll.u32 %v920_v17, 16 }
 0xaba   :  { %v904_v4 = vpop.xlane.xlu1 %903 }
 0xabb   :  { %v905_v18 = vcvt.f32.s32 %v904_v4 }
 0xabd   :  { %v2870_v19 = vadd.s32 %v907_v13, %v905_v18 }
 0xabf   :  { %vm923_vm7 = vcmp.eq.s32.totalorder %v2771_v14, %v2870_v19 }
 0xac0   :  { %v918_v21 = vpop.xlane.xlu0 %917  ;;  %v1011_v32 = vsel %vm923_vm7, 1e+30, %v885_v44 }
 0xac1   :  { %v919_v31 = vcvt.f32.s32 %v918_v21  ;;  %1013 = vmin.xlane.f32.xlu1 %v1011_v32 }
 0xac3   :  { %v2877_v33 = vadd.s32 %v921_v30, %v919_v31 }
 0xac5   :  { %vm924_vm8 = vcmp.eq.s32.totalorder %v2780_v20, %v2877_v33 }
 0xac6   :  { %v1012_v34 = vsel %vm924_vm8, 1e+30, %v886_v47 }
 0xac7   :  { %1015 = vmin.xlane.f32.xlu0 %v1012_v34 }
 0xb4a   :  { %v1014_v35 = vpop.xlane.xlu1 %1013 }
 0xb4b   :  { %vm1017_vm11 = vcmp.eq.f32.partialorder %v1011_v32, %v1014_v35 }
 0xb4c   :  { %v1019_v36 = vsel %vm1017_vm11, %v2771_v14, 128 }
 0xb4d   :  { %v1022_v37 = vshra.s32 %v1019_v36, 16  ;;  %v1021_v48 = vand.u32 65535, %v1019_v36 }
 0xb4f   :  { %v1024_v40 = vcvt.s32.f32 %v1022_v37  ;;  %v1023_v51 = vcvt.s32.f32 %v1021_v48 }
 0xb50   :  { %v1016_v38 = vpop.xlane.xlu0 %1015 }
 0xb51   :  { %vm1018_vm12 = vcmp.eq.f32.partialorder %v1012_v34, %v1016_v38  ;;  %1025 = vmin.xlane.f32.xlu1 %v1024_v40 }
 0xb52   :  { %v1020_v42 = vsel %vm1018_vm12, %v2780_v20, 128 }
 0xb53   :  { %v1036_v43 = vshra.s32 %v1020_v42, 16  ;;  %v1035_v52 = vand.u32 65535, %v1020_v42 }
 0xb55   :  { %v1038_v44 = vcvt.s32.f32 %v1036_v43  ;;  %v1037_v54 = vcvt.s32.f32 %v1035_v52 }
 0xb57   :  { %1039 = vmin.xlane.f32.xlu0 %v1038_v44 }
 0xbda   :  { %v1026_v49 = vpop.xlane.xlu1 %1025 }
 0xbdb   :  { %vm1027_vm1 = vcmp.eq.f32.partialorder %v1024_v40, %v1026_v49  ;;  %v1032_v61 = vcvt.f32.s32 %v1026_v49 }
 0xbdc   :  { %v1028_v47 = vsel %vm1027_vm1, %v1023_v51, inf }
 0xbdd   :  { %1029 = vmin.xlane.f32.xlu1 %v1028_v47  ;;  %v1033_v63 = vshll.u32 %v1032_v61, 16 }
 0xbe0   :  { %v1040_v53 = vpop.xlane.xlu0 %1039 }
 0xbe1   :  { %vm1041_vm2 = vcmp.eq.f32.partialorder %v1038_v44, %v1040_v53  ;;  %v1046_v8 = vcvt.f32.s32 %v1040_v53 }
 0xbe2   :  { %v1042_v58 = vsel %vm1041_vm2, %v1037_v54, inf }
 0xbe3   :  { %1043 = vmin.xlane.f32.xlu0 %v1042_v58  ;;  %v1047_v12 = vshll.u32 %v1046_v8, 16 }
 0xc66   :  { %v1030_v62 = vpop.xlane.xlu1 %1029 }
 0xc67   :  { %v1031_v10 = vcvt.f32.s32 %v1030_v62 }
 0xc69   :  { %v2886_v7 = vadd.s32 %v1033_v63, %v1031_v10 }
 0xc6b   :  { %vm1049_vm3 = vcmp.eq.s32.totalorder %v2771_v14, %v2886_v7 }
 0xc6c   :  { %v1044_v11 = vpop.xlane.xlu0 %1043  ;;  %v1137_v3 = vsel %vm1049_vm3, 1e+30, %v1011_v32  ;;  %v1057_v33 = vsel %vm1049_vm3, %v2774_v15, 0.0 }
 0xc6d   :  { %v1045_v2 = vcvt.f32.s32 %v1044_v11  ;;  %1139 = vmin.xlane.f32.xlu1 %v1137_v3 }
 0xc6f   :  { %v2893_v4 = vadd.s32 %v1047_v12, %v1045_v2 }
 0xc71   :  { %vm1050_vm4 = vcmp.eq.s32.totalorder %v2780_v20, %v2893_v4 }
 0xc72   :  { %v1138_v13 = vsel %vm1050_vm4, 1e+30, %v1012_v34 }
 0xc73   :  { %1141 = vmin.xlane.f32.xlu0 %v1138_v13 }
 0xcf6   :  { %v1140_v17 = vpop.xlane.xlu1 %1139 }
 0xcf7   :  { %vm1143_vm11 = vcmp.eq.f32.partialorder %v1137_v3, %v1140_v17 }
 0xcf8   :  { %v1145_v18 = vsel %vm1143_vm11, %v2771_v14, 128 }
 0xcf9   :  { %v1148_v21 = vshra.s32 %v1145_v18, 16  ;;  %v1147_v37 = vand.u32 65535, %v1145_v18 }
 0xcfb   :  { %v1150_v31 = vcvt.s32.f32 %v1148_v21  ;;  %v1149_v40 = vcvt.s32.f32 %v1147_v37 }
 0xcfc   :  { %v1142_v30 = vpop.xlane.xlu0 %1141 }
 0xcfd   :  { %vm1144_vm12 = vcmp.eq.f32.partialorder %v1138_v13, %v1142_v30  ;;  %1151 = vmin.xlane.f32.xlu1 %v1150_v31 }
 0xcfe   :  { %v1146_v32 = vsel %vm1144_vm12, %v2780_v20, 128 }
 0xcff   :  { %v1162_v35 = vshra.s32 %v1146_v32, 16  ;;  %v1161_v42 = vand.u32 65535, %v1146_v32 }
 0xd01   :  { %v1164_v36 = vcvt.s32.f32 %v1162_v35  ;;  %v1163_v44 = vcvt.s32.f32 %v1161_v42 }
 0xd03   :  { %1165 = vmin.xlane.f32.xlu0 %v1164_v36 }
 0xd86   :  { %v1152_v38 = vpop.xlane.xlu1 %1151 }
 0xd87   :  { %vm1153_vm1 = vcmp.eq.f32.partialorder %v1150_v31, %v1152_v38  ;;  %v1158_v49 = vcvt.f32.s32 %v1152_v38 }
 0xd88   :  { %v1154_v34 = vsel %vm1153_vm1, %v1149_v40, inf }
 0xd89   :  { %1155 = vmin.xlane.f32.xlu1 %v1154_v34  ;;  %v1159_v52 = vshll.u32 %v1158_v49, 16 }
 0xd8c   :  { %v1166_v43 = vpop.xlane.xlu0 %1165 }
 0xd8d   :  { %vm1167_vm2 = vcmp.eq.f32.partialorder %v1164_v36, %v1166_v43  ;;  %v1172_v47 = vcvt.f32.s32 %v1166_v43 }
 0xd8e   :  { %v1168_v48 = vsel %vm1167_vm2, %v1163_v44, inf }
 0xd8f   :  { %1169 = vmin.xlane.f32.xlu0 %v1168_v48  ;;  %v1173_v61 = vshll.u32 %v1172_v47, 16 }
 0xe12   :  { %v1156_v51 = vpop.xlane.xlu1 %1155 }
 0xe13   :  { %v1157_v53 = vcvt.f32.s32 %v1156_v51 }
 0xe15   :  { %v2902_v54 = vadd.s32 %v1159_v52, %v1157_v53 }
 0xe17   :  { %vm4191_vm11 = vcmp.eq.s32.totalorder %v2771_v14, %v2902_v54 }
 0xe18   :  { %v1170_v58 = vpop.xlane.xlu0 %1169  ;;  %v1263_v63 = vsel %vm4191_vm11, 1e+30, %v1137_v3 }
 0xe19   :  { %v1171_v62 = vcvt.f32.s32 %v1170_v58  ;;  %1265 = vmin.xlane.f32.xlu1 %v1263_v63 }
 0xe1b   :  { %v2909_v8 = vadd.s32 %v1173_v61, %v1171_v62 }
 0xe1d   :  { %vm4192_vm12 = vcmp.eq.s32.totalorder %v2780_v20, %v2909_v8 }
 0xe1e   :  { %v1264_v10 = vsel %vm4192_vm12, 1e+30, %v1138_v13 }
 0xe1f   :  { %1267 = vmin.xlane.f32.xlu0 %v1264_v10 }
 0xea2   :  { %v1266_v11 = vpop.xlane.xlu1 %1265 }
 0xea3   :  { %vm1269_vm1 = vcmp.eq.f32.partialorder %v1263_v63, %v1266_v11 }
 0xea4   :  { %v1271_v12 = vsel %vm1269_vm1, %v2771_v14, 128 }
 0xea5   :  { %v1274_v2 = vshra.s32 %v1271_v12, 16  ;;  %v1273_v31 = vand.u32 65535, %v1271_v12 }
 0xea7   :  { %v1276_v18 = vcvt.s32.f32 %v1274_v2  ;;  %v1275_v35 = vcvt.s32.f32 %v1273_v31 }
 0xea8   :  { %v1268_v17 = vpop.xlane.xlu0 %1267 }
 0xea9   :  { %vm1270_vm2 = vcmp.eq.f32.partialorder %v1264_v10, %v1268_v17  ;;  %1277 = vmin.xlane.f32.xlu1 %v1276_v18 }
 0xeaa   :  { %v1272_v3 = vsel %vm1270_vm2, %v2780_v20, 128 }
 0xeab   :  { %v1288_v21 = vshra.s32 %v1272_v3, 16  ;;  %v1287_v36 = vand.u32 65535, %v1272_v3 }
 0xead   :  { %v1290_v30 = vcvt.s32.f32 %v1288_v21  ;;  %v1289_v38 = vcvt.s32.f32 %v1287_v36 }
 0xeaf   :  { %1291 = vmin.xlane.f32.xlu0 %v1290_v30 }
 0xf32   :  { %v1278_v32 = vpop.xlane.xlu1 %1277 }
 0xf33   :  { %vm1279_vm11 = vcmp.eq.f32.partialorder %v1276_v18, %v1278_v32  ;;  %v1284_v42 = vcvt.f32.s32 %v1278_v32 }
 0xf34   :  { %v1280_v13 = vsel %vm1279_vm11, %v1275_v35, inf }
 0xf35   :  { %1281 = vmin.xlane.f32.xlu1 %v1280_v13  ;;  %v1285_v43 = vshll.u32 %v1284_v42, 16 }
 0xf38   :  { %v1292_v37 = vpop.xlane.xlu0 %1291 }
 0xf39   :  { %vm1293_vm1 = vcmp.eq.f32.partialorder %v1290_v30, %v1292_v37  ;;  %v1298_v44 = vcvt.f32.s32 %v1292_v37 }
 0xf3a   :  { %v1294_v40 = vsel %vm1293_vm1, %v1289_v38, inf }
 0xf3b   :  { %1295 = vmin.xlane.f32.xlu0 %v1294_v40  ;;  %v1299_v52 = vshll.u32 %v1298_v44, 16 }
 0xfbe   :  { %v1282_v34 = vpop.xlane.xlu1 %1281 }
 0xfbf   :  { %v1283_v48 = vcvt.f32.s32 %v1282_v34 }
 0xfc1   :  { %v2918_v49 = vadd.s32 %v1285_v43, %v1283_v48 }
 0xfc3   :  { %vm4193_vm2 = vcmp.eq.s32.totalorder %v2771_v14, %v2918_v49 }
 0xfc4   :  { %v1296_v51 = vpop.xlane.xlu0 %1295  ;;  %v1389_v53 = vsel %vm4193_vm2, 1e+30, %v1263_v63 }
 0xfc5   :  { %v1297_v47 = vcvt.f32.s32 %v1296_v51  ;;  %1391 = vmin.xlane.f32.xlu1 %v1389_v53 }
 0xfc7   :  { %v2925_v58 = vadd.s32 %v1299_v52, %v1297_v47 }
 0xfc9   :  { %vm4194_vm11 = vcmp.eq.s32.totalorder %v2780_v20, %v2925_v58 }
 0xfca   :  { %v1390_v61 = vsel %vm4194_vm11, 1e+30, %v1264_v10 }
 0xfcb   :  { %1393 = vmin.xlane.f32.xlu0 %v1390_v61 }
0x104e   :  { %v1392_v62 = vpop.xlane.xlu1 %1391 }
0x104f   :  { %vm1395_vm1 = vcmp.eq.f32.partialorder %v1389_v53, %v1392_v62 }
0x1050   :  { %v1397_v11 = vsel %vm1395_vm1, %v2771_v14, 128 }
0x1051   :  { %v1400_v12 = vshra.s32 %v1397_v11, 16  ;;  %v1399_v21 = vand.u32 65535, %v1397_v11 }
0x1053   :  { %v1402_v17 = vcvt.s32.f32 %v1400_v12  ;;  %v1401_v31 = vcvt.s32.f32 %v1399_v21 }
0x1054   :  { %v1394_v2 = vpop.xlane.xlu0 %1393 }
0x1055   :  { %vm1396_vm12 = vcmp.eq.f32.partialorder %v1390_v61, %v1394_v2  ;;  %1403 = vmin.xlane.f32.xlu1 %v1402_v17 }
0x1056   :  { %v1398_v63 = vsel %vm1396_vm12, %v2780_v20, 128 }
0x1057   :  { %v1414_v18 = vshra.s32 %v1398_v63, 16  ;;  %v1413_v32 = vand.u32 65535, %v1398_v63 }
0x1059   :  { %v1416_v3 = vcvt.s32.f32 %v1414_v18  ;;  %v1415_v36 = vcvt.s32.f32 %v1413_v32 }
0x105b   :  { %1417 = vmin.xlane.f32.xlu0 %v1416_v3 }
0x10de   :  { %v1404_v30 = vpop.xlane.xlu1 %1403 }
0x10df   :  { %vm1405_vm2 = vcmp.eq.f32.partialorder %v1402_v17, %v1404_v30  ;;  %v1410_v37 = vcvt.f32.s32 %v1404_v30 }
0x10e0   :  { %v1406_v10 = vsel %vm1405_vm2, %v1401_v31, inf }
0x10e1   :  { %1407 = vmin.xlane.f32.xlu1 %v1406_v10  ;;  %v1411_v40 = vshll.u32 %v1410_v37, 16 }
0x10e4   :  { %v1418_v35 = vpop.xlane.xlu0 %1417 }
0x10e5   :  { %vm1419_vm1 = vcmp.eq.f32.partialorder %v1416_v3, %v1418_v35  ;;  %v1424_v42 = vcvt.f32.s32 %v1418_v35 }
0x10e6   :  { %v1420_v13 = vsel %vm1419_vm1, %v1415_v36, inf }
0x10e7   :  { %1421 = vmin.xlane.f32.xlu0 %v1420_v13  ;;  %v1425_v48 = vshll.u32 %v1424_v42, 16 }
0x116a   :  { %v1408_v38 = vpop.xlane.xlu1 %1407 }
0x116b   :  { %v1409_v34 = vcvt.f32.s32 %v1408_v38 }
0x116d   :  { %v2934_v43 = vadd.s32 %v1411_v40, %v1409_v34 }
0x116f   :  { %vm4196_vm12 = vcmp.eq.s32.totalorder %v2771_v14, %v2934_v43 }
0x1170   :  { %v1422_v44 = vpop.xlane.xlu0 %1421  ;;  %v1515_v52 = vsel %vm4196_vm12, 1e+30, %v1389_v53 }
0x1171   :  { %v1423_v51 = vcvt.f32.s32 %v1422_v44  ;;  %1517 = vmin.xlane.f32.xlu1 %v1515_v52 }
0x1173   :  { %v2941_v47 = vadd.s32 %v1425_v48, %v1423_v51 }
0x1175   :  { %vm4195_vm2 = vcmp.eq.s32.totalorder %v2780_v20, %v2941_v47 }
0x1176   :  { %v1516_v62 = vsel %vm4195_vm2, 1e+30, %v1390_v61 }
0x1177   :  { %1519 = vmin.xlane.f32.xlu0 %v1516_v62 }
0x11fa   :  { %v1518_v11 = vpop.xlane.xlu1 %1517 }
0x11fb   :  { %vm1521_vm1 = vcmp.eq.f32.partialorder %v1515_v52, %v1518_v11 }
0x11fc   :  { %v1523_v12 = vsel %vm1521_vm1, %v2771_v14, 128 }
0x11fd   :  { %v1526_v2 = vshra.s32 %v1523_v12, 16  ;;  %v1525_v21 = vand.u32 65535, %v1523_v12 }
0x11ff   :  { %v1528_v63 = vcvt.s32.f32 %v1526_v2  ;;  %v1527_v31 = vcvt.s32.f32 %v1525_v21 }
0x1200   :  { %v1520_v17 = vpop.xlane.xlu0 %1519 }
0x1201   :  { %vm1522_vm11 = vcmp.eq.f32.partialorder %v1516_v62, %v1520_v17  ;;  %1529 = vmin.xlane.f32.xlu1 %v1528_v63 }
0x1202   :  { %v1524_v53 = vsel %vm1522_vm11, %v2780_v20, 128 }
0x1203   :  { %v1540_v18 = vshra.s32 %v1524_v53, 16  ;;  %v1539_v32 = vand.u32 65535, %v1524_v53 }
0x1205   :  { %v1542_v3 = vcvt.s32.f32 %v1540_v18  ;;  %v1541_v35 = vcvt.s32.f32 %v1539_v32 }
0x1207   :  { %1543 = vmin.xlane.f32.xlu0 %v1542_v3 }
0x128a   :  { %v1530_v30 = vpop.xlane.xlu1 %1529 }
0x128b   :  { %vm1531_vm2 = vcmp.eq.f32.partialorder %v1528_v63, %v1530_v30  ;;  %v1536_v13 = vcvt.f32.s32 %v1530_v30 }
0x128c   :  { %v1532_v61 = vsel %vm1531_vm2, %v1527_v31, inf }
0x128d   :  { %1533 = vmin.xlane.f32.xlu1 %v1532_v61  ;;  %v1537_v38 = vshll.u32 %v1536_v13, 16 }
0x1290   :  { %v1544_v10 = vpop.xlane.xlu0 %1543 }
0x1291   :  { %vm1545_vm1 = vcmp.eq.f32.partialorder %v1542_v3, %v1544_v10  ;;  %v1550_v40 = vcvt.f32.s32 %v1544_v10 }
0x1292   :  { %v1546_v36 = vsel %vm1545_vm1, %v1541_v35, inf }
0x1293   :  { %1547 = vmin.xlane.f32.xlu0 %v1546_v36  ;;  %v1551_v48 = vshll.u32 %v1550_v40, 16 }
0x1316   :  { %v1534_v37 = vpop.xlane.xlu1 %1533 }
0x1317   :  { %v1535_v42 = vcvt.f32.s32 %v1534_v37 }
0x1319   :  { %v2950_v34 = vadd.s32 %v1537_v38, %v1535_v42 }
0x131b   :  { %vm4197_vm11 = vcmp.eq.s32.totalorder %v2771_v14, %v2950_v34 }
0x131c   :  { %v1548_v44 = vpop.xlane.xlu0 %1547  ;;  %v1641_v11 = vsel %vm4197_vm11, 1e+30, %v1515_v52 }
0x131d   :  { %v1549_v51 = vcvt.f32.s32 %v1548_v44  ;;  %1643 = vmin.xlane.f32.xlu1 %v1641_v11 }
0x131f   :  { %v2957_v12 = vadd.s32 %v1551_v48, %v1549_v51 }
0x1321   :  { %vm1554_vm2 = vcmp.eq.s32.totalorder %v2780_v20, %v2957_v12 }
0x1322   :  { %v1642_v2 = vsel %vm1554_vm2, 1e+30, %v1516_v62 }
0x1323   :  { %1645 = vmin.xlane.f32.xlu0 %v1642_v2 }
0x13a6   :  { %v1644_v17 = vpop.xlane.xlu1 %1643 }
0x13a7   :  { %vm1647_vm1 = vcmp.eq.f32.partialorder %v1641_v11, %v1644_v17 }
0x13a8   :  { %v1649_v63 = vsel %vm1647_vm1, %v2771_v14, 128 }
0x13a9   :  { %v1652_v53 = vshra.s32 %v1649_v63, 16  ;;  %v1651_v31 = vand.u32 65535, %v1649_v63 }
0x13ab   :  { %v1654_v3 = vcvt.s32.f32 %v1652_v53  ;;  %v1653_v61 = vcvt.s32.f32 %v1651_v31 }
0x13ac   :  { %v1646_v18 = vpop.xlane.xlu0 %1645 }
0x13ad   :  { %vm1648_vm12 = vcmp.eq.f32.partialorder %v1642_v2, %v1646_v18  ;;  %1655 = vmin.xlane.f32.xlu1 %v1654_v3 }
0x13ae   :  { %v1650_v52 = vsel %vm1648_vm12, %v2780_v20, 128 }
0x13af   :  { %v1666_v21 = vshra.s32 %v1650_v52, 16  ;;  %v1665_v10 = vand.u32 65535, %v1650_v52 }
0x13b1   :  { %v1668_v30 = vcvt.s32.f32 %v1666_v21  ;;  %v1667_v36 = vcvt.s32.f32 %v1665_v10 }
0x13b3   :  { %1669 = vmin.xlane.f32.xlu0 %v1668_v30 }
0x1436   :  { %v1656_v32 = vpop.xlane.xlu1 %1655 }
0x1437   :  { %vm1657_vm11 = vcmp.eq.f32.partialorder %v1654_v3, %v1656_v32  ;;  %v1662_v37 = vcvt.f32.s32 %v1656_v32 }
0x1438   :  { %v1658_v62 = vsel %vm1657_vm11, %v1653_v61, inf }
0x1439   :  { %1659 = vmin.xlane.f32.xlu1 %v1658_v62  ;;  %v1663_v40 = vshll.u32 %v1662_v37, 16  ;;  %v375_v62 = vsel %vm369_vm10, %v2788_v26, 0.0  ;;  %v379_v37 = vsel %vm369_vm10, %v2791_v27, 0.0 }
0x143c   :  { %v1670_v35 = vpop.xlane.xlu0 %1669 }
0x143d   :  { %vm1671_vm1 = vcmp.eq.f32.partialorder %v1668_v30, %v1670_v35  ;;  %v1676_v42 = vcvt.f32.s32 %v1670_v35  ;;  %v376_v35 = vsel %vm368_vm9, %v2774_v15, 0.0 }
0x143e   :  { %v1672_v13 = vsel %vm1671_vm1, %v1667_v36, inf  ;;  %v377_v36 = vsel %vm369_vm10, %v2785_v23, 0.0 }
0x143f   :  { %1673 = vmin.xlane.f32.xlu0 %v1672_v13  ;;  %v1677_v17 = vshll.u32 %v1676_v42, 16  ;;  %v378_v13 = vsel %vm368_vm9, %v2794_v28, 0.0  ;;  %v806_v42 = vsel %vm798_vm14, %v2785_v23, 0.0 }
0x14c2   :  { %v1660_v38 = vpop.xlane.xlu1 %1659 }
0x14c3   :  { %v1661_v44 = vcvt.f32.s32 %v1660_v38  ;;  %v803_v38 = vsel %vm797_vm13, %v2777_v9, 0.0 }
0x14c5   :  { %v2966_v48 = vadd.s32 %v1663_v40, %v1661_v44  ;;  %v804_v40 = vsel %vm798_vm14, %v2788_v26, 0.0  ;;  %v929_v44 = vsel %vm923_vm7, %v2777_v9, 0.0 }
0x14c7   :  { %vm4198_vm12 = vcmp.eq.s32.totalorder %v2771_v14, %v2966_v48 }
0x14c8   :  { %v1674_v51 = vpop.xlane.xlu0 %1673  ;;  %v2973_v53 = vsel %vm4198_vm12, 1e+30, %v1641_v11 }
0x14c9   :  { %v1675_v63 = vcvt.f32.s32 %v1674_v51  ;;  %1769 = vmin.xlane.f32.xlu1 %v2973_v53 }
0x14cb   :  { %v2975_v18 = vadd.s32 %v1677_v17, %v1675_v63 }
0x14cd   :  { %vm1680_vm11 = vcmp.eq.s32.totalorder %v2780_v20, %v2975_v18 }
0x14ce   :  { %v2983_v3 = vsel %vm1680_vm11, 1e+30, %v1642_v2  ;;  %v374_v2 = vsel %vm368_vm9, %v2777_v9, 0.0 }
0x14cf   :  { %1771 = vmin.xlane.f32.xlu0 %v2983_v3 }
0x1552   :  { %v1770_v52 = vpop.xlane.xlu1 %1769 }
0x1553   :  { %vm1773_vm1 = vcmp.eq.f32.partialorder %v2973_v53, %v1770_v52 }
0x1554   :  { %v1775_v11 = vsel %vm1773_vm1, %v2771_v14, 128 }
0x1555   :  { %v1778_v21 = vshra.s32 %v1775_v11, 16  ;;  %v1777_v51 = vand.u32 65535, %v1775_v11 }
0x1557   :  { %v1780_v31 = vcvt.s32.f32 %v1778_v21  ;;  %v1779_v63 = vcvt.s32.f32 %v1777_v51  ;;  %v681_v51 = vsel %vm671_vm5, %v2794_v28, 0.0 }
0x1558   :  { %v1772_v30 = vpop.xlane.xlu0 %1771 }
0x1559   :  { %vm1774_vm12 = vcmp.eq.f32.partialorder %v2983_v3, %v1772_v30  ;;  %1781 = vmin.xlane.f32.xlu1 %v1780_v31 }
0x155a   :  { %v1776_v32 = vsel %vm1774_vm12, %v2780_v20, 128 }
0x155b   :  { %v1792_v61 = vshra.s32 %v1776_v32, 16  ;;  %v1791_v52 = vand.u32 65535, %v1776_v32 }
0x155d   :  { %v1794_v10 = vcvt.s32.f32 %v1792_v61  ;;  %380 = vadd.xlane.f32.xlu1 %v374_v2  ;;  %v1793_v61 = vcvt.s32.f32 %v1791_v52 }
0x155f   :  { %1795 = vmin.xlane.f32.xlu0 %v1794_v10 }
0x1561   :  { %384 = vadd.xlane.f32.xlu1 %v376_v35 }
0x1563   :  { %382 = vadd.xlane.f32.xlu0 %v375_v62 }
0x1565   :  { %388 = vadd.xlane.f32.xlu1 %v378_v13 }
0x1567   :  { %386 = vadd.xlane.f32.xlu0 %v377_v36 }
0x156b   :  { %390 = vadd.xlane.f32.xlu0 %v379_v37 }
0x1576   :  { %400 = vbcast.lane.b32.xlu1 %v2745_v57, 256  ;;  %v556_v57 = vsel %vm546_vm0, %v2791_v27, 0.0 }
0x157a   :  { %414 = vbcast.lane.b32.xlu1 %v2741_v56, 256  ;;  %v554_v56 = vsel %vm546_vm0, %v2785_v23, 0.0 }
0x157e   :  { %421 = vbcast.lane.b32.xlu1 %v2751_v59, 256  ;;  %v677_v59 = vsel %vm671_vm5, %v2777_v9, 0.0 }
0x1582   :  { %428 = vbcast.lane.b32.xlu1 %v2765_v6, 256  ;;  %v680_v6 = vsel %vm672_vm6, %v2785_v23, 0.0 }
0x1586   :  { %435 = vbcast.lane.b32.xlu1 %v2761_v5, 256  ;;  %v678_v5 = vsel %vm672_vm6, %v2788_v26, 0.0 }
0x15aa   :  { %557 = vadd.xlane.f32.xlu1 %v551_v41 }
0x15ae   :  { %559 = vadd.xlane.f32.xlu1 %v552_v46 }
0x15b2   :  { %563 = vadd.xlane.f32.xlu1 %v554_v56 }
0x15b6   :  { %567 = vadd.xlane.f32.xlu1 %v556_v57 }
0x15ba   :  { %683 = vadd.xlane.f32.xlu1 %v677_v59  ;;  %v553_v59 = vsel %vm545_vm15, %v2774_v15, 0.0 }
0x15be   :  { %685 = vadd.xlane.f32.xlu1 %v678_v5 }
0x15c2   :  { %689 = vadd.xlane.f32.xlu1 %v680_v6 }
0x15c6   :  { %693 = vadd.xlane.f32.xlu1 %v682_v22 }
0x15ca   :  { %809 = vadd.xlane.f32.xlu1 %v803_v38 }
0x15ce   :  { %811 = vadd.xlane.f32.xlu1 %v804_v40 }
0x15d2   :  { %815 = vadd.xlane.f32.xlu1 %v806_v42 }
0x15d6   :  { %819 = vadd.xlane.f32.xlu1 %v808_v0 }
0x15da   :  { %935 = vadd.xlane.f32.xlu1 %v929_v44 }
0x15e2   :  { %v1782_v17 = vpop.xlane.xlu1 %1781 }
0x15e3   :  { %vm1783_vm9 = vcmp.eq.f32.partialorder %v1780_v31, %v1782_v17  ;;  %v1788_v11 = vcvt.f32.s32 %v1782_v17 }
0x15e4   :  { %v1784_v21 = vsel %vm1783_vm9, %v1779_v63, inf  ;;  %vm4231_vm9 = vcmp.eq.s32.totalorder %v2771_v14, %v2902_v54 }
0x15e5   :  { %1785 = vmin.xlane.f32.xlu0 %v1784_v21  ;;  %v1789_v13 = vshll.u32 %v1788_v11, 16 }
0x15e6   :  { %v3178_v19 = vpop.xlane.xlu1 %380 }
0x15e8   :  { %v1796_v30 = vpop.xlane.xlu0 %1795 }
0x15e9   :  { %vm1797_vm10 = vcmp.eq.f32.partialorder %v1794_v10, %v1796_v30  ;;  %v1802_v32 = vcvt.f32.s32 %v1796_v30 }
0x15ea   :  { %v1798_v2 = vsel %vm1797_vm10, %v1793_v61, inf  ;;  %vm4232_vm10 = vmmov %vm4231_vm9 }
0x15eb   :  { %1799 = vmin.xlane.f32.xlu0 %v1798_v2  ;;  %v1803_v46 = vshll.u32 %v1802_v32, 16  ;;  %v807_v32 = vsel %vm797_vm13, %v2794_v28, 0.0  ;;  %v1183_v4 = vsel %vm4232_vm10, %v2774_v15, 0.0 }
0x15ec   :  { %v3072_v45 = vpop.xlane.xlu0 %382 }
0x15ed   :  { %4215 = vst [vmem:[#allocation9_spill] sm:$0xff] %v3072_v45 }
0x15f0   :  { %v3074_v62 = vpop.xlane.xlu0 %386 }
0x15f4   :  { %v3076_v35 = vpop.xlane.xlu0 %390 }
0x1601   :  { %407 = vbcast.lane.b32.xlu0 %v2754_v60, 256 }
0x166e   :  { %v1786_v36 = vpop.xlane.xlu0 %1785 }
0x166f   :  { %v1787_v31 = vcvt.f32.s32 %v1786_v36 }
0x1671   :  { %v3078_v37 = vadd.s32 %v1789_v13, %v1787_v31  ;;  %v930_v31 = vsel %vm924_vm8, %v2788_v26, 0.0 }
0x1673   :  { %vm1805_vm0 = vcmp.eq.s32.totalorder %v2771_v14, %v3078_v37 }
0x1674   :  { %v1800_v41 = vpop.xlane.xlu0 %1799  ;;  %v1893_v60 = vsel %vm1805_vm0, 1e+30, %v2973_v53  ;;  %v555_v53 = vsel %vm545_vm15, %v2794_v28, 0.0 }
0x1675   :  { %v1801_v10 = vcvt.f32.s32 %v1800_v41  ;;  %1895 = vmin.xlane.f32.xlu0 %v1893_v60  ;;  %v931_v41 = vsel %vm923_vm7, %v2774_v15, 0.0 }
0x1677   :  { %v3086_v56 = vadd.s32 %v1803_v46, %v1801_v10 }
0x1678   :  { %v3102_v5 = vpop.permute.xlu0 %407 }
0x1679   :  { %vm1806_vm6 = vcmp.eq.s32.totalorder %v2780_v20, %v3086_v56 }
0x167a   :  { %v1894_v57 = vsel %vm1806_vm6, 1e+30, %v2983_v3  ;;  %v1814_v18 = vsel %vm1806_vm6, %v2785_v23, 0.0 }
0x167b   :  { %1897 = vmin.xlane.f32.xlu0 %v1894_v57 }
0x167f   :  { %561 = vadd.xlane.f32.xlu0 %v553_v59 }
0x1683   :  { %565 = vadd.xlane.f32.xlu0 %v555_v53 }
0x16fe   :  { %v1896_v6 = vpop.xlane.xlu0 %1895 }
0x16ff   :  { %vm1899_vm14 = vcmp.eq.f32.partialorder %v1893_v60, %v1896_v6 }
0x1700   :  { %v1901_v22 = vsel %vm1899_vm14, %v2771_v14, 128  ;;  %vm4234_vm14 = vmmov %vm4231_vm9 }
0x1701   :  { %v1904_v3 = vshra.s32 %v1901_v22, 16  ;;  %v1903_v63 = vand.u32 65535, %v1901_v22 }
0x1703   :  { %v1906_v40 = vcvt.s32.f32 %v1904_v3  ;;  %v1905_v61 = vcvt.s32.f32 %v1903_v63  ;;  %v934_v63 = vsel %vm924_vm8, %v2791_v27, 0.0 }
0x1704   :  { %v1898_v38 = vpop.xlane.xlu0 %1897 }
0x1705   :  { %vm1900_vm12 = vcmp.eq.f32.partialorder %v1894_v57, %v1898_v38  ;;  %1907 = vmin.xlane.f32.xlu0 %v1906_v40 }
0x1706   :  { %v1902_v42 = vsel %vm1900_vm12, %v2780_v20, 128  ;;  %vm4235_vm12 = vcmp.eq.s32.totalorder %v2780_v20, %v2925_v58 }
0x1707   :  { %v1918_v0 = vshra.s32 %v1902_v42, 16  ;;  %v1917_v21 = vand.u32 65535, %v1902_v42  ;;  %vm4242_vm10 = vmmov %vm4235_vm12 }
0x1708   :  { %v3114_v17 = vpop.xlane.xlu0 %561 }
0x1709   :  { %v1920_v44 = vcvt.s32.f32 %v1918_v0  ;;  %4216 = vst [vmem:[#allocation10_spill] sm:$0xff] %v3114_v17  ;;  %v1919_v36 = vcvt.s32.f32 %v1917_v21  ;;  %v1055_v21 = vsel %vm1049_vm3, %v2777_v9, 0.0 }
0x170b   :  { %1921 = vmin.xlane.f32.xlu0 %v1920_v44 }
0x170c   :  { %v3116_v52 = vpop.xlane.xlu0 %565 }
0x170d   :  { %4217 = vst [vmem:[#allocation11_spill] sm:$0xff] %v3116_v52 }
0x170f   :  { %687 = vadd.xlane.f32.xlu0 %v679_v16 }
0x1713   :  { %691 = vadd.xlane.f32.xlu0 %v681_v51  ;;  %v932_v51 = vsel %vm924_vm8, %v2785_v23, 0.0 }
0x178e   :  { %v1908_v30 = vpop.xlane.xlu0 %1907 }
0x178f   :  { %vm1909_vm15 = vcmp.eq.f32.partialorder %v1906_v40, %v1908_v30  ;;  %v1914_v59 = vcvt.f32.s32 %v1908_v30  ;;  %v1058_v30 = vsel %vm1050_vm4, %v2785_v23, 0.0 }
0x1790   :  { %v1910_v2 = vsel %vm1909_vm15, %v1905_v61, inf  ;;  %v1059_v61 = vsel %vm1049_vm3, %v2794_v28, 0.0  ;;  %vm4230_vm3 = vcmp.eq.s32.totalorder %v2780_v20, %v2909_v8  ;;  %vm4236_vm15 = vcmp.eq.s32.totalorder %v2771_v14, %v2918_v49 }
0x1791   :  { %1911 = vmin.xlane.f32.xlu0 %v1910_v2  ;;  %v1915_v53 = vshll.u32 %v1914_v59, 16  ;;  %v3192_v2 = vpop.xlane.xlu1 %384  ;;  %v1310_v8 = vsel %vm4242_vm10, %v2785_v23, 0.0 }
0x1792   :  { %4220 = vst [vmem:[#allocation14_spill] sm:$0xff] %v3192_v2 }
0x1794   :  { %v1922_v11 = vpop.xlane.xlu0 %1921 }
0x1795   :  { %vm1923_vm1 = vcmp.eq.f32.partialorder %v1920_v44, %v1922_v11  ;;  %v1928_v6 = vcvt.f32.s32 %v1922_v11  ;;  %v3194_v11 = vpop.xlane.xlu1 %388 }
0x1796   :  { %v1924_v13 = vsel %vm1923_vm1, %v1919_v36, inf  ;;  %4221 = vst [vmem:[#allocation15_spill] sm:$0xff] %v3194_v11 }
0x1797   :  { %1925 = vmin.xlane.f32.xlu0 %v1924_v13  ;;  %v1929_v40 = vshll.u32 %v1928_v6, 16 }
0x1798   :  { %v3134_v46 = vpop.xlane.xlu0 %687 }
0x1799   :  { %4218 = vst [vmem:[#allocation12_spill] sm:$0xff] %v3134_v46  ;;  %v3196_v36 = vpop.permute.xlu1 %400 }
0x179b   :  { %813 = vadd.xlane.f32.xlu0 %v805_v55 }
0x179c   :  { %v3136_v10 = vpop.xlane.xlu0 %691 }
0x179d   :  { %4219 = vst [vmem:[#allocation13_spill] sm:$0xff] %v3136_v10  ;;  %v3198_v13 = vpop.permute.xlu1 %414 }
0x179f   :  { %817 = vadd.xlane.f32.xlu0 %v807_v32 }
0x17a1   :  { %v3200_v55 = vpop.permute.xlu1 %421 }
0x17a2   :  { %v446_v49 = vsub.f32 %v3074_v62, %v3200_v55 }
0x17a3   :  { %937 = vadd.xlane.f32.xlu0 %v930_v31 }
0x17a5   :  { %v3202_v32 = vpop.permute.xlu1 %428 }
0x17a6   :  { %4222 = vst [vmem:[#allocation16_spill] sm:$0xff] %v3202_v32 }
0x17a7   :  { %939 = vadd.xlane.f32.xlu0 %v931_v41 }
0x17a9   :  { %v3204_v31 = vpop.permute.xlu1 %435 }
0x17ad   :  { %v3206_v41 = vpop.xlane.xlu1 %557 }
0x17b1   :  { %v3208_v59 = vpop.xlane.xlu1 %559 }
0x17b2   :  { %4223 = vst [vmem:[#allocation17_spill] sm:$0xff] %v3208_v59 }
0x17b5   :  { %v3210_v7 = vpop.xlane.xlu1 %563 }
0x17b6   :  { %v572_v58 = vsub.f32 %v3210_v7, %v3200_v55 }
0x181a   :  { %v1912_v39 = vpop.xlane.xlu0 %1911 }
0x181b   :  { %v1913_v22 = vcvt.f32.s32 %v1912_v39  ;;  %v3212_v39 = vpop.xlane.xlu1 %567 }
0x181d   :  { %v3138_v3 = vadd.s32 %v1915_v53, %v1913_v22 }
0x181f   :  { %vm1931_vm5 = vcmp.eq.s32.totalorder %v2771_v14, %v3138_v3  ;;  %v3214_v53 = vpop.xlane.xlu1 %683 }
0x1820   :  { %v1926_v38 = vpop.xlane.xlu0 %1925  ;;  %v3145_v0 = vsel %vm1931_vm5, 1e+30, %v1893_v60  ;;  %v933_v60 = vsel %vm923_vm7, %v2794_v28, 0.0  ;;  %v695_v62 = vsub.f32 %v3214_v53, %v3196_v36 }
0x1821   :  { %v1927_v42 = vcvt.f32.s32 %v1926_v38  ;;  %2021 = vmin.xlane.f32.xlu1 %v3145_v0 }
0x1823   :  { %v3147_v44 = vadd.s32 %v1929_v40, %v1927_v42  ;;  %v3216_v6 = vpop.xlane.xlu1 %685 }
0x1824   :  { %4224 = vst [vmem:[#allocation18_spill] sm:$0xff] %v3216_v6 }
0x1825   :  { %vm1932_vm13 = vcmp.eq.s32.totalorder %v2780_v20, %v3147_v44  ;;  %941 = vadd.xlane.f32.xlu1 %v932_v51  ;;  %v3226_v51 = vpop.xlane.xlu0 %813  ;;  %v4267_v44 = vld [vmem:[#allocation17_spill] sm:$0xff] }
0x1826   :  { %v3155_v16 = vsel %vm1932_vm13, 1e+30, %v1894_v57  ;;  %v1056_v57 = vsel %vm1050_vm4, %v2788_v26, 0.0  ;;  %4226 = vst [vmem:[#allocation20_spill] sm:$0xff] %v3226_v51  ;;  %v1938_v56 = vsel %vm1932_vm13, %v2788_v26, 0.0 }
0x1827   :  { %2023 = vmin.xlane.f32.xlu0 %v3155_v16  ;;  %v3218_v22 = vpop.xlane.xlu1 %689 }
0x1829   :  { %945 = vadd.xlane.f32.xlu1 %v934_v63  ;;  %v3230_v63 = vpop.xlane.xlu0 %817 }
0x182a   :  { %4227 = vst [vmem:[#allocation21_spill] sm:$0xff] %v3230_v63 }
0x182b   :  { %943 = vadd.xlane.f32.xlu0 %v933_v60  ;;  %v3220_v38 = vpop.xlane.xlu1 %693 }
0x182d   :  { %1061 = vadd.xlane.f32.xlu1 %v1055_v21  ;;  %v3234_v21 = vpop.xlane.xlu0 %937 }
0x182e   :  { %4228 = vst [vmem:[#allocation22_spill] sm:$0xff] %v3234_v21 }
0x182f   :  { %1063 = vadd.xlane.f32.xlu0 %v1056_v57  ;;  %v3222_v40 = vpop.xlane.xlu1 %809 }
0x1830   :  { %v821_v7 = vsub.f32 %v3222_v40, %v3196_v36 }
0x1831   :  { %1067 = vadd.xlane.f32.xlu1 %v1058_v30  ;;  %v3238_v30 = vpop.xlane.xlu0 %939 }
0x1832   :  { %4229 = vst [vmem:[#allocation23_spill] sm:$0xff] %v3238_v30  ;;  %v1060_v30 = vsel %vm1050_vm4, %v2791_v27, 0.0  ;;  %vm4233_vm4 = vmmov %vm4230_vm3 }
0x1833   :  { %1065 = vadd.xlane.f32.xlu0 %v1057_v33  ;;  %v3224_v42 = vpop.xlane.xlu1 %811 }
0x1834   :  { %4225 = vst [vmem:[#allocation19_spill] sm:$0xff] %v3224_v42 }
0x1837   :  { %1069 = vadd.xlane.f32.xlu0 %v1059_v61  ;;  %v3228_v60 = vpop.xlane.xlu1 %815 }
0x183b   :  { %v3232_v57 = vpop.xlane.xlu1 %819 }
0x183c   :  { %v826_v53 = vsub.f32 %v3232_v57, %v3204_v31 }
0x183f   :  { %v3236_v33 = vpop.xlane.xlu1 %935 }
0x18aa   :  { %v2022_v61 = vpop.xlane.xlu1 %2021 }
0x18ab   :  { %vm2025_vm7 = vcmp.eq.f32.partialorder %v3145_v0, %v2022_v61  ;;  %v1182_v61 = vsel %vm4230_vm3, %v2788_v26, 0.0 }
0x18ac   :  { %v2027_v10 = vsel %vm2025_vm7, %v2771_v14, 128 }
0x18ad   :  { %v2030_v42 = vshra.s32 %v2027_v10, 16  ;;  %v2029_v59 = vand.u32 65535, %v2027_v10 }
0x18af   :  { %v2032_v51 = vcvt.s32.f32 %v2030_v42  ;;  %v1185_v42 = vsel %vm4234_vm14, %v2794_v28, 0.0 }
0x18b0   :  { %v2024_v46 = vpop.xlane.xlu0 %2023 }
0x18b1   :  { %vm2026_vm8 = vcmp.eq.f32.partialorder %v3155_v16, %v2024_v46  ;;  %2033 = vmin.xlane.f32.xlu1 %v2032_v51  ;;  %v1181_v46 = vsel %vm4231_vm9, %v2777_v9, 0.0 }
0x18b2   :  { %v2028_v63 = vsel %vm2026_vm8, %v2780_v20, 128  ;;  %vm4239_vm8 = vmmov %vm4230_vm3 }
0x18b3   :  { %v2044_v6 = vshra.s32 %v2028_v63, 16  ;;  %v2043_v11 = vand.u32 65535, %v2028_v63  ;;  %v1186_v10 = vsel %vm4239_vm8, %v2791_v27, 0.0  ;;  %vm4240_vm3 = vmmov %vm4236_vm15  ;;  %v448_v63 = vsub.f32 %v3076_v35, %v3204_v31 }
0x18b4   :  { %vm4241_vm9 = vmmov %vm4240_vm3  ;;  %v698_v35 = vsub.f32 %v3218_v22, %v3200_v55  ;;  %v947_v22 = vsub.f32 %v3236_v33, %v3196_v36 }
0x18b5   :  { %v2046_v52 = vcvt.s32.f32 %v2044_v6  ;;  %1071 = vadd.xlane.f32.xlu1 %v1060_v30  ;;  %v1184_v6 = vsel %vm4233_vm4, %v2785_v23, 0.0  ;;  %v1308_v30 = vsel %vm4235_vm12, %v2788_v26, 0.0  ;;  %vm4243_vm4 = vmmov %vm4242_vm10 }
0x18b7   :  { %2047 = vmin.xlane.f32.xlu0 %v2046_v52 }
0x18b9   :  { %1187 = vadd.xlane.f32.xlu1 %v1181_v46  ;;  %v2635_v46 = vmov 0  }
0x18ba   :  { %2537 = vset.pattern.permute.xlu0 %v2635_v46  ;;  %2538 = vset.pattern.permute.xlu1 %v2635_v46 }
0x18bb   :  { %1189 = vadd.xlane.f32.xlu0 %v1182_v61  ;;  %v1309_v61 = vsel %vm4236_vm15, %v2774_v15, 0.0  ;;  %vm4246_vm15 = vcmp.eq.s32.totalorder %v2771_v14, %v2934_v43 }
0x18bd   :  { %1193 = vadd.xlane.f32.xlu1 %v1184_v6  ;;  %v3276_v6 = vpop.xlane.xlu0 %943 }
0x18be   :  { %4237 = vst [vmem:[#allocation24_spill] sm:$0xff] %v3276_v6  ;;  %v2045_v6 = vcvt.s32.f32 %v2043_v11  ;;  %v1307_v11 = vsel %vm4241_vm9, %v2777_v9, 0.0  ;;  %vm4251_vm9 = vcmp.eq.s32.totalorder %v2780_v20, %v2941_v47 }
0x18bf   :  { %1191 = vadd.xlane.f32.xlu0 %v1183_v4  ;;  %v942_v4 = vpop.xlane.xlu1 %941  ;;  %vm4253_vm10 = vmmov %vm4251_vm9 }
0x18c3   :  { %1195 = vadd.xlane.f32.xlu0 %v1185_v42  ;;  %v946_v54 = vpop.xlane.xlu1 %945  ;;  %v3278_v42 = vpop.xlane.xlu0 %1063 }
0x18c4   :  { %4238 = vst [vmem:[#allocation25_spill] sm:$0xff] %v3278_v42 }
0x18c7   :  { %1315 = vadd.xlane.f32.xlu0 %v1308_v30  ;;  %v1062_v21 = vpop.xlane.xlu1 %1061  ;;  %v3280_v17 = vpop.xlane.xlu0 %1065 }
0x18c8   :  { %v1073_v40 = vsub.f32 %v1062_v21, %v3196_v36 }
0x18cb   :  { %1317 = vadd.xlane.f32.xlu0 %v1309_v61  ;;  %v1068_v30 = vpop.xlane.xlu1 %1067  ;;  %v3282_v32 = vpop.xlane.xlu0 %1069  ;;  %v2031_v61 = vcvt.s32.f32 %v2029_v59  ;;  %v1311_v59 = vsel %vm4240_vm3, %v2794_v28, 0.0 }
0x193a   :  { %v3284_v2 = vpop.xlane.xlu1 %2033 }
0x193b   :  { %vm2035_vm1 = vcmp.eq.f32.partialorder %v2032_v51, %v3284_v2  ;;  %v443_v51 = vsub.f32 %v3178_v19, %v3196_v36  ;;  %v574_v19 = vsub.f32 %v3212_v39, %v3204_v31  ;;  %v824_v39 = vsub.f32 %v3228_v60, %v3200_v55 }
0x193c   :  { %v2036_v46 = vsel %vm2035_vm1, %v2031_v61, inf  ;;  %v1076_v60 = vsub.f32 %v1068_v30, %v3200_v55  ;;  %v2040_v30 = vcvt.f32.s32 %v3284_v2  ;;  %vm4247_vm1 = vmmov %vm4246_vm15 }
0x193d   :  { %2037 = vmin.xlane.f32.xlu1 %v2036_v46 }
0x193e   :  { %v1072_v61 = vpop.xlane.xlu1 %1071 }
0x193f   :  { %v1078_v57 = vsub.f32 %v1072_v61, %v3204_v31 }
0x1940   :  { %v3287_v45 = vpop.xlane.xlu0 %2047 }
0x1941   :  { %vm2049_vm7 = vcmp.eq.f32.partialorder %v2046_v52, %v3287_v45  ;;  %1197 = vadd.xlane.f32.xlu1 %v1186_v10  ;;  %v1312_v52 = vsel %vm4243_vm4, %v2791_v27, 0.0  ;;  %vm4254_vm4 = vmmov %vm4251_vm9 }
0x1942   :  { %v2050_v42 = vsel %vm2049_vm7, %v2045_v6, inf  ;;  %v569_v6 = vsub.f32 %v3206_v41, %v3196_v36  ;;  %v700_v41 = vsub.f32 %v3220_v38, %v3204_v31  ;;  %v952_v38 = vsub.f32 %v946_v54, %v3204_v31  ;;  %v1188_v46 = vpop.xlane.xlu1 %1187  ;;  %vm4248_vm7 = vmmov %vm4247_vm1 }
0x1943   :  { %2051 = vmin.xlane.f32.xlu0 %v2050_v42  ;;  %v950_v42 = vsub.f32 %v942_v4, %v3200_v55  ;;  %v1199_v33 = vsub.f32 %v1188_v46, %v3196_v36 }
0x1944   :  { %v3343_v54 = vpop.xlane.xlu0 %1189 }
0x1945   :  { %1313 = vadd.xlane.f32.xlu1 %v1307_v11 }
0x1946   :  { %v1194_v10 = vpop.xlane.xlu1 %1193 }
0x1947   :  { %1321 = vadd.xlane.f32.xlu0 %v1311_v59  ;;  %v1202_v4 = vsub.f32 %v1194_v10, %v3200_v55 }
0x1948   :  { %v3345_v59 = vpop.xlane.xlu0 %1191 }
0x1949   :  { %1319 = vadd.xlane.f32.xlu1 %v1310_v8 }
0x194c   :  { %v3347_v21 = vpop.xlane.xlu0 %1195 }
0x194d   :  { %1323 = vadd.xlane.f32.xlu1 %v1312_v52 }
0x1950   :  { %v3349_v11 = vpop.xlane.xlu0 %1315 }
0x1954   :  { %v3352_v8 = vpop.xlane.xlu0 %1317 }
0x195d   :  { %456 = vperm.xlu0 %2537, %v443_v51   ;;  %v2041_v51 = vshll.u32 %v2040_v30, 16 }
0x1961   :  { %465 = vperm.xlu0 %2537, %v446_v49   ;;  %v2054_v49 = vcvt.f32.s32 %v3287_v45 }
0x1965   :  { %471 = vperm.xlu0 %2537, %v448_v63  }
0x1969   :  { %582 = vperm.xlu0 %2537, %v569_v6  }
0x196d   :  { %591 = vperm.xlu0 %2537, %v572_v58  }
0x1971   :  { %597 = vperm.xlu0 %2537, %v574_v19  }
0x1975   :  { %708 = vperm.xlu0 %2537, %v695_v62   ;;  %v2055_v62 = vshll.u32 %v2054_v49, 16 }
0x1979   :  { %717 = vperm.xlu0 %2537, %v698_v35  }
0x197d   :  { %723 = vperm.xlu0 %2537, %v700_v41  }
0x1981   :  { %834 = vperm.xlu0 %2537, %v821_v7  }
0x1985   :  { %843 = vperm.xlu0 %2537, %v824_v39  }
0x1989   :  { %849 = vperm.xlu0 %2537, %v826_v53  }
0x198d   :  { %960 = vperm.xlu0 %2537, %v947_v22   ;;  %v1435_v22 = vsel %vm4247_vm1, %v2774_v15, 0.0 }
0x1991   :  { %969 = vperm.xlu0 %2537, %v950_v42  }
0x1995   :  { %975 = vperm.xlu0 %2537, %v952_v38  }
0x1999   :  { %1086 = vperm.xlu0 %2537, %v1073_v40  }
0x199d   :  { %1095 = vperm.xlu0 %2537, %v1076_v60  }
0x19a1   :  { %1101 = vperm.xlu0 %2537, %v1078_v57  }
0x19a5   :  { %1212 = vperm.xlu0 %2537, %v1199_v33  }
0x19a9   :  { %1221 = vperm.xlu0 %2537, %v1202_v4  }
0x19c6   :  { %v2038_v52 = vpop.xlane.xlu1 %2037 }
0x19c7   :  { %v2039_v63 = vcvt.f32.s32 %v2038_v52 }
0x19c9   :  { %v3355_v6 = vadd.s32 %v2041_v51, %v2039_v63 }
0x19ca   :  { %v1198_v19 = vpop.xlane.xlu1 %1197 }
0x19cb   :  { %4244 = vst [vmem:[#allocation26_spill] sm:$0xff] %v3355_v6  ;;  %v1204_v41 = vsub.f32 %v1198_v19, %v3204_v31  ;;  %vm2057_vm14 = vcmp.eq.s32.totalorder %v2771_v14, %v3355_v6 }
0x19cc   :  { %v2052_v58 = vpop.xlane.xlu0 %2051  ;;  %v3364_v2 = vsel %vm2057_vm14, 1e+30, %v3145_v0  ;;  %v1433_v0 = vsel %vm4246_vm15, %v2777_v9, 0.0  ;;  %vm98_vm15 = vcmask 58368  }
0x19cd   :  { %v2053_v35 = vcvt.f32.s32 %v2052_v58  ;;  %2147 = vmin.xlane.f32.xlu1 %v3364_v2  ;;  %1227 = vperm.xlu0 %2537, %v1204_v41   ;;  %99 = vst.msk [vmem:[#allocation5] sm:$0x3] %vm98_vm15, %v4208_v24  ;;  %100 = vst.msk [vmem:[#allocation5 + $0x2] sm:$0x3] %vm98_vm15, %v4210_v29 }
0x19ce   :  { %v1314_v45 = vpop.xlane.xlu1 %1313  ;;  %101 = vst.msk [vmem:[#allocation5 + $0x4] sm:$0x3] %vm98_vm15, %v4209_v25 }
0x19cf   :  { %v3366_v7 = vadd.s32 %v2055_v62, %v2053_v35  ;;  %v1325_v39 = vsub.f32 %v1314_v45, %v3196_v36 }
0x19d0   :  { %v3391_v42 = vpop.xlane.xlu0 %1321 }
0x19d1   :  { %4245 = vst [vmem:[#allocation27_spill] sm:$0xff] %v3366_v7  ;;  %vm2058_vm12 = vcmp.eq.s32.totalorder %v2780_v20, %v3366_v7  ;;  %1338 = vperm.xlu0 %2537, %v1325_v39  }
0x19d2   :  { %v3376_v53 = vsel %vm2058_vm12, 1e+30, %v3155_v16  ;;  %v1437_v16 = vsel %vm4248_vm7, %v2794_v28, 0.0  ;;  %v1320_v49 = vpop.xlane.xlu1 %1319  ;;  %vm497_vm7 = vcmask 1041409   ;;  %v2064_v3 = vsel %vm2058_vm12, %v2788_v26, 0.0 }
0x19d3   :  { %2149 = vmin.xlane.f32.xlu1 %v3376_v53  ;;  %v1328_v47 = vsub.f32 %v1320_v49, %v3200_v55 }
0x19d6   :  { %v1324_v58 = vpop.xlane.xlu1 %1323 }
0x19d8   :  { %v3393_v38 = vpop.permute.xlu0 %456 }
0x19dc   :  { %v3395_v40 = vpop.permute.xlu0 %465 }
0x19e0   :  { %v3397_v61 = vpop.permute.xlu0 %471 }
0x19e4   :  { %v3399_v60 = vpop.permute.xlu0 %582 }
0x19e8   :  { %v3401_v46 = vpop.permute.xlu0 %591 }
0x19ec   :  { %v3403_v57 = vpop.permute.xlu0 %597 }
0x19f0   :  { %1439 = vadd.xlane.f32.xlu0 %v1433_v0  ;;  %v3405_v33 = vpop.permute.xlu0 %708 }
0x19f4   :  { %1443 = vadd.xlane.f32.xlu0 %v1435_v22  ;;  %v3407_v10 = vpop.permute.xlu0 %717 }
0x19f8   :  { %1447 = vadd.xlane.f32.xlu0 %v1437_v16  ;;  %v3409_v43 = vpop.permute.xlu0 %723 }
0x19fc   :  { %v3411_v4 = vpop.permute.xlu0 %834 }
0x1a00   :  { %v3413_v30 = vpop.permute.xlu0 %843 }
0x1a04   :  { %v3415_v52 = vpop.permute.xlu0 %849 }
0x1a08   :  { %v3417_v51 = vpop.permute.xlu0 %960 }
0x1a0c   :  { %v3419_v63 = vpop.permute.xlu0 %969 }
0x1a10   :  { %v3421_v19 = vpop.permute.xlu0 %975 }
0x1a14   :  { %v3424_v35 = vpop.permute.xlu0 %1086 }
0x1a15   :  { %4249 = vst [vmem:[#allocation28_spill] sm:$0xff] %v3424_v35 }
0x1a18   :  { %v3432_v6 = vpop.permute.xlu0 %1095 }
0x1a19   :  { %4250 = vst [vmem:[#allocation29_spill] sm:$0xff] %v3432_v6 }
0x1a56   :  { %v2148_v62 = vpop.xlane.xlu1 %2147 }
0x1a57   :  { %vm2151_vm8 = vcmp.eq.f32.partialorder %v3364_v2, %v2148_v62  ;;  %v1434_v62 = vsel %vm4251_vm9, %v2788_v26, 0.0 }
0x1a58   :  { %v2153_v41 = vsel %vm2151_vm8, %v2771_v14, 128  ;;  %vm4257_vm8 = vcmp.eq.s32.totalorder %v2771_v14, %v2966_v48  ;;  %v4268_v48 = vld [vmem:[#allocation10_spill] sm:$0xff] }
0x1a59   :  { %v2156_v45 = vshra.s32 %v2153_v41, 16  ;;  %vm4261_vm9 = vmmov %vm4257_vm8 }
0x1a5b   :  { %v2158_v0 = vcvt.s32.f32 %v2156_v45  ;;  %v1436_v45 = vsel %vm4253_vm10, %v2785_v23, 0.0  ;;  %vm4262_vm10 = vmmov %vm4257_vm8 }
0x1a5c   :  { %v2150_v39 = vpop.xlane.xlu1 %2149 }
0x1a5d   :  { %vm2152_vm3 = vcmp.eq.f32.partialorder %v3376_v53, %v2150_v39  ;;  %2159 = vmin.xlane.f32.xlu1 %v2158_v0  ;;  %v3441_v39 = vpop.permute.xlu0 %1101 }
0x1a5e   :  { %v3429_v22 = vsel %vm2152_vm3, %v2780_v20, 128  ;;  %4252 = vst [vmem:[#allocation30_spill] sm:$0xff] %v3441_v39  ;;  %v1327_v39 = vsub.f32 %v3352_v8, %v3198_v13 }
0x1a5f   :  { %v2170_v16 = vshra.s32 %v3429_v22, 16 }
0x1a61   :  { %v3434_v7 = vcvt.s32.f32 %v2170_v16  ;;  %1441 = vadd.xlane.f32.xlu1 %v1434_v62  ;;  %v1438_v16 = vsel %vm4254_vm4, %v2791_v27, 0.0  ;;  %v3451_v6 = vpop.permute.xlu0 %1212 }
0x1a63   :  { %2173 = vmin.xlane.f32.xlu0 %v3434_v7 }
0x1a65   :  { %1445 = vadd.xlane.f32.xlu1 %v1436_v45  ;;  %v3453_v35 = vpop.permute.xlu0 %1221 }
0x1a66   :  { %4255 = vst [vmem:[#allocation31_spill] sm:$0xff] %v3453_v35 }
0x1a69   :  { %1449 = vadd.xlane.f32.xlu1 %v1438_v16  ;;  %v3455_v62 = vpop.permute.xlu0 %1227  ;;  %v1330_v16 = vsub.f32 %v1324_v58, %v3204_v31  ;;  %v1560_v58 = vsel %vm1554_vm2, %v2788_v26, 0.0 }
0x1a6a   :  { %4256 = vst [vmem:[#allocation32_spill] sm:$0xff] %v3455_v62 }
0x1a6d   :  { %v3466_v45 = vpop.permute.xlu0 %1338 }
0x1a79   :  { %1344 = vperm.xlu0 %2537, %v1327_v39   ;;  %v1440_v62 = vpop.xlane.xlu0 %1439  ;;  %v2155_v39 = vand.u32 65535, %v2153_v41 }
0x1a7a   :  { %v1451_v8 = vsub.f32 %v1440_v62, %v3196_v36 }
0x1a7b   :  { %v2157_v29 = vcvt.s32.f32 %v2155_v39 }
0x1a7d   :  { %1347 = vperm.xlu0 %2537, %v1328_v47   ;;  %v3470_v24 = vpop.xlane.xlu0 %1443 }
0x1a81   :  { %1353 = vperm.xlu0 %2537, %v1330_v16   ;;  %v3475_v49 = vpop.xlane.xlu0 %1447 }
0x1a85   :  { %1464 = vperm.xlu0 %2537, %v1451_v8  }
0x1ae6   :  { %v3472_v35 = vpop.xlane.xlu1 %2159 }
0x1ae7   :  { %vm2161_vm1 = vcmp.eq.f32.partialorder %v2158_v0, %v3472_v35  ;;  %v1562_v0 = vsel %vm1554_vm2, %v2785_v23, 0.0 }
0x1ae8   :  { %v2162_v25 = vsel %vm2161_vm1, %v2157_v29, inf }
0x1ae9   :  { %2163 = vmin.xlane.f32.xlu1 %v2162_v25  ;;  %v1564_v25 = vsel %vm1554_vm2, %v2791_v27, 0.0 }
0x1aea   :  { %v3477_v47 = vpop.xlane.xlu1 %1441 }
0x1aec   :  { %v3483_v41 = vpop.xlane.xlu0 %2173 }
0x1aed   :  { %1567 = vadd.xlane.f32.xlu1 %v1560_v58  ;;  %v3497_v58 = vsub.s32 %v2659_v1, %v2733_v50  ;;  %v1686_v1 = vsel %vm1680_vm11, %v2788_v26, 0.0  ;;  %v1688_v50 = vsel %vm1680_vm11, %v2785_v23, 0.0  ;;  %vm2175_vm2 = vcmp.eq.f32.partialorder %v3434_v7, %v3483_v41 }
0x1aee   :  { %v1446_v62 = vpop.xlane.xlu1 %1445  ;;  %v1937_v7 = vsel %vm1931_vm5, %v2777_v9, 0.0 }
0x1aef   :  { %v1454_v16 = vsub.f32 %v1446_v62, %v3200_v55 }
0x1af1   :  { %1571 = vadd.xlane.f32.xlu1 %v1562_v0  ;;  %1473 = vperm.xlu0 %2537, %v1454_v16  }
0x1af2   :  { %v1450_v39 = vpop.xlane.xlu1 %1449 }
0x1af3   :  { %v1456_v29 = vsub.f32 %v1450_v39, %v3204_v31  ;;  %v1685_v39 = vsel %vm4257_vm8, %v2777_v9, 0.0 }
0x1af4   :  { %v1345_v8 = vpop.permute.xlu0 %1344 }
0x1af5   :  { %1575 = vadd.xlane.f32.xlu1 %v1564_v25  ;;  %1479 = vperm.xlu0 %2537, %v1456_v29   ;;  %v1366_v0 = vrot.slane %v1345_v8, %v3497_v58  ;;  %v1690_v8 = vsel %vm1680_vm11, %v2791_v27, 0.0  ;;  %v1811_v29 = vsel %vm1805_vm0, %v2777_v9, 0.0  ;;  %v1812_v25 = vsel %vm1806_vm6, %v2788_v26, 0.0 }
0x1af6   :  { %vm4258_vm11 = vcmp.eq.s32.totalorder %v2771_v14, %v2950_v34  ;;  %v1689_v34 = vsel %vm4262_vm10, %v2794_v28, 0.0 }
0x1af7   :  { %vm4259_vm3 = vmmov %vm4258_vm11 }
0x1af8   :  { %v1348_v62 = vpop.permute.xlu0 %1347 }
0x1af9   :  { %v1370_v16 = vrot.slane %v1348_v62, %v3497_v58  ;;  %1691 = vadd.xlane.f32.xlu1 %v1685_v39  ;;  %v2169_v62 = vand.u32 65535, %v3429_v22  ;;  %v1816_v39 = vsel %vm1806_vm6, %v2791_v27, 0.0  ;;  %v1559_v22 = vsel %vm4258_vm11, %v2777_v9, 0.0  ;;  %vm4260_vm6 = vmmov %vm4259_vm3 }
0x1afb   :  { %v1380_v12 = vsel %vm497_vm7, %v1370_v16, %v1366_v0  ;;  %v2171_v0 = vcvt.s32.f32 %v2169_v62 }
0x1afc   :  { %2457 = vst.msk [vmem:[%s4189_s1 + $0x2e] sm:$0x3] %vm98_vm15, %v1380_v12  ;;  %v1561_v12 = vsel %vm4259_vm3, %v2774_v15, 0.0 }
0x1afd   :  { %1693 = vadd.xlane.f32.xlu1 %v1686_v1  ;;  %v2176_v16 = vsel %vm2175_vm2, %v2171_v0, inf  ;;  %v1563_v1 = vsel %vm4260_vm6, %v2794_v28, 0.0 }
0x1b01   :  { %1697 = vadd.xlane.f32.xlu1 %v1688_v50  ;;  %v1940_v50 = vsel %vm1932_vm13, %v2785_v23, 0.0 }
0x1b05   :  { %1701 = vadd.xlane.f32.xlu1 %v1690_v8  ;;  %v1687_v8 = vsel %vm4261_vm9, %v2774_v15, 0.0 }
0x1b09   :  { %1817 = vadd.xlane.f32.xlu1 %v1811_v29  ;;  %v1942_v29 = vsel %vm1932_vm13, %v2791_v27, 0.0 }
0x1b0d   :  { %1819 = vadd.xlane.f32.xlu1 %v1812_v25  ;;  %v4263_v25 = vld [vmem:[#allocation9_spill] sm:$0xff] }
0x1b0e   :  { %v444_v62 = vsub.f32 %v4263_v25, %v3102_v5  ;;  %v4272_v25 = vld [vmem:[#allocation13_spill] sm:$0xff] }
0x1b11   :  { %1823 = vadd.xlane.f32.xlu1 %v1814_v18  ;;  %v4264_v18 = vld [vmem:[#allocation14_spill] sm:$0xff] }
0x1b12   :  { %v445_v0 = vsub.f32 %v4264_v18, %v3198_v13  ;;  %v4273_v18 = vld [vmem:[#allocation19_spill] sm:$0xff] }
0x1b14   :  { %2177 = vmin.xlane.f32.xlu0 %v2176_v16  ;;  %v4265_v16 = vld [vmem:[#allocation16_spill] sm:$0xff] }
0x1b15   :  { %1827 = vadd.xlane.f32.xlu1 %v1816_v39  ;;  %v4266_v39 = vld [vmem:[#allocation15_spill] sm:$0xff] }
0x1b18   :  { %1565 = vadd.xlane.f32.xlu0 %v1559_v22  ;;  %v447_v22 = vsub.f32 %v4266_v39, %v4265_v16  ;;  %v4274_v39 = vld [vmem:[#allocation20_spill] sm:$0xff] }
0x1b19   :  { %1943 = vadd.xlane.f32.xlu1 %v1937_v7  ;;  %v570_v7 = vsub.f32 %v4267_v44, %v3102_v5  ;;  %v4275_v44 = vld [vmem:[#allocation21_spill] sm:$0xff] }
0x1b1c   :  { %1569 = vadd.xlane.f32.xlu0 %v1561_v12  ;;  %v571_v12 = vsub.f32 %v4268_v48, %v3198_v13  ;;  %v4276_v48 = vld [vmem:[#allocation22_spill] sm:$0xff] }
0x1b1d   :  { %1945 = vadd.xlane.f32.xlu1 %v1938_v56  ;;  %v4269_v56 = vld [vmem:[#allocation11_spill] sm:$0xff] }
0x1b20   :  { %1573 = vadd.xlane.f32.xlu0 %v1563_v1  ;;  %v573_v1 = vsub.f32 %v4269_v56, %v4265_v16  ;;  %v4277_v56 = vld [vmem:[#allocation23_spill] sm:$0xff] }
0x1b21   :  { %1949 = vadd.xlane.f32.xlu1 %v1940_v50  ;;  %v4270_v50 = vld [vmem:[#allocation18_spill] sm:$0xff] }
0x1b24   :  { %1695 = vadd.xlane.f32.xlu0 %v1687_v8  ;;  %v696_v8 = vsub.f32 %v4270_v50, %v3102_v5  ;;  %v4278_v50 = vld [vmem:[#allocation24_spill] sm:$0xff] }
0x1b25   :  { %1953 = vadd.xlane.f32.xlu1 %v1942_v29  ;;  %v4271_v29 = vld [vmem:[#allocation12_spill] sm:$0xff] }
0x1b28   :  { %1699 = vadd.xlane.f32.xlu0 %v1689_v34  ;;  %v697_v34 = vsub.f32 %v4271_v29, %v3198_v13  ;;  %v2166_v29 = vcvt.f32.s32 %v3472_v35  ;;  %v1077_v35 = vsub.f32 %v3282_v32, %v4265_v16  ;;  %v1201_v32 = vsub.f32 %v3345_v59, %v3198_v13 }
0x1b36   :  { %459 = vperm.xlu1 %2538, %v444_v62   ;;  %v699_v62 = vsub.f32 %v4272_v25, %v4265_v16 }
0x1b3a   :  { %462 = vperm.xlu1 %2538, %v445_v0   ;;  %v822_v0 = vsub.f32 %v4273_v18, %v3102_v5  ;;  %v2167_v18 = vshll.u32 %v2166_v29, 16  ;;  %v1329_v29 = vsub.f32 %v3391_v42, %v4265_v16  ;;  %v1455_v42 = vsub.f32 %v3475_v49, %v4265_v16 }
0x1b3e   :  { %468 = vperm.xlu1 %2538, %v447_v22   ;;  %v823_v22 = vsub.f32 %v4274_v39, %v3198_v13  ;;  %v1075_v39 = vsub.f32 %v3280_v17, %v3198_v13 }
0x1b42   :  { %585 = vperm.xlu1 %2538, %v570_v7   ;;  %v825_v7 = vsub.f32 %v4275_v44, %v4265_v16 }
0x1b46   :  { %588 = vperm.xlu1 %2538, %v571_v12   ;;  %v948_v12 = vsub.f32 %v4276_v48, %v3102_v5  ;;  %v1200_v48 = vsub.f32 %v3343_v54, %v3102_v5 }
0x1b4a   :  { %594 = vperm.xlu1 %2538, %v573_v1   ;;  %v949_v1 = vsub.f32 %v4277_v56, %v3198_v13 }
0x1b4e   :  { %711 = vperm.xlu1 %2538, %v696_v8   ;;  %v951_v8 = vsub.f32 %v4278_v50, %v4265_v16  ;;  %v1326_v50 = vsub.f32 %v3349_v11, %v3102_v5 }
0x1b52   :  { %714 = vperm.xlu1 %2538, %v697_v34   ;;  %v4279_v34 = vld [vmem:[#allocation25_spill] sm:$0xff] }
0x1b53   :  { %v1074_v25 = vsub.f32 %v4279_v34, %v3102_v5 }
0x1b56   :  { %720 = vperm.xlu1 %2538, %v699_v62  }
0x1b5a   :  { %837 = vperm.xlu1 %2538, %v822_v0  }
0x1b5e   :  { %840 = vperm.xlu1 %2538, %v823_v22  }
0x1b62   :  { %846 = vperm.xlu1 %2538, %v825_v7  }
0x1b66   :  { %963 = vperm.xlu1 %2538, %v948_v12  }
0x1b6a   :  { %966 = vperm.xlu1 %2538, %v949_v1  }
0x1b6e   :  { %972 = vperm.xlu1 %2538, %v951_v8   ;;  %v3639_v8 = vpop.permute.xlu0 %1353 }
0x1b72   :  { %1089 = vperm.xlu1 %2538, %v1074_v25   ;;  %v2164_v62 = vpop.xlane.xlu1 %2163  ;;  %v3647_v34 = vpop.permute.xlu0 %1464 }
0x1b73   :  { %v2165_v0 = vcvt.f32.s32 %v2164_v62  ;;  %v1453_v62 = vsub.f32 %v3470_v24, %v3198_v13 }
0x1b75   :  { %v3612_v22 = vadd.s32 %v2167_v18, %v2165_v0 }
0x1b76   :  { %1092 = vperm.xlu1 %2538, %v1075_v39   ;;  %v1568_v44 = vpop.xlane.xlu1 %1567  ;;  %v3653_v11 = vpop.permute.xlu0 %1473  ;;  %v2180_v39 = vcvt.f32.s32 %v3483_v41 }
0x1b77   :  { %vm2183_vm13 = vcmp.eq.s32.totalorder %v2771_v14, %v3612_v22 }
0x1b78   :  { %v3622_v7 = vsel %vm2183_vm13, 1e+30, %v3364_v2  ;;  %v1203_v2 = vsub.f32 %v3347_v21, %v4265_v16  ;;  %v1452_v21 = vsub.f32 %v3477_v47, %v3102_v5  ;;  %v1578_v47 = vsub.f32 %v1568_v44, %v3102_v5 }
0x1b79   :  { %2273 = vmin.xlane.f32.xlu0 %v3622_v7 }
0x1b7a   :  { %1098 = vperm.xlu1 %2538, %v1077_v35   ;;  %v3625_v17 = vpop.xlane.xlu1 %1571  ;;  %v3659_v0 = vpop.permute.xlu0 %1479 }
0x1b7e   :  { %1215 = vperm.xlu1 %2538, %v1200_v48   ;;  %v3629_v12 = vpop.xlane.xlu1 %1575 }
0x1b82   :  { %1218 = vperm.xlu1 %2538, %v1201_v32   ;;  %v3633_v56 = vpop.xlane.xlu1 %1691  ;;  %v2181_v32 = vshll.u32 %v2180_v39, 16 }
0x1b86   :  { %1224 = vperm.xlu1 %2538, %v1203_v2   ;;  %v1694_v1 = vpop.xlane.xlu1 %1693 }
0x1b8a   :  { %1341 = vperm.xlu1 %2538, %v1326_v50   ;;  %v3641_v54 = vpop.xlane.xlu1 %1697 }
0x1b8e   :  { %1350 = vperm.xlu1 %2538, %v1329_v29   ;;  %v3645_v59 = vpop.xlane.xlu1 %1701 }
0x1b92   :  { %1467 = vperm.xlu1 %2538, %v1452_v21   ;;  %v3651_v25 = vpop.xlane.xlu1 %1817 }
0x1b96   :  { %1470 = vperm.xlu1 %2538, %v1453_v62   ;;  %v1820_v18 = vpop.xlane.xlu1 %1819 }
0x1b9a   :  { %1476 = vperm.xlu1 %2538, %v1455_v42   ;;  %v3662_v35 = vpop.xlane.xlu1 %1823 }
0x1b9d   :  { %v2178_v48 = vpop.xlane.xlu0 %2177 }
0x1b9e   :  { %v2179_v2 = vcvt.f32.s32 %v2178_v48  ;;  %1593 = vperm.xlu1 %2538, %v1578_v47   ;;  %v3665_v50 = vpop.xlane.xlu1 %1827 }
0x1ba0   :  { %v3667_v24 = vadd.s32 %v2181_v32, %v2179_v2  ;;  %v1704_v32 = vsub.f32 %v1694_v1, %v3102_v5 }
0x1ba1   :  { %v1566_v29 = vpop.xlane.xlu0 %1565 }
0x1ba2   :  { %4280 = vst [vmem:[#allocation9_spill] sm:$0xff] %v3667_v24  ;;  %vm2184_vm4 = vcmp.eq.s32.totalorder %v2780_v20, %v3667_v24  ;;  %v3671_v49 = vpop.xlane.xlu1 %1943 }
0x1ba3   :  { %v3677_v41 = vsel %vm2184_vm4, 1e+30, %v3376_v53 }
0x1ba4   :  { %2275 = vmin.xlane.f32.xlu0 %v3677_v41 }
0x1ba5   :  { %v1570_v44 = vpop.xlane.xlu0 %1569 }
0x1ba6   :  { %v1579_v21 = vsub.f32 %v1570_v44, %v3198_v13  ;;  %v3681_v62 = vpop.xlane.xlu1 %1945  ;;  %v476_v44 = vrot.slane %v3393_v38, %v3497_v58  ;;  %v1577_v38 = vsub.f32 %v1566_v29, %v3196_v36  ;;  %v1580_v29 = vsub.f32 %v3625_v17, %v3200_v55 }
0x1ba8   :  { %1596 = vperm.xlu1 %2538, %v1579_v21  }
0x1ba9   :  { %v1574_v42 = vpop.xlane.xlu0 %1573 }
0x1baa   :  { %v1581_v39 = vsub.f32 %v1574_v42, %v4265_v16  ;;  %v3684_v47 = vpop.xlane.xlu1 %1949 }
0x1bac   :  { %1602 = vperm.xlu1 %2538, %v1581_v39  }
0x1bad   :  { %v1696_v48 = vpop.xlane.xlu0 %1695 }
0x1bae   :  { %v3687_v2 = vpop.xlane.xlu1 %1953  ;;  %v1705_v53 = vsub.f32 %v1696_v48, %v3198_v13  ;;  %v488_v48 = vrot.slane %v3395_v40, %v3497_v58 }
0x1bb0   :  { %1719 = vperm.xlu1 %2538, %v1704_v32  }
0x1bb1   :  { %v1700_v27 = vpop.xlane.xlu0 %1699 }
0x1bb2   :  { %v460_v24 = vpop.permute.xlu1 %459  ;;  %v1707_v39 = vsub.f32 %v1700_v27, %v4265_v16 }
0x1bb3   :  { %v480_v21 = vrot.slane %v460_v24, %v3497_v58 }
0x1bb4   :  { %1722 = vperm.xlu1 %2538, %v1705_v53   ;;  %v1830_v53 = vsub.f32 %v1820_v18, %v3102_v5 }
0x1bb5   :  { %v498_v42 = vsel %vm497_vm7, %v480_v21, %v476_v44  ;;  %v496_v44 = vrot.slane %v3397_v61, %v3497_v58 }
0x1bb6   :  { %504 = vst.msk [vmem:[%s4189_s1] sm:$0x3] %vm98_vm15, %v498_v42  ;;  %v463_v1 = vpop.permute.xlu1 %462  ;;  %v602_v42 = vrot.slane %v3399_v60, %v3497_v58  ;;  %v1703_v60 = vsub.f32 %v3633_v56, %v3196_v36 }
0x1bb7   :  { %v484_v32 = vrot.slane %v463_v1, %v3497_v58 }
0x1bb8   :  { %1728 = vperm.xlu1 %2538, %v1707_v39   ;;  %v1582_v39 = vsub.f32 %v3629_v12, %v3204_v31 }
0x1bb9   :  { %v499_v24 = vsel %vm497_vm7, %v488_v48, %v484_v32  ;;  %v614_v48 = vrot.slane %v3401_v46, %v3497_v58 }
0x1bba   :  { %505 = vst.msk [vmem:[%s4189_s1 + $0x20] sm:$0x3] %vm98_vm15, %v499_v24  ;;  %1590 = vperm.xlu0 %2537, %v1577_v38   ;;  %v469_v27 = vpop.permute.xlu1 %468  ;;  %v622_v24 = vrot.slane %v3403_v57, %v3497_v58 }
0x1bbb   :  { %v492_v40 = vrot.slane %v469_v27, %v3497_v58  ;;  %v728_v27 = vrot.slane %v3405_v33, %v3497_v58 }
0x1bbc   :  { %1845 = vperm.xlu1 %2538, %v1830_v53  }
0x1bbd   :  { %v500_v21 = vsel %vm497_vm7, %v496_v44, %v492_v40 }
0x1bbe   :  { %506 = vst.msk [vmem:[%s4189_s1 + $0x40] sm:$0x3] %vm98_vm15, %v500_v21  ;;  %1599 = vperm.xlu0 %2537, %v1580_v29   ;;  %v586_v18 = vpop.permute.xlu1 %585  ;;  %v740_v29 = vrot.slane %v3407_v10, %v3497_v58 }
0x1bbf   :  { %v606_v61 = vrot.slane %v586_v18, %v3497_v58 }
0x1bc1   :  { %v623_v17 = vsel %vm497_vm7, %v606_v61, %v602_v42  ;;  %v748_v42 = vrot.slane %v3409_v43, %v3497_v58 }
0x1bc2   :  { %2438 = vst.msk [vmem:[%s4189_s1 + $0x2] sm:$0x3] %vm98_vm15, %v623_v17  ;;  %1605 = vperm.xlu0 %2537, %v1582_v39   ;;  %v589_v1 = vpop.permute.xlu1 %588  ;;  %v854_v17 = vrot.slane %v3411_v4, %v3497_v58 }
0x1bc3   :  { %v610_v32 = vrot.slane %v589_v1, %v3497_v58 }
0x1bc5   :  { %v624_v38 = vsel %vm497_vm7, %v614_v48, %v610_v32  ;;  %v866_v32 = vrot.slane %v3413_v30, %v3497_v58 }
0x1bc6   :  { %2439 = vst.msk [vmem:[%s4189_s1 + $0x22] sm:$0x3] %vm98_vm15, %v624_v38  ;;  %1716 = vperm.xlu0 %2537, %v1703_v60   ;;  %v595_v12 = vpop.permute.xlu1 %594 }
0x1bc7   :  { %v618_v53 = vrot.slane %v595_v12, %v3497_v58  ;;  %v874_v12 = vrot.slane %v3415_v52, %v3497_v58  ;;  %v1813_v52 = vsel %vm1805_vm0, %v2774_v15, 0.0 }
0x1bc9   :  { %v625_v46 = vsel %vm497_vm7, %v622_v24, %v618_v53 }
0x1bca   :  { %2440 = vst.msk [vmem:[%s4189_s1 + $0x42] sm:$0x3] %vm98_vm15, %v625_v46  ;;  %v712_v56 = vpop.permute.xlu1 %711  ;;  %v980_v46 = vrot.slane %v3417_v51, %v3497_v58 }
0x1bcb   :  { %v732_v44 = vrot.slane %v712_v56, %v3497_v58 }
0x1bcd   :  { %v749_v40 = vsel %vm497_vm7, %v732_v44, %v728_v27 }
0x1bce   :  { %2441 = vst.msk [vmem:[%s4189_s1 + $0x4] sm:$0x3] %vm98_vm15, %v749_v40  ;;  %v715_v57 = vpop.permute.xlu1 %714  ;;  %v992_v40 = vrot.slane %v3419_v63, %v3497_v58 }
0x1bcf   :  { %v736_v21 = vrot.slane %v715_v57, %v3497_v58  ;;  %v1815_v57 = vsel %vm1805_vm0, %v2794_v28, 0.0 }
0x1bd1   :  { %v750_v18 = vsel %vm497_vm7, %v740_v29, %v736_v21 }
0x1bd2   :  { %2442 = vst.msk [vmem:[%s4189_s1 + $0x24] sm:$0x3] %vm98_vm15, %v750_v18  ;;  %v721_v33 = vpop.permute.xlu1 %720  ;;  %v1000_v18 = vrot.slane %v3421_v19, %v3497_v58 }
0x1bd3   :  { %v744_v61 = vrot.slane %v721_v33, %v3497_v58 }
0x1bd5   :  { %v751_v39 = vsel %vm497_vm7, %v748_v42, %v744_v61  ;;  %v4281_v42 = vld [vmem:[#allocation28_spill] sm:$0xff] }
0x1bd6   :  { %2443 = vst.msk [vmem:[%s4189_s1 + $0x44] sm:$0x3] %vm98_vm15, %v751_v39  ;;  %v838_v10 = vpop.permute.xlu1 %837  ;;  %v1106_v61 = vrot.slane %v4281_v42, %v3497_v58  ;;  %v1358_v42 = vrot.slane %v3466_v45, %v3497_v58 }
0x1bd7   :  { %v858_v1 = vrot.slane %v838_v10, %v3497_v58 }
0x1bd9   :  { %v875_v48 = vsel %vm497_vm7, %v858_v1, %v854_v17  ;;  %v4282_v17 = vld [vmem:[#allocation29_spill] sm:$0xff] }
0x1bda   :  { %2444 = vst.msk [vmem:[%s4189_s1 + $0x6] sm:$0x3] %vm98_vm15, %v875_v48  ;;  %v841_v43 = vpop.permute.xlu1 %840  ;;  %v1118_v1 = vrot.slane %v4282_v17, %v3497_v58 }
0x1bdb   :  { %v862_v60 = vrot.slane %v841_v43, %v3497_v58 }
0x1bdd   :  { %v876_v38 = vsel %vm497_vm7, %v866_v32, %v862_v60  ;;  %v4283_v60 = vld [vmem:[#allocation30_spill] sm:$0xff] }
0x1bde   :  { %2445 = vst.msk [vmem:[%s4189_s1 + $0x26] sm:$0x3] %vm98_vm15, %v876_v38  ;;  %v847_v4 = vpop.permute.xlu1 %846  ;;  %v1126_v38 = vrot.slane %v4283_v60, %v3497_v58  ;;  %v1496_v60 = vrot.slane %v3653_v11, %v3497_v58 }
0x1bdf   :  { %v870_v24 = vrot.slane %v847_v4, %v3497_v58 }
0x1be1   :  { %v877_v53 = vsel %vm497_vm7, %v874_v12, %v870_v24 }
0x1be2   :  { %2446 = vst.msk [vmem:[%s4189_s1 + $0x46] sm:$0x3] %vm98_vm15, %v877_v53  ;;  %v964_v30 = vpop.permute.xlu1 %963  ;;  %v1232_v53 = vrot.slane %v3451_v6, %v3497_v58 }
0x1be3   :  { %v984_v56 = vrot.slane %v964_v30, %v3497_v58 }
0x1be5   :  { %v1001_v27 = vsel %vm497_vm7, %v984_v56, %v980_v46  ;;  %1821 = vadd.xlane.f32.xlu0 %v1813_v52  ;;  %v4284_v52 = vld [vmem:[#allocation31_spill] sm:$0xff] }
0x1be6   :  { %2447 = vst.msk [vmem:[%s4189_s1 + $0x8] sm:$0x3] %vm98_vm15, %v1001_v27  ;;  %v967_v44 = vpop.permute.xlu1 %966  ;;  %v1244_v27 = vrot.slane %v4284_v52, %v3497_v58 }
0x1be7   :  { %v988_v51 = vrot.slane %v967_v44, %v3497_v58 }
0x1be9   :  { %v1002_v29 = vsel %vm497_vm7, %v992_v40, %v988_v51  ;;  %1825 = vadd.xlane.f32.xlu0 %v1815_v57  ;;  %v4285_v57 = vld [vmem:[#allocation32_spill] sm:$0xff] }
0x1bea   :  { %2448 = vst.msk [vmem:[%s4189_s1 + $0x28] sm:$0x3] %vm98_vm15, %v1002_v29  ;;  %v973_v21 = vpop.permute.xlu1 %972  ;;  %v1252_v29 = vrot.slane %v4285_v57, %v3497_v58 }
0x1beb   :  { %v996_v63 = vrot.slane %v973_v21, %v3497_v58 }
0x1bed   :  { %v1003_v33 = vsel %vm497_vm7, %v1000_v18, %v996_v63 }
0x1bee   :  { %2449 = vst.msk [vmem:[%s4189_s1 + $0x48] sm:$0x3] %vm98_vm15, %v1003_v33  ;;  %v1090_v37 = vpop.permute.xlu1 %1089 }
0x1bef   :  { %v1110_v39 = vrot.slane %v1090_v37, %v3497_v58 }
0x1bf1   :  { %v1127_v10 = vsel %vm497_vm7, %v1110_v39, %v1106_v61 }
0x1bf2   :  { %2450 = vst.msk [vmem:[%s4189_s1 + $0xa] sm:$0x3] %vm98_vm15, %v1127_v10  ;;  %v1093_v19 = vpop.permute.xlu1 %1092 }
0x1bf3   :  { %v1114_v48 = vrot.slane %v1093_v19, %v3497_v58  ;;  %v1378_v19 = vrot.slane %v3639_v8, %v3497_v58 }
0x1bf5   :  { %v1128_v43 = vsel %vm497_vm7, %v1118_v1, %v1114_v48  ;;  %v1484_v48 = vrot.slane %v3647_v34, %v3497_v58 }
0x1bf6   :  { %2451 = vst.msk [vmem:[%s4189_s1 + $0x2a] sm:$0x3] %vm98_vm15, %v1128_v43  ;;  %v1099_v32 = vpop.permute.xlu1 %1098 }
0x1bf7   :  { %v1122_v4 = vrot.slane %v1099_v32, %v3497_v58 }
0x1bf9   :  { %v1129_v12 = vsel %vm497_vm7, %v1126_v38, %v1122_v4 }
0x1bfa   :  { %2452 = vst.msk [vmem:[%s4189_s1 + $0x4a] sm:$0x3] %vm98_vm15, %v1129_v12  ;;  %v1216_v24 = vpop.permute.xlu1 %1215  ;;  %v1504_v12 = vrot.slane %v3659_v0, %v3497_v58 }
0x1bfb   :  { %v1236_v30 = vrot.slane %v1216_v24, %v3497_v58 }
0x1bfd   :  { %v1253_v46 = vsel %vm497_vm7, %v1236_v30, %v1232_v53 }
0x1bfe   :  { %2453 = vst.msk [vmem:[%s4189_s1 + $0xc] sm:$0x3] %vm98_vm15, %v1253_v46  ;;  %v1219_v56 = vpop.permute.xlu1 %1218 }
0x1bff   :  { %v1240_v44 = vrot.slane %v1219_v56, %v3497_v58 }
0x1c01   :  { %v1254_v40 = vsel %vm497_vm7, %v1244_v27, %v1240_v44 }
0x1c02   :  { %2454 = vst.msk [vmem:[%s4189_s1 + $0x2c] sm:$0x3] %vm98_vm15, %v1254_v40  ;;  %v2274_v6 = vpop.xlane.xlu0 %2273  ;;  %v1225_v51 = vpop.permute.xlu1 %1224 }
0x1c03   :  { %vm2277_vm0 = vcmp.eq.f32.partialorder %v3622_v7, %v2274_v6  ;;  %v1248_v21 = vrot.slane %v1225_v51, %v3497_v58 }
0x1c04   :  { %v3872_v18 = vsel %vm2277_vm0, %v2771_v14, 128 }
0x1c05   :  { %v2282_v63 = vshra.s32 %v3872_v18, 16  ;;  %v1255_v33 = vsel %vm497_vm7, %v1252_v29, %v1248_v21 }
0x1c06   :  { %2455 = vst.msk [vmem:[%s4189_s1 + $0x4c] sm:$0x3] %vm98_vm15, %v1255_v33  ;;  %v1342_v37 = vpop.permute.xlu1 %1341 }
0x1c07   :  { %v3882_v61 = vcvt.s32.f32 %v2282_v63  ;;  %v1362_v7 = vrot.slane %v1342_v37, %v3497_v58 }
0x1c09   :  { %v1379_v39 = vsel %vm497_vm7, %v1362_v7, %v1358_v42  ;;  %2285 = vmin.xlane.f32.xlu0 %v3882_v61 }
0x1c0a   :  { %2456 = vst.msk [vmem:[%s4189_s1 + $0xe] sm:$0x3] %vm98_vm15, %v1379_v39  ;;  %v1351_v10 = vpop.permute.xlu1 %1350 }
0x1c0b   :  { %v1374_v17 = vrot.slane %v1351_v10, %v3497_v58 }
0x1c0d   :  { %v1381_v45 = vsel %vm497_vm7, %v1378_v19, %v1374_v17 }
0x1c0e   :  { %2458 = vst.msk [vmem:[%s4189_s1 + $0x4e] sm:$0x3] %vm98_vm15, %v1381_v45  ;;  %v1468_v1 = vpop.permute.xlu1 %1467  ;;  %v1706_v45 = vsub.f32 %v3641_v54, %v3200_v55 }
0x1c0f   :  { %v1488_v43 = vrot.slane %v1468_v1, %v3497_v58  ;;  %v1708_v1 = vsub.f32 %v3645_v59, %v3204_v31 }
0x1c11   :  { %v1505_v32 = vsel %vm497_vm7, %v1488_v43, %v1484_v48  ;;  %v1829_v48 = vsub.f32 %v3651_v25, %v3196_v36  ;;  %v1832_v43 = vsub.f32 %v3662_v35, %v3200_v55  ;;  %v1956_v25 = vsub.f32 %v3681_v62, %v3102_v5 }
0x1c12   :  { %2459 = vst.msk [vmem:[%s4189_s1 + $0x10] sm:$0x3] %vm98_vm15, %v1505_v32  ;;  %v1471_v8 = vpop.permute.xlu1 %1470  ;;  %v1834_v32 = vsub.f32 %v3665_v50, %v3204_v31  ;;  %v1939_v62 = vsel %vm1931_vm5, %v2774_v15, 0.0 }
0x1c13   :  { %v1492_v38 = vrot.slane %v1471_v8, %v3497_v58 }
0x1c15   :  { %v1506_v4 = vsel %vm497_vm7, %v1496_v60, %v1492_v38  ;;  %v2281_v38 = vand.u32 65535, %v3872_v18 }
0x1c16   :  { %2460 = vst.msk [vmem:[%s4189_s1 + $0x30] sm:$0x3] %vm98_vm15, %v1506_v4  ;;  %v1477_v34 = vpop.permute.xlu1 %1476 }
0x1c17   :  { %v1500_v24 = vrot.slane %v1477_v34, %v3497_v58  ;;  %v2283_v35 = vcvt.s32.f32 %v2281_v38 }
0x1c19   :  { %v1507_v53 = vsel %vm497_vm7, %v1504_v12, %v1500_v24 }
0x1c1a   :  { %2461 = vst.msk [vmem:[%s4189_s1 + $0x50] sm:$0x3] %vm98_vm15, %v1507_v53  ;;  %v1594_v30 = vpop.permute.xlu1 %1593 }
0x1c1b   :  { %v1614_v44 = vrot.slane %v1594_v30, %v3497_v58 }
0x1c23   :  { %v1597_v27 = vpop.permute.xlu1 %1596 }
0x1c24   :  { %v1618_v57 = vrot.slane %v1597_v27, %v3497_v58 }
0x1c27   :  { %v1603_v51 = vpop.permute.xlu1 %1602 }
0x1c28   :  { %v1626_v33 = vrot.slane %v1603_v51, %v3497_v58 }
0x1c2b   :  { %v1720_v42 = vpop.permute.xlu1 %1719 }
0x1c2c   :  { %v1740_v10 = vrot.slane %v1720_v42, %v3497_v58  ;;  %v2189_v42 = vsel %vm2183_vm13, %v2777_v9, 0.0 }
0x1c2d   :  { %v2276_v11 = vpop.xlane.xlu0 %2275 }
0x1c2e   :  { %vm2278_vm1 = vcmp.eq.f32.partialorder %v3677_v41, %v2276_v11 }
0x1c2f   :  { %v2280_v46 = vsel %vm2278_vm1, %v2780_v20, 128  ;;  %v1723_v53 = vpop.permute.xlu1 %1722 }
0x1c30   :  { %v2296_v56 = vshra.s32 %v2280_v46, 16  ;;  %v2295_v34 = vand.u32 65535, %v2280_v46 }
0x1c32   :  { %v2298_v52 = vcvt.s32.f32 %v2296_v56  ;;  %v2297_v12 = vcvt.s32.f32 %v2295_v34  ;;  %v1941_v56 = vsel %vm1931_vm5, %v2794_v28, 0.0 }
0x1c33   :  { %v1729_v18 = vpop.permute.xlu1 %1728 }
0x1c34   :  { %2299 = vmin.xlane.f32.xlu0 %v2298_v52 }
0x1c35   :  { %v1591_v0 = vpop.permute.xlu0 %1590 }
0x1c36   :  { %v1610_v40 = vrot.slane %v1591_v0, %v3497_v58  ;;  %v1752_v0 = vrot.slane %v1729_v18, %v3497_v58 }
0x1c38   :  { %v1631_v6 = vsel %vm497_vm7, %v1614_v44, %v1610_v40  ;;  %v1846_v40 = vpop.permute.xlu1 %1845 }
0x1c39   :  { %2462 = vst.msk [vmem:[%s4189_s1 + $0x12] sm:$0x3] %vm98_vm15, %v1631_v6  ;;  %v1600_v41 = vpop.permute.xlu0 %1599 }
0x1c3a   :  { %v1622_v29 = vrot.slane %v1600_v41, %v3497_v58 }
0x1c3c   :  { %v1632_v21 = vsel %vm497_vm7, %v1622_v29, %v1618_v57  ;;  %v1866_v57 = vrot.slane %v1846_v40, %v3497_v58 }
0x1c3d   :  { %2463 = vst.msk [vmem:[%s4189_s1 + $0x32] sm:$0x3] %vm98_vm15, %v1632_v21  ;;  %v1606_v63 = vpop.permute.xlu0 %1605 }
0x1c3e   :  { %v1630_v37 = vrot.slane %v1606_v63, %v3497_v58  ;;  %v2065_v63 = vsel %vm2057_vm14, %v2774_v15, 0.0 }
0x1c40   :  { %v1633_v7 = vsel %vm497_vm7, %v1630_v37, %v1626_v33  ;;  %v2067_v37 = vsel %vm2057_vm14, %v2794_v28, 0.0 }
0x1c41   :  { %2464 = vst.msk [vmem:[%s4189_s1 + $0x52] sm:$0x3] %vm98_vm15, %v1633_v7  ;;  %v1717_v39 = vpop.permute.xlu0 %1716  ;;  %v2191_v7 = vsel %vm2183_vm13, %v2774_v15, 0.0 }
0x1c42   :  { %v1736_v19 = vrot.slane %v1717_v39, %v3497_v58  ;;  %v2193_v39 = vsel %vm2183_vm13, %v2794_v28, 0.0 }
0x1c44   :  { %v1757_v17 = vsel %vm497_vm7, %v1740_v10, %v1736_v19 }
0x1c45   :  { %2465 = vst.msk [vmem:[%s4189_s1 + $0x14] sm:$0x3] %vm98_vm15, %v1757_v17 }
0x1c4a   :  { %1725 = vperm.xlu0 %2537, %v1706_v45  }
0x1c4e   :  { %1731 = vperm.xlu0 %2537, %v1708_v1  }
0x1c52   :  { %1842 = vperm.xlu0 %2537, %v1829_v48  }
0x1c56   :  { %1851 = vperm.xlu0 %2537, %v1832_v43  }
0x1c5a   :  { %1857 = vperm.xlu0 %2537, %v1834_v32  }
0x1c6e   :  { %v1822_v8 = vpop.xlane.xlu0 %1821 }
0x1c6f   :  { %v1831_v54 = vsub.f32 %v1822_v8, %v3198_v13 }
0x1c71   :  { %1848 = vperm.xlu1 %2538, %v1831_v54  }
0x1c72   :  { %v1826_v60 = vpop.xlane.xlu0 %1825 }
0x1c73   :  { %v1833_v59 = vsub.f32 %v1826_v60, %v4265_v16 }
0x1c75   :  { %1854 = vperm.xlu1 %2538, %v1833_v59  }
0x1c79   :  { %1971 = vperm.xlu1 %2538, %v1956_v25  }
0x1c92   :  { %v2286_v4 = vpop.xlane.xlu0 %2285 }
0x1c93   :  { %vm2287_vm8 = vcmp.eq.f32.partialorder %v3882_v61, %v2286_v4  ;;  %v1744_v61 = vrot.slane %v1723_v53, %v3497_v58  ;;  %v2292_v54 = vcvt.f32.s32 %v2286_v4  ;;  %v1958_v4 = vsub.f32 %v3684_v47, %v3200_v55  ;;  %v4288_v47 = vld [vmem:[#allocation8_spill] sm:$0xff] }
0x1c94   :  { %v2288_v50 = vsel %vm2287_vm8, %v2283_v35, inf  ;;  %v1960_v53 = vsub.f32 %v3687_v2, %v3204_v31  ;;  %v2068_v2 = vsel %vm2058_vm12, %v4288_v47, 0.0 }
0x1c95   :  { %2289 = vmin.xlane.f32.xlu0 %v2288_v50  ;;  %v2293_v59 = vshll.u32 %v2292_v54, 16 }
0x1cbd   :  { %v3969_v24 = vpop.xlane.xlu0 %2299 }
0x1cbe   :  { %vm2301_vm2 = vcmp.eq.f32.partialorder %v2298_v52, %v3969_v24  ;;  %v2306_v18 = vcvt.f32.s32 %v3969_v24  ;;  %v2194_v24 = vsel %vm2184_vm4, %v4288_v47, 0.0 }
0x1cbf   :  { %v2302_v11 = vsel %vm2301_vm2, %v2297_v12, inf  ;;  %v1955_v12 = vsub.f32 %v3671_v49, %v3196_v36  ;;  %v2066_v49 = vsel %vm2058_vm12, %v2785_v23, 0.0 }
0x1cc0   :  { %2303 = vmin.xlane.f32.xlu0 %v2302_v11 }
0x1cc4   :  { %1947 = vadd.xlane.f32.xlu0 %v1939_v62 }
0x1cc5   :  { %v1726_v30 = vpop.permute.xlu0 %1725 }
0x1cc6   :  { %v1748_v46 = vrot.slane %v1726_v30, %v3497_v58 }
0x1cc8   :  { %v1758_v52 = vsel %vm497_vm7, %v1748_v46, %v1744_v61  ;;  %1951 = vadd.xlane.f32.xlu0 %v1941_v56  ;;  %v2307_v61 = vshll.u32 %v2306_v18, 16  ;;  %v2192_v46 = vsel %vm2184_vm4, %v2785_v23, 0.0 }
0x1cc9   :  { %2466 = vst.msk [vmem:[%s4189_s1 + $0x34] sm:$0x3] %vm98_vm15, %v1758_v52  ;;  %v1732_v27 = vpop.permute.xlu0 %1731 }
0x1cca   :  { %v1756_v44 = vrot.slane %v1732_v27, %v3497_v58 }
0x1ccc   :  { %v1759_v51 = vsel %vm497_vm7, %v1756_v44, %v1752_v0  ;;  %2071 = vadd.xlane.f32.xlu0 %v2064_v3 }
0x1ccd   :  { %2467 = vst.msk [vmem:[%s4189_s1 + $0x54] sm:$0x3] %vm98_vm15, %v1759_v51  ;;  %v1843_v41 = vpop.permute.xlu0 %1842 }
0x1cce   :  { %v1862_v29 = vrot.slane %v1843_v41, %v3497_v58 }
0x1cd0   :  { %v1883_v33 = vsel %vm497_vm7, %v1866_v57, %v1862_v29  ;;  %2073 = vadd.xlane.f32.xlu0 %v2065_v63 }
0x1cd1   :  { %2468 = vst.msk [vmem:[%s4189_s1 + $0x16] sm:$0x3] %vm98_vm15, %v1883_v33  ;;  %v1852_v10 = vpop.permute.xlu0 %1851 }
0x1cd2   :  { %v1874_v17 = vrot.slane %v1852_v10, %v3497_v58 }
0x1cd4   :  { %2077 = vadd.xlane.f32.xlu0 %v2067_v37 }
0x1cd5   :  { %v1858_v1 = vpop.permute.xlu0 %1857 }
0x1cd6   :  { %v1882_v32 = vrot.slane %v1858_v1, %v3497_v58 }
0x1cd8   :  { %2195 = vadd.xlane.f32.xlu0 %v2189_v42 }
0x1cdc   :  { %2199 = vadd.xlane.f32.xlu0 %v2191_v7 }
0x1ce0   :  { %2203 = vadd.xlane.f32.xlu0 %v2193_v39 }
0x1cec   :  { %v1849_v19 = vpop.permute.xlu1 %1848 }
0x1ced   :  { %v1870_v45 = vrot.slane %v1849_v19, %v3497_v58 }
0x1cef   :  { %v1884_v48 = vsel %vm497_vm7, %v1874_v17, %v1870_v45 }
0x1cf0   :  { %2469 = vst.msk [vmem:[%s4189_s1 + $0x36] sm:$0x3] %vm98_vm15, %v1884_v48  ;;  %v1855_v43 = vpop.permute.xlu1 %1854 }
0x1cf1   :  { %v1878_v22 = vrot.slane %v1855_v43, %v3497_v58 }
0x1cf3   :  { %v1885_v8 = vsel %vm497_vm7, %v1882_v32, %v1878_v22 }
0x1cf4   :  { %2470 = vst.msk [vmem:[%s4189_s1 + $0x56] sm:$0x3] %vm98_vm15, %v1885_v8  ;;  %v1972_v39 = vpop.permute.xlu1 %1971 }
0x1cf5   :  { %v1992_v19 = vrot.slane %v1972_v39, %v3497_v58 }
0x1d1e   :  { %v2290_v60 = vpop.xlane.xlu0 %2289 }
0x1d1f   :  { %v2291_v25 = vcvt.f32.s32 %v2290_v60 }
0x1d21   :  { %v2294_v38 = vadd.s32 %v2293_v59, %v2291_v25 }
0x1d23   :  { %vm2309_vm5 = vcmp.eq.s32.totalorder %v2771_v14, %v2294_v38  ;;  %v2190_v14 = vsel %vm2184_vm4, %v2788_v26, 0.0 }
0x1d24   :  { %v2315_v35 = vsel %vm2309_vm5, %v2777_v9, 0.0  ;;  %v2317_v50 = vsel %vm2309_vm5, %v2774_v15, 0.0  ;;  %v2319_v34 = vsel %vm2309_vm5, %v2794_v28, 0.0  ;;  %v2063_v28 = vsel %vm2057_vm14, %v2777_v9, 0.0 }
0x1d25   :  { %2321 = vadd.xlane.f32.xlu0 %v2315_v35 }
0x1d29   :  { %2325 = vadd.xlane.f32.xlu0 %v2317_v50 }
0x1d2d   :  { %2329 = vadd.xlane.f32.xlu0 %v2319_v34 }
0x1d43   :  { %1968 = vperm.xlu0 %2537, %v1955_v12  }
0x1d47   :  { %1977 = vperm.xlu0 %2537, %v1958_v4  }
0x1d49   :  { %v2304_v11 = vpop.xlane.xlu0 %2303 }
0x1d4a   :  { %v2305_v9 = vcvt.f32.s32 %v2304_v11 }
0x1d4b   :  { %1983 = vperm.xlu0 %2537, %v1960_v53  }
0x1d4c   :  { %v2308_v56 = vadd.s32 %v2307_v61, %v2305_v9 }
0x1d4d   :  { %v1948_v62 = vpop.xlane.xlu0 %1947 }
0x1d4e   :  { %v1957_v15 = vsub.f32 %v1948_v62, %v3198_v13  ;;  %vm2310_vm14 = vcmp.eq.s32.totalorder %v2780_v20, %v2308_v56 }
0x1d4f   :  { %v2316_v27 = vsel %vm2310_vm14, %v2788_v26, 0.0  ;;  %v2318_v44 = vsel %vm2310_vm14, %v2785_v23, 0.0  ;;  %v2320_v6 = vsel %vm2310_vm14, %v4288_v47, 0.0 }
0x1d50   :  { %1974 = vperm.xlu1 %2538, %v1957_v15  }
0x1d51   :  { %v1952_v52 = vpop.xlane.xlu0 %1951 }
0x1d52   :  { %v1959_v41 = vsub.f32 %v1952_v52, %v4265_v16 }
0x1d55   :  { %v2072_v0 = vpop.xlane.xlu0 %2071 }
0x1d56   :  { %v2082_v29 = vsub.f32 %v2072_v0, %v3102_v5 }
0x1d59   :  { %v2074_v40 = vpop.xlane.xlu0 %2073 }
0x1d5a   :  { %v2083_v26 = vsub.f32 %v2074_v40, %v3198_v13 }
0x1d5d   :  { %v2078_v3 = vpop.xlane.xlu0 %2077 }
0x1d5e   :  { %v2085_v23 = vsub.f32 %v2078_v3, %v4265_v16 }
0x1d61   :  { %v2196_v51 = vpop.xlane.xlu0 %2195 }
0x1d62   :  { %v2207_v63 = vsub.f32 %v2196_v51, %v3196_v36 }
0x1d65   :  { %v2200_v57 = vpop.xlane.xlu0 %2199 }
0x1d66   :  { %v2209_v37 = vsub.f32 %v2200_v57, %v3198_v13 }
0x1d69   :  { %v2204_v20 = vpop.xlane.xlu0 %2203 }
0x1d6a   :  { %v2211_v7 = vsub.f32 %v2204_v20, %v4265_v16 }
0x1d74   :  { %2069 = vadd.xlane.f32.xlu1 %v2063_v28 }
0x1d78   :  { %2075 = vadd.xlane.f32.xlu1 %v2066_v49 }
0x1d7c   :  { %2079 = vadd.xlane.f32.xlu1 %v2068_v2 }
0x1d80   :  { %2197 = vadd.xlane.f32.xlu1 %v2190_v14 }
0x1d84   :  { %2201 = vadd.xlane.f32.xlu1 %v2192_v46 }
0x1d88   :  { %2205 = vadd.xlane.f32.xlu1 %v2194_v24 }
0x1d8c   :  { %2323 = vadd.xlane.f32.xlu1 %v2316_v27 }
0x1d90   :  { %2327 = vadd.xlane.f32.xlu1 %v2318_v44 }
0x1d94   :  { %2331 = vadd.xlane.f32.xlu1 %v2320_v6 }
0x1da5   :  { %1980 = vperm.xlu1 %2538, %v1959_v41  }
0x1da9   :  { %2097 = vperm.xlu1 %2538, %v2082_v29  }
0x1dad   :  { %2100 = vperm.xlu1 %2538, %v2083_v26  }
0x1dae   :  { %v2322_v21 = vpop.xlane.xlu0 %2321 }
0x1daf   :  { %v2333_v17 = vsub.f32 %v2322_v21, %v3196_v36 }
0x1db1   :  { %2106 = vperm.xlu1 %2538, %v2085_v23  }
0x1db2   :  { %v2326_v33 = vpop.xlane.xlu0 %2325 }
0x1db3   :  { %v2335_v48 = vsub.f32 %v2326_v33, %v3198_v13 }
0x1db5   :  { %2220 = vperm.xlu1 %2538, %v2207_v63  }
0x1db6   :  { %v2330_v42 = vpop.xlane.xlu0 %2329 }
0x1db7   :  { %v2337_v43 = vsub.f32 %v2330_v42, %v4265_v16 }
0x1db9   :  { %2226 = vperm.xlu1 %2538, %v2209_v37  }
0x1dbd   :  { %2232 = vperm.xlu1 %2538, %v2211_v7  }
0x1dbe   :  { %v1969_v10 = vpop.permute.xlu0 %1968 }
0x1dbf   :  { %v1988_v45 = vrot.slane %v1969_v10, %v3497_v58 }
0x1dc1   :  { %v2009_v1 = vsel %vm497_vm7, %v1992_v19, %v1988_v45  ;;  %2346 = vperm.xlu1 %2538, %v2333_v17  }
0x1dc2   :  { %2471 = vst.msk [vmem:[%s4189_s1 + $0x18] sm:$0x3] %vm98_vm15, %v2009_v1  ;;  %v1978_v32 = vpop.permute.xlu0 %1977 }
0x1dc3   :  { %v2000_v8 = vrot.slane %v1978_v32, %v3497_v58 }
0x1dc5   :  { %2352 = vperm.xlu1 %2538, %v2335_v48  }
0x1dc6   :  { %v1984_v2 = vpop.permute.xlu0 %1983 }
0x1dc9   :  { %2358 = vperm.xlu1 %2538, %v2337_v43  }
0x1dcb   :  { %v1975_v22 = vpop.permute.xlu1 %1974 }
0x1dcc   :  { %v1996_v54 = vrot.slane %v1975_v22, %v3497_v58 }
0x1dce   :  { %v2010_v60 = vsel %vm497_vm7, %v2000_v8, %v1996_v54 }
0x1dcf   :  { %2472 = vst.msk [vmem:[%s4189_s1 + $0x38] sm:$0x3] %vm98_vm15, %v2010_v60 }
0x1dfd   :  { %v2070_v59 = vpop.xlane.xlu1 %2069 }
0x1dfe   :  { %v2081_v13 = vsub.f32 %v2070_v59, %v3196_v36 }
0x1e00   :  { %2094 = vperm.xlu0 %2537, %v2081_v13  }
0x1e01   :  { %v2076_v25 = vpop.xlane.xlu1 %2075 }
0x1e02   :  { %v2084_v16 = vsub.f32 %v2076_v25, %v3200_v55 }
0x1e04   :  { %2103 = vperm.xlu0 %2537, %v2084_v16  }
0x1e05   :  { %v2080_v38 = vpop.xlane.xlu1 %2079 }
0x1e06   :  { %v2086_v35 = vsub.f32 %v2080_v38, %v3204_v31 }
0x1e08   :  { %2109 = vperm.xlu0 %2537, %v2086_v35  }
0x1e09   :  { %v2198_v50 = vpop.xlane.xlu1 %2197 }
0x1e0a   :  { %v2208_v34 = vsub.f32 %v2198_v50, %v3102_v5 }
0x1e0c   :  { %2223 = vperm.xlu0 %2537, %v2208_v34  }
0x1e0d   :  { %v2202_v12 = vpop.xlane.xlu1 %2201 }
0x1e0e   :  { %v2210_v4 = vsub.f32 %v2202_v12, %v3200_v55 }
0x1e10   :  { %2229 = vperm.xlu0 %2537, %v2210_v4  }
0x1e11   :  { %v2206_v53 = vpop.xlane.xlu1 %2205 }
0x1e12   :  { %v2212_v36 = vsub.f32 %v2206_v53, %v3204_v31 }
0x1e14   :  { %2235 = vperm.xlu0 %2537, %v2212_v36  }
0x1e15   :  { %v2324_v11 = vpop.xlane.xlu1 %2323 }
0x1e16   :  { %v2334_v62 = vsub.f32 %v2324_v11, %v3102_v5 }
0x1e18   :  { %2349 = vperm.xlu0 %2537, %v2334_v62  }
0x1e19   :  { %v2328_v15 = vpop.xlane.xlu1 %2327 }
0x1e1a   :  { %v2336_v28 = vsub.f32 %v2328_v15, %v3200_v55 }
0x1e1c   :  { %2355 = vperm.xlu0 %2537, %v2336_v28  }
0x1e1d   :  { %v2332_v49 = vpop.xlane.xlu1 %2331 }
0x1e1e   :  { %v2338_v47 = vsub.f32 %v2332_v49, %v3204_v31 }
0x1e20   :  { %2361 = vperm.xlu0 %2537, %v2338_v47  }
0x1e21   :  { %v1981_v18 = vpop.permute.xlu1 %1980 }
0x1e22   :  { %2570 = shalt.err (!%p2567_p10)
}
0x1e23   :  { %2410 = dma.vmem_to_hbm [thread:$0]  %s2405_s11, 96, %s4190_s2, [#allocation4], %s2632_s12, %s2632_s12, %s2633_s13   ;;  %v2008_v5 = vrot.slane %v1984_v2, %v3497_v58  ;;  %v2004_v55 = vrot.slane %v1981_v18, %v3497_v58 }
0x1e25   :  { %v2011_v31 = vsel %vm497_vm7, %v2008_v5, %v2004_v55  ;;  %v2098_v30 = vpop.permute.xlu1 %2097 }
0x1e26   :  { %2473 = vst.msk [vmem:[%s4189_s1 + $0x58] sm:$0x3] %vm98_vm15, %v2011_v31  ;;  %v2118_v56 = vrot.slane %v2098_v30, %v3497_v58 }
0x1e29   :  { %v2101_v14 = vpop.permute.xlu1 %2100 }
0x1e2a   :  { %v2122_v0 = vrot.slane %v2101_v14, %v3497_v58 }
0x1e2d   :  { %v2107_v9 = vpop.permute.xlu1 %2106 }
0x1e2e   :  { %v2130_v51 = vrot.slane %v2107_v9, %v3497_v58 }
0x1e31   :  { %v2221_v61 = vpop.permute.xlu1 %2220 }
0x1e32   :  { %v2240_v26 = vrot.slane %v2221_v61, %v3497_v58 }
0x1e35   :  { %v2227_v40 = vpop.permute.xlu1 %2226 }
0x1e36   :  { %v2248_v33 = vrot.slane %v2227_v40, %v3497_v58 }
0x1e39   :  { %v2233_v29 = vpop.permute.xlu1 %2232 }
0x1e3a   :  { %v2256_v10 = vrot.slane %v2233_v29, %v3497_v58 }
0x1e3d   :  { %v2347_v42 = vpop.permute.xlu1 %2346 }
0x1e3e   :  { %v2366_v48 = vrot.slane %v2347_v42, %v3497_v58 }
0x1e41   :  { %v2353_v45 = vpop.permute.xlu1 %2352 }
0x1e42   :  { %v2374_v8 = vrot.slane %v2353_v45, %v3497_v58 }
0x1e45   :  { %v2359_v60 = vpop.permute.xlu1 %2358 }
0x1e46   :  { %v2382_v25 = vrot.slane %v2359_v60, %v3497_v58 }
0x1e7b   :  { %v2095_v46 = vpop.permute.xlu0 %2094 }
0x1e7c   :  { %v2114_v52 = vrot.slane %v2095_v46, %v3497_v58 }
0x1e7e   :  { %v2135_v24 = vsel %vm497_vm7, %v2118_v56, %v2114_v52 }
0x1e7f   :  { %2474 = vst.msk [vmem:[%s4189_s1 + $0x1a] sm:$0x3] %vm98_vm15, %v2135_v24  ;;  %v2104_v27 = vpop.permute.xlu0 %2103 }
0x1e80   :  { %v2126_v44 = vrot.slane %v2104_v27, %v3497_v58 }
0x1e82   :  { %v2136_v6 = vsel %vm497_vm7, %v2126_v44, %v2122_v0 }
0x1e83   :  { %2475 = vst.msk [vmem:[%s4189_s1 + $0x3a] sm:$0x3] %vm98_vm15, %v2136_v6  ;;  %v2110_v3 = vpop.permute.xlu0 %2109 }
0x1e84   :  { %v2134_v41 = vrot.slane %v2110_v3, %v3497_v58 }
0x1e86   :  { %v2137_v57 = vsel %vm497_vm7, %v2134_v41, %v2130_v51 }
0x1e87   :  { %2476 = vst.msk [vmem:[%s4189_s1 + $0x5a] sm:$0x3] %vm98_vm15, %v2137_v57  ;;  %v2224_v20 = vpop.permute.xlu0 %2223 }
0x1e88   :  { %v2244_v21 = vrot.slane %v2224_v20, %v3497_v58 }
0x1e8a   :  { %v2261_v23 = vsel %vm497_vm7, %v2244_v21, %v2240_v26 }
0x1e8b   :  { %2477 = vst.msk [vmem:[%s4189_s1 + $0x1c] sm:$0x3] %vm98_vm15, %v2261_v23  ;;  %v2230_v63 = vpop.permute.xlu0 %2229 }
0x1e8c   :  { %v2252_v37 = vrot.slane %v2230_v63, %v3497_v58 }
0x1e8e   :  { %v2262_v7 = vsel %vm497_vm7, %v2252_v37, %v2248_v33 }
0x1e8f   :  { %2478 = vst.msk [vmem:[%s4189_s1 + $0x3c] sm:$0x3] %vm98_vm15, %v2262_v7  ;;  %v2236_v39 = vpop.permute.xlu0 %2235 }
0x1e90   :  { %v2260_v19 = vrot.slane %v2236_v39, %v3497_v58 }
0x1e92   :  { %v2263_v17 = vsel %vm497_vm7, %v2260_v19, %v2256_v10 }
0x1e93   :  { %2479 = vst.msk [vmem:[%s4189_s1 + $0x5c] sm:$0x3] %vm98_vm15, %v2263_v17  ;;  %v2350_v1 = vpop.permute.xlu0 %2349 }
0x1e94   :  { %v2370_v43 = vrot.slane %v2350_v1, %v3497_v58 }
0x1e96   :  { %v2387_v32 = vsel %vm497_vm7, %v2370_v43, %v2366_v48 }
0x1e97   :  { %2480 = vst.msk [vmem:[%s4189_s1 + $0x1e] sm:$0x3] %vm98_vm15, %v2387_v32  ;;  %v2356_v22 = vpop.permute.xlu0 %2355 }
0x1e98   :  { %v2378_v54 = vrot.slane %v2356_v22, %v3497_v58 }
0x1e9a   :  { %v2388_v59 = vsel %vm497_vm7, %v2378_v54, %v2374_v8 }
0x1e9b   :  { %2481 = vst.msk [vmem:[%s4189_s1 + $0x3e] sm:$0x3] %vm98_vm15, %v2388_v59  ;;  %v2362_v13 = vpop.permute.xlu0 %2361 }
0x1e9c   :  { %v2386_v16 = vrot.slane %v2362_v13, %v3497_v58 }
0x1e9e   :  { %v2389_v38 = vsel %vm497_vm7, %v2386_v16, %v2382_v25 }
0x1e9f   :  { %2482 = vst.msk [vmem:[%s4189_s1 + $0x5e] sm:$0x3] %vm98_vm15, %v2389_v38 }
0x1ea0   :  { %2605 = dma.done.wait [#allocation4], 96  }
0x1ea1   :  { %2606 = vsyncadd [#allocation4], 4294967200 }
0x1ea2   :  { %2416 = vsyncpa [#allocation3], 1 }
0x1ea3   :  { %2417 = vsyncpa [#allocation4], 1 }

</bundles_post_ra>
